<compile_context>
chip_gen: v5e
topology: v5e:2x2
jax: 0.10.0
libtpu: 0.0.40
codegen_flags: <defaults>
</compile_context>

<pallas_src>
import jax
import jax.numpy as jnp
from jax.experimental import pallas as pl
from jax.experimental.pallas import tpu as pltpu


def _ffnn_kernel(x_ref, w1_ref, b1_ref, w2_ref, b2_ref, o_ref):
    # Weights / biases are VMEM-resident across batch tiles (constant index_map).
    x = x_ref[...]              # f32 (TILE_B, IN)
    w1 = w1_ref[...]            # f32 (IN, H1)
    b1 = b1_ref[...]            # f32 (1, H1)
    w2 = w2_ref[...]            # f32 (H1, H2)
    b2 = b2_ref[...]            # f32 (1, H2)

    # l1 + relu
    h1 = jnp.dot(x, w1, preferred_element_type=jnp.float32) + b1
    h1 = jnp.maximum(h1, 0.0)

    # l2 + relu  (hidden_size2 branch)
    h2 = jnp.dot(h1, w2, preferred_element_type=jnp.float32) + b2
    h2 = jnp.maximum(h2, 0.0)

    # l2 applied again (as in the reference forward), then sigmoid.
    z = jnp.dot(h2, w2, preferred_element_type=jnp.float32) + b2

    # Stable sigmoid: clamp so exp(-z) can never overflow to +inf
    # (sigmoid(-30) ~ 9e-14, indistinguishable from 0 in f32).
    z = jnp.maximum(z, -30.0)
    o_ref[...] = 1.0 / (1.0 + jnp.exp(-z))


def _default_num_batch_tiles():
    """One batch tile per TensorCore: 2 on v7x (2 TCs/chip), 1 elsewhere."""
    try:
        kind = jax.devices()[0].device_kind.lower()
    except Exception:
        return 1
    return 2 if "v7" in kind else 1


def binary_ffnn_forward(x, w1, b1, w2, b2, *, num_batch_tiles=None):
    """Forward pass.

    x : (B, input_size) f32
    w1: (input_size, hidden1) f32   (already transposed to (in, out))
    b1: (1, hidden1) f32
    w2: (hidden1, hidden2) f32
    b2: (1, hidden2) f32
    Returns (B, hidden2) f32.
    """
    B, IN = x.shape
    H1 = w1.shape[1]
    H2 = w2.shape[1]
    assert H1 == H2, "double application of l2 requires hidden1 == hidden2"
    assert w2.shape[0] == H1 and b1.shape == (1, H1) and b2.shape == (1, H2)

    if num_batch_tiles is None:
        num_batch_tiles = _default_num_batch_tiles()
    # Batch tiles (other than a single full-extent tile) must be sublane-aligned;
    # fall back to one tile otherwise (always legal: block dim == full dim).
    if num_batch_tiles > 1 and (B % (8 * num_batch_tiles) != 0):
        num_batch_tiles = 1
    tile_b = B // num_batch_tiles

    grid = (num_batch_tiles,)

    cost = pl.CostEstimate(
        flops=2 * B * (IN * H1 + 2 * H1 * H2),
        transcendentals=B * H2,
        bytes_accessed=4 * (x.size + w1.size + w2.size + b1.size + b2.size
                            + B * H2),
    )

    out = pl.pallas_call(
        _ffnn_kernel,
        out_shape=jax.ShapeDtypeStruct((B, H2), jnp.float32),
        grid_spec=pl.GridSpec(
            grid=grid,
            in_specs=[
                pl.BlockSpec((tile_b, IN), lambda i: (i, 0)),   # x tile
                pl.BlockSpec((IN, H1), lambda i: (0, 0)),       # W1 resident
                pl.BlockSpec((1, H1), lambda i: (0, 0)),        # b1 resident
                pl.BlockSpec((H1, H2), lambda i: (0, 0)),       # W2 resident
                pl.BlockSpec((1, H2), lambda i: (0, 0)),        # b2 resident
            ],
            out_specs=pl.BlockSpec((tile_b, H2), lambda i: (i, 0)),
        ),
        compiler_params=pltpu.CompilerParams(
            dimension_semantics=("parallel",),
            vmem_limit_bytes=32 * 1024 * 1024,
        ),
        cost_estimate=cost,
    )(x, w1, b1, w2, b2)

    return out


def init_params(key, input_size, hidden_size1, hidden_size2):
    """Deterministic init mimicking nn.Linear's U(-1/sqrt(fan_in), 1/sqrt(fan_in)).

    Returned weights are already transposed to (in, out) for the kernel.
    """
    k1, k2, k3, k4 = jax.random.split(key, 4)
    bound1 = 1.0 / jnp.sqrt(input_size)
    bound2 = 1.0 / jnp.sqrt(hidden_size1)

    w1 = jax.random.uniform(k1, (input_size, hidden_size1), jnp.float32,
                            -bound1, bound1)
    b1 = jax.random.uniform(k2, (1, hidden_size1), jnp.float32,
                            -bound1, bound1)
    w2 = jax.random.uniform(k3, (hidden_size1, hidden_size2), jnp.float32,
                            -bound2, bound2)
    b2 = jax.random.uniform(k4, (1, hidden_size2), jnp.float32,
                            -bound2, bound2)
    return w1, b1, w2, b2


if __name__ == "__main__":
    # Small logical shapes consistent with the module's Linear layers.
    batch = 512
    input_size = 16
    hidden_size1 = 32
    hidden_size2 = 32  # must equal hidden_size1 for the double-l2 forward

    key = jax.random.PRNGKey(0)
    kx, kp = jax.random.split(key)
    x = jax.random.normal(kx, (batch, input_size), dtype=jnp.float32)
    w1, b1, w2, b2 = init_params(kp, input_size, hidden_size1, hidden_size2)

    out = binary_ffnn_forward(x, w1, b1, w2, b2)
    out = jax.block_until_ready(out)

    # Pure-JAX f32 reference of the exact same forward semantics.
    h1 = jnp.maximum(x @ w1 + b1, 0.0)
    h2 = jnp.maximum(h1 @ w2 + b2, 0.0)
    ref = jax.nn.sigmoid(h2 @ w2 + b2)

    assert out.shape == (batch, hidden_size2)
    # Default TPU matmul precision may differ slightly between the Pallas MXU
    # path and the XLA reference -> modest tolerance.
    assert jnp.allclose(out, ref, atol=2e-2, rtol=2e-2), (
        float(jnp.max(jnp.abs(out - ref))))

    print("KERNEL_OK")
</pallas_src>

<mosaic_0001>
module attributes {stable_mosaic.version = 11 : i64} {
  func.func @_ffnn_kernel(%arg0: i32, %arg1: memref<512x16xf32, #tpu.memory_space<vmem>>, %arg2: memref<16x32xf32, #tpu.memory_space<vmem>>, %arg3: memref<1x32xf32, #tpu.memory_space<vmem>>, %arg4: memref<32x32xf32, #tpu.memory_space<vmem>>, %arg5: memref<1x32xf32, #tpu.memory_space<vmem>>, %arg6: memref<512x32xf32, #tpu.memory_space<vmem>>) attributes {dimension_semantics = [#tpu.dimension_semantics<parallel>], iteration_bounds = array<i64: 1>, scalar_prefetch = 0 : i64, scratch_operands = 0 : i64, tpu.core_type = #tpu.core_type<tc>, window_params = [{transform_indices = @transform_0, window_bounds = array<i64: 512, 16>}, {pipeline_mode = #tpu.pipeline_mode<synchronous>, transform_indices = @transform_1, window_bounds = array<i64: 16, 32>}, {pipeline_mode = #tpu.pipeline_mode<synchronous>, transform_indices = @transform_2, window_bounds = array<i64: 1, 32>}, {pipeline_mode = #tpu.pipeline_mode<synchronous>, transform_indices = @transform_3, window_bounds = array<i64: 32, 32>}, {pipeline_mode = #tpu.pipeline_mode<synchronous>, transform_indices = @transform_4, window_bounds = array<i64: 1, 32>}, {transform_indices = @transform_5, window_bounds = array<i64: 512, 32>}]} {
    %c0 = arith.constant 0 : index
    %c0_0 = arith.constant 0 : index
    %0 = vector.load %arg1[%c0, %c0_0] : memref<512x16xf32, #tpu.memory_space<vmem>>, vector<512x16xf32>
    %c0_1 = arith.constant 0 : index
    %c0_2 = arith.constant 0 : index
    %1 = vector.load %arg2[%c0_1, %c0_2] : memref<16x32xf32, #tpu.memory_space<vmem>>, vector<16x32xf32>
    %c0_3 = arith.constant 0 : index
    %c0_4 = arith.constant 0 : index
    %2 = vector.load %arg3[%c0_3, %c0_4] : memref<1x32xf32, #tpu.memory_space<vmem>>, vector<1x32xf32>
    %c0_5 = arith.constant 0 : index
    %c0_6 = arith.constant 0 : index
    %3 = vector.load %arg4[%c0_5, %c0_6] : memref<32x32xf32, #tpu.memory_space<vmem>>, vector<32x32xf32>
    %c0_7 = arith.constant 0 : index
    %c0_8 = arith.constant 0 : index
    %4 = vector.load %arg5[%c0_7, %c0_8] : memref<1x32xf32, #tpu.memory_space<vmem>>, vector<1x32xf32>
    %cst = arith.constant dense<0.000000e+00> : vector<512x32xf32>
    %5 = tpu.matmul %0, %1, %cst {dimension_numbers = #tpu.dot_dimension_numbers<[1], [0], [0], [1], [0, 0, 1, 1], [], []>} : vector<512x16xf32>, vector<16x32xf32>, vector<512x32xf32> -> vector<512x32xf32>
    %6 = vector.broadcast %2 : vector<1x32xf32> to vector<512x32xf32>
    %7 = arith.addf %5, %6 : vector<512x32xf32>
    %cst_9 = arith.constant 0.000000e+00 : f32
    %8 = vector.broadcast %cst_9 : f32 to vector<512x32xf32>
    %9 = arith.maximumf %7, %8 : vector<512x32xf32>
    %cst_10 = arith.constant dense<0.000000e+00> : vector<512x32xf32>
    %10 = tpu.matmul %9, %3, %cst_10 {dimension_numbers = #tpu.dot_dimension_numbers<[1], [0], [0], [1], [0, 0, 1, 1], [], []>} : vector<512x32xf32>, vector<32x32xf32>, vector<512x32xf32> -> vector<512x32xf32>
    %11 = vector.broadcast %4 : vector<1x32xf32> to vector<512x32xf32>
    %12 = arith.addf %10, %11 : vector<512x32xf32>
    %cst_11 = arith.constant 0.000000e+00 : f32
    %13 = vector.broadcast %cst_11 : f32 to vector<512x32xf32>
    %14 = arith.maximumf %12, %13 : vector<512x32xf32>
    %cst_12 = arith.constant dense<0.000000e+00> : vector<512x32xf32>
    %15 = tpu.matmul %14, %3, %cst_12 {dimension_numbers = #tpu.dot_dimension_numbers<[1], [0], [0], [1], [0, 0, 1, 1], [], []>} : vector<512x32xf32>, vector<32x32xf32>, vector<512x32xf32> -> vector<512x32xf32>
    %16 = vector.broadcast %4 : vector<1x32xf32> to vector<512x32xf32>
    %17 = arith.addf %15, %16 : vector<512x32xf32>
    %cst_13 = arith.constant -3.000000e+01 : f32
    %18 = vector.broadcast %cst_13 : f32 to vector<512x32xf32>
    %19 = arith.maximumf %17, %18 : vector<512x32xf32>
    %cst_14 = arith.constant 0.000000e+00 : f32
    %20 = vector.broadcast %cst_14 : f32 to vector<512x32xf32>
    %21 = arith.subf %20, %19 : vector<512x32xf32>
    %22 = math.exp %21 : vector<512x32xf32>
    %cst_15 = arith.constant 1.000000e+00 : f32
    %23 = vector.broadcast %cst_15 : f32 to vector<512x32xf32>
    %24 = arith.addf %23, %22 : vector<512x32xf32>
    %cst_16 = arith.constant 1.000000e+00 : f32
    %25 = vector.broadcast %cst_16 : f32 to vector<512x32xf32>
    %26 = arith.divf %25, %24 : vector<512x32xf32>
    %c0_17 = arith.constant 0 : index
    %c0_18 = arith.constant 0 : index
    %27 = vector.load %arg6[%c0_17, %c0_18] : memref<512x32xf32, #tpu.memory_space<vmem>>, vector<512x32xf32>
    tpu.vector_store %arg6[%c0_17, %c0_18], %26 {strides = array<i32>} : memref<512x32xf32, #tpu.memory_space<vmem>>, vector<512x32xf32>,
    return
  }
  func.func @transform_0(%arg0: i32) -> (i32, i32) {
    %c0_i32 = arith.constant 0 : i32
    %c0_i32_0 = arith.constant 0 : i32
    return %arg0, %c0_i32 : i32, i32
  }
  func.func @transform_1(%arg0: i32) -> (i32, i32) {
    %c0_i32 = arith.constant 0 : i32
    %c0_i32_0 = arith.constant 0 : i32
    %c0_i32_1 = arith.constant 0 : i32
    return %c0_i32, %c0_i32_0 : i32, i32
  }
  func.func @transform_2(%arg0: i32) -> (i32, i32) {
    %c0_i32 = arith.constant 0 : i32
    %c0_i32_0 = arith.constant 0 : i32
    %c0_i32_1 = arith.constant 0 : i32
    return %c0_i32, %c0_i32_0 : i32, i32
  }
  func.func @transform_3(%arg0: i32) -> (i32, i32) {
    %c0_i32 = arith.constant 0 : i32
    %c0_i32_0 = arith.constant 0 : i32
    %c0_i32_1 = arith.constant 0 : i32
    return %c0_i32, %c0_i32_0 : i32, i32
  }
  func.func @transform_4(%arg0: i32) -> (i32, i32) {
    %c0_i32 = arith.constant 0 : i32
    %c0_i32_0 = arith.constant 0 : i32
    %c0_i32_1 = arith.constant 0 : i32
    return %c0_i32, %c0_i32_0 : i32, i32
  }
  func.func @transform_5(%arg0: i32) -> (i32, i32) {
    %c0_i32 = arith.constant 0 : i32
    %c0_i32_0 = arith.constant 0 : i32
    return %arg0, %c0_i32 : i32, i32
  }
}

</mosaic_0001>

<bundles_post_ra>
// kernel: tpu_custom_call.1
= control target key start
LH: loop header
LB: loop body
LE: loop exit
PB: predicated region body
PF: predicated region fallthrough
CT: control target
= control target key end

     0   :  { %vm95_vm0 = vcmask 130048   ;;  %vm564_vm1 = vcmask 261120   ;;  %s4394_s1 = inlined_call_operand.vmem [shape: f32[16,32], index: 1, kind: input, shape index: {}]   ;;  %s4395_s0 = inlined_call_operand.vmem [shape: f32[512,16], index: 0, kind: input, shape index: {}]   ;;  %s4396_s2 = inlined_call_operand.vmem [shape: f32[1,32], index: 2, kind: input, shape index: {}]   ;;  %s4397_s3 = inlined_call_operand.vmem [shape: f32[32,32], index: 3, kind: input, shape index: {}]   ;;  %s4398_s4 = inlined_call_operand.vmem [shape: f32[1,32], index: 4, kind: input, shape index: {}]   ;;  %s4399_s5 = inlined_call_operand.vmem [shape: f32[512,32], index: 5, kind: output, shape index: {}]  }
   0x1   :  { %v85_v0 = vld [vmem:[%s4394_s1 + $0x8] sm:$0xff]  ;;  %v84_v1 = vld [vmem:[%s4394_s1] sm:$0xff]  ;;  %v22_v4 = vld [vmem:[%s4395_s0 + $0x10] sm:$0xff] }
   0x2   :  { %302 = vmatpush.msra.mxu0 %v85_v0  ;;  %v20_v2 = vld [vmem:[%s4395_s0] sm:$0xff]  ;;  %2971 = vmatpush.msra.mxu3 %v85_v0  ;;  %v21_v3 = vld [vmem:[%s4395_s0 + $0x8] sm:$0xff]  ;;  %v23_v5 = vld [vmem:[%s4395_s0 + $0x18] sm:$0xff] }
   0x3   :  { %v24_v6 = vld [vmem:[%s4395_s0 + $0x20] sm:$0xff]  ;;  %v25_v7 = vld [vmem:[%s4395_s0 + $0x28] sm:$0xff]  ;;  %v26_v8 = vld [vmem:[%s4395_s0 + $0x30] sm:$0xff] }
   0x4   :  { %303 = vmatpush.msra.mxu0 %v84_v1  ;;  %2972 = vmatpush.msra.mxu3 %v84_v1  ;;  %v27_v9 = vld [vmem:[%s4395_s0 + $0x38] sm:$0xff]  ;;  %v28_v10 = vld [vmem:[%s4395_s0 + $0x40] sm:$0xff]  ;;  %v29_v11 = vld [vmem:[%s4395_s0 + $0x48] sm:$0xff] }
   0x5   :  { %2779 = vmatmul.msk.f32.vlgmr.msra.gmra.mxu0 %vm95_vm0, %v20_v2  ;;  %v30_v12 = vld [vmem:[%s4395_s0 + $0x50] sm:$0xff]  ;;  %v31_v13 = vld [vmem:[%s4395_s0 + $0x58] sm:$0xff]  ;;  %v32_v16 = vld [vmem:[%s4395_s0 + $0x60] sm:$0xff] }
   0x6   :  { %v3331_v14 = vld [vmem:[%s4397_s3 + $0x18] sm:$0xff]  ;;  %v3339_v15 = vld [vmem:[%s4397_s3 + $0x10] sm:$0xff]  ;;  %v3349_v17 = vld [vmem:[%s4397_s3 + $0x8] sm:$0xff] }
   0x7   :  { %769 = vmatpush.msra.mxu1 %v3331_v14  ;;  %1234 = vmatpush.msra.mxu2 %v3331_v14  ;;  %v3358_v18 = vld [vmem:[%s4397_s3] sm:$0xff]  ;;  %v33_v19 = vld [vmem:[%s4395_s0 + $0x68] sm:$0xff]  ;;  %v34_v20 = vld [vmem:[%s4395_s0 + $0x70] sm:$0xff] }
   0x8   :  { %2973 = vmatpush.msrb.mxu3 %v3331_v14  ;;  %v35_v21 = vld [vmem:[%s4395_s0 + $0x78] sm:$0xff]  ;;  %v3379_v22 = vld [vmem:[%s4396_s2] ss:$0 sm:$0xff]  ;;  %v37_v28 = vld [vmem:[%s4395_s0 + $0x88] sm:$0xff] }
   0x9   :  { %770 = vmatpush.msra.mxu1 %v3339_v15  ;;  %1235 = vmatpush.msra.mxu2 %v3339_v15  ;;  %v36_v24 = vld [vmem:[%s4395_s0 + $0x80] sm:$0xff]  ;;  %v38_v32 = vld [vmem:[%s4395_s0 + $0x90] sm:$0xff]  ;;  %v39_v36 = vld [vmem:[%s4395_s0 + $0x98] sm:$0xff] }
   0xa   :  { %2974 = vmatpush.msrb.mxu3 %v3339_v15  ;;  %v40_v40 = vld [vmem:[%s4395_s0 + $0xa0] sm:$0xff]  ;;  %v41_v44 = vld [vmem:[%s4395_s0 + $0xa8] sm:$0xff]  ;;  %v42_v48 = vld [vmem:[%s4395_s0 + $0xb0] sm:$0xff] }
   0xb   :  { %771 = vmatpush.msra.mxu1 %v3349_v17  ;;  %1236 = vmatpush.msra.mxu2 %v3349_v17  ;;  %v43_v52 = vld [vmem:[%s4395_s0 + $0xb8] sm:$0xff]  ;;  %v44_v56 = vld [vmem:[%s4395_s0 + $0xc0] sm:$0xff]  ;;  %v45_v60 = vld [vmem:[%s4395_s0 + $0xc8] sm:$0xff] }
   0xc   :  { %2975 = vmatpush.msrb.mxu3 %v3349_v17  ;;  %v46_v0 = vld [vmem:[%s4395_s0 + $0xd0] sm:$0xff] }
   0xd   :  { %2780 = vmatmul.msk.f32.gmra.mxu0 %vm95_vm0, %v21_v3  ;;  %772 = vmatpush.msra.mxu1 %v3358_v18 }
   0xe   :  { %1237 = vmatpush.msra.mxu2 %v3358_v18  ;;  %2976 = vmatpush.msrb.mxu3 %v3358_v18 }
  0x15   :  { %2781 = vmatmul.msk.f32.gmra.mxu0 %vm95_vm0, %v22_v4  ;;  %v47_v4 = vld [vmem:[%s4395_s0 + $0xd8] sm:$0xff] }
  0x1d   :  { %2782 = vmatmul.msk.f32.gmra.mxu0 %vm95_vm0, %v23_v5 }
  0x25   :  { %2783 = vmatmul.msk.f32.gmra.mxu0 %vm95_vm0, %v24_v6 }
  0x2d   :  { %2784 = vmatmul.msk.f32.gmra.mxu0 %vm95_vm0, %v25_v7 }
  0x35   :  { %2785 = vmatmul.msk.f32.gmra.mxu0 %vm95_vm0, %v26_v8  ;;  %v48_v8 = vld [vmem:[%s4395_s0 + $0xe0] sm:$0xff] }
  0x3d   :  { %2786 = vmatmul.msk.f32.gmra.mxu0 %vm95_vm0, %v27_v9 }
  0x45   :  { %2787 = vmatmul.msk.f32.gmra.mxu0 %vm95_vm0, %v28_v10 }
  0x4d   :  { %2788 = vmatmul.msk.f32.gmra.mxu0 %vm95_vm0, %v29_v11 }
  0x55   :  { %2789 = vmatmul.msk.f32.gmra.mxu0 %vm95_vm0, %v30_v12  ;;  %v49_v12 = vld [vmem:[%s4395_s0 + $0xe8] sm:$0xff] }
  0x5d   :  { %2790 = vmatmul.msk.f32.gmra.mxu0 %vm95_vm0, %v31_v13 }
  0x65   :  { %2791 = vmatmul.msk.f32.gmra.mxu0 %vm95_vm0, %v32_v16 }
  0x6d   :  { %2792 = vmatmul.msk.f32.gmra.mxu0 %vm95_vm0, %v33_v19 }
  0x75   :  { %2793 = vmatmul.msk.f32.gmra.mxu0 %vm95_vm0, %v34_v20  ;;  %v50_v20 = vld [vmem:[%s4395_s0 + $0xf0] sm:$0xff] }
  0x7d   :  { %2794 = vmatmul.msk.f32.gmra.mxu0 %vm95_vm0, %v35_v21 }
  0x82   :  { %v305_v23 = vpop.f32.mrf.mxu0 }
  0x83   :  { %v306_v25 = vadd.f32 %v3379_v22, %v305_v23 }
  0x85   :  { %v497_v26 = vmax.f32 %v306_v25, 0.0  ;;  %2795 = vmatmul.msk.f32.gmra.mxu0 %vm95_vm0, %v36_v24  ;;  %v51_v25 = vld [vmem:[%s4395_s0 + $0xf8] sm:$0xff] }
  0x87   :  { %2843 = vmatmul.msk.f32.vlgmr.msra.gmra.mxu1 %vm564_vm1, %v497_v26 }
  0x8a   :  { %v308_v27 = vpop.f32.mrf.mxu0 }
  0x8b   :  { %v309_v29 = vadd.f32 %v3379_v22, %v308_v27 }
  0x8d   :  { %v498_v30 = vmax.f32 %v309_v29, 0.0  ;;  %2796 = vmatmul.msk.f32.gmra.mxu0 %vm95_vm0, %v37_v28  ;;  %v3480_v28 = vld [vmem:[%s4398_s4] ss:$0 sm:$0xff] }
  0x8f   :  { %2844 = vmatmul.msk.f32.gmra.mxu1 %vm564_vm1, %v498_v30  ;;  %v52_v30 = vld [vmem:[%s4395_s0 + $0x100] sm:$0xff] }
  0x92   :  { %v311_v31 = vpop.f32.mrf.mxu0 }
  0x93   :  { %v312_v33 = vadd.f32 %v3379_v22, %v311_v31 }
  0x95   :  { %v499_v34 = vmax.f32 %v312_v33, 0.0  ;;  %2797 = vmatmul.msk.f32.gmra.mxu0 %vm95_vm0, %v38_v32 }
  0x97   :  { %2845 = vmatmul.msk.f32.gmra.mxu1 %vm564_vm1, %v499_v34 }
  0x9a   :  { %v314_v35 = vpop.f32.mrf.mxu0 }
  0x9b   :  { %v315_v37 = vadd.f32 %v3379_v22, %v314_v35 }
  0x9d   :  { %v500_v38 = vmax.f32 %v315_v37, 0.0  ;;  %2798 = vmatmul.msk.f32.gmra.mxu0 %vm95_vm0, %v39_v36  ;;  %v53_v37 = vld [vmem:[%s4395_s0 + $0x108] sm:$0xff] }
  0x9f   :  { %2846 = vmatmul.msk.f32.gmra.mxu1 %vm564_vm1, %v500_v38 }
  0xa2   :  { %v317_v39 = vpop.f32.mrf.mxu0 }
  0xa3   :  { %v318_v41 = vadd.f32 %v3379_v22, %v317_v39 }
  0xa5   :  { %v501_v42 = vmax.f32 %v318_v41, 0.0  ;;  %2799 = vmatmul.msk.f32.gmra.mxu0 %vm95_vm0, %v40_v40 }
  0xa7   :  { %2847 = vmatmul.msk.f32.gmra.mxu1 %vm564_vm1, %v501_v42 }
  0xaa   :  { %v320_v43 = vpop.f32.mrf.mxu0 }
  0xab   :  { %v321_v45 = vadd.f32 %v3379_v22, %v320_v43 }
  0xad   :  { %v502_v46 = vmax.f32 %v321_v45, 0.0  ;;  %2800 = vmatmul.msk.f32.gmra.mxu0 %vm95_vm0, %v41_v44  ;;  %v54_v44 = vld [vmem:[%s4395_s0 + $0x110] sm:$0xff] }
  0xaf   :  { %2848 = vmatmul.msk.f32.gmra.mxu1 %vm564_vm1, %v502_v46 }
  0xb2   :  { %v323_v47 = vpop.f32.mrf.mxu0 }
  0xb3   :  { %v324_v49 = vadd.f32 %v3379_v22, %v323_v47 }
  0xb5   :  { %v503_v50 = vmax.f32 %v324_v49, 0.0  ;;  %2801 = vmatmul.msk.f32.gmra.mxu0 %vm95_vm0, %v42_v48 }
  0xb7   :  { %2849 = vmatmul.msk.f32.gmra.mxu1 %vm564_vm1, %v503_v50 }
  0xba   :  { %v326_v51 = vpop.f32.mrf.mxu0 }
  0xbb   :  { %v327_v53 = vadd.f32 %v3379_v22, %v326_v51  ;;  %v55_v51 = vld [vmem:[%s4395_s0 + $0x118] sm:$0xff] }
  0xbd   :  { %v504_v54 = vmax.f32 %v327_v53, 0.0  ;;  %2802 = vmatmul.msk.f32.gmra.mxu0 %vm95_vm0, %v43_v52 }
  0xbf   :  { %2850 = vmatmul.msk.f32.gmra.mxu1 %vm564_vm1, %v504_v54 }
  0xc2   :  { %v329_v55 = vpop.f32.mrf.mxu0 }
  0xc3   :  { %v330_v57 = vadd.f32 %v3379_v22, %v329_v55 }
  0xc5   :  { %v505_v58 = vmax.f32 %v330_v57, 0.0  ;;  %2803 = vmatmul.msk.f32.gmra.mxu0 %vm95_vm0, %v44_v56 }
  0xc7   :  { %2851 = vmatmul.msk.f32.gmra.mxu1 %vm564_vm1, %v505_v58  ;;  %v56_v58 = vld [vmem:[%s4395_s0 + $0x120] sm:$0xff] }
  0xca   :  { %v332_v59 = vpop.f32.mrf.mxu0 }
  0xcb   :  { %v333_v61 = vadd.f32 %v3379_v22, %v332_v59 }
  0xcd   :  { %v506_v62 = vmax.f32 %v333_v61, 0.0  ;;  %2804 = vmatmul.msk.f32.gmra.mxu0 %vm95_vm0, %v45_v60 }
  0xcf   :  { %2852 = vmatmul.msk.f32.gmra.mxu1 %vm564_vm1, %v506_v62 }
  0xd2   :  { %v335_v63 = vpop.f32.mrf.mxu0 }
  0xd3   :  { %v336_v1 = vadd.f32 %v3379_v22, %v335_v63 }
  0xd5   :  { %v507_v2 = vmax.f32 %v336_v1, 0.0  ;;  %2805 = vmatmul.msk.f32.gmra.mxu0 %vm95_vm0, %v46_v0  ;;  %v57_v1 = vld [vmem:[%s4395_s0 + $0x128] sm:$0xff] }
  0xd7   :  { %2853 = vmatmul.msk.f32.gmra.mxu1 %vm564_vm1, %v507_v2 }
  0xda   :  { %v338_v3 = vpop.f32.mrf.mxu0 }
  0xdb   :  { %v339_v5 = vadd.f32 %v3379_v22, %v338_v3 }
  0xdd   :  { %v508_v6 = vmax.f32 %v339_v5, 0.0  ;;  %2806 = vmatmul.msk.f32.gmra.mxu0 %vm95_vm0, %v47_v4 }
  0xdf   :  { %2854 = vmatmul.msk.f32.gmra.mxu1 %vm564_vm1, %v508_v6 }
  0xe2   :  { %v341_v7 = vpop.f32.mrf.mxu0 }
  0xe3   :  { %v342_v9 = vadd.f32 %v3379_v22, %v341_v7 }
  0xe5   :  { %v509_v10 = vmax.f32 %v342_v9, 0.0  ;;  %2807 = vmatmul.msk.f32.gmra.mxu0 %vm95_vm0, %v48_v8  ;;  %v58_v8 = vld [vmem:[%s4395_s0 + $0x130] sm:$0xff] }
  0xe7   :  { %2855 = vmatmul.msk.f32.gmra.mxu1 %vm564_vm1, %v509_v10 }
  0xea   :  { %v344_v11 = vpop.f32.mrf.mxu0 }
  0xeb   :  { %v345_v13 = vadd.f32 %v3379_v22, %v344_v11 }
  0xed   :  { %v510_v16 = vmax.f32 %v345_v13, 0.0  ;;  %2808 = vmatmul.msk.f32.gmra.mxu0 %vm95_vm0, %v49_v12 }
  0xef   :  { %2856 = vmatmul.msk.f32.gmra.mxu1 %vm564_vm1, %v510_v16 }
  0xf2   :  { %v347_v19 = vpop.f32.mrf.mxu0 }
  0xf3   :  { %v348_v21 = vadd.f32 %v3379_v22, %v347_v19  ;;  %v59_v19 = vld [vmem:[%s4395_s0 + $0x138] sm:$0xff] }
  0xf5   :  { %v511_v23 = vmax.f32 %v348_v21, 0.0  ;;  %2809 = vmatmul.msk.f32.gmra.mxu0 %vm95_vm0, %v50_v20 }
  0xf7   :  { %2857 = vmatmul.msk.f32.gmra.mxu1 %vm564_vm1, %v511_v23 }
  0xfa   :  { %v350_v24 = vpop.f32.mrf.mxu0 }
  0xfb   :  { %v351_v26 = vadd.f32 %v3379_v22, %v350_v24 }
  0xfd   :  { %v512_v27 = vmax.f32 %v351_v26, 0.0  ;;  %2810 = vmatmul.msk.f32.gmra.mxu0 %vm95_vm0, %v51_v25 }
  0xff   :  { %2858 = vmatmul.msk.f32.gmra.mxu1 %vm564_vm1, %v512_v27  ;;  %v60_v27 = vld [vmem:[%s4395_s0 + $0x140] sm:$0xff] }
 0x102   :  { %v353_v29 = vpop.f32.mrf.mxu0 }
 0x103   :  { %v354_v31 = vadd.f32 %v3379_v22, %v353_v29 }
 0x104   :  { %v774_v32 = vpop.f32.mrf.mxu1 }
 0x105   :  { %v513_v33 = vmax.f32 %v354_v31, 0.0  ;;  %v775_v34 = vadd.f32 %v3480_v28, %v774_v32  ;;  %2811 = vmatmul.msk.f32.gmra.mxu0 %vm95_vm0, %v52_v30 }
 0x107   :  { %v966_v35 = vmax.f32 %v775_v34, 0.0  ;;  %2859 = vmatmul.msk.f32.gmra.mxu1 %vm564_vm1, %v513_v33 }
 0x109   :  { %2907 = vmatmul.msk.f32.vlgmr.msra.gmra.mxu2 %vm564_vm1, %v966_v35  ;;  %v61_v35 = vld [vmem:[%s4395_s0 + $0x148] sm:$0xff] }
 0x10a   :  { %v356_v36 = vpop.f32.mrf.mxu0 }
 0x10b   :  { %v357_v38 = vadd.f32 %v3379_v22, %v356_v36 }
 0x10c   :  { %v777_v39 = vpop.f32.mrf.mxu1 }
 0x10d   :  { %v514_v40 = vmax.f32 %v357_v38, 0.0  ;;  %v778_v41 = vadd.f32 %v3480_v28, %v777_v39  ;;  %2812 = vmatmul.msk.f32.gmra.mxu0 %vm95_vm0, %v53_v37 }
 0x10f   :  { %v967_v42 = vmax.f32 %v778_v41, 0.0  ;;  %2860 = vmatmul.msk.f32.gmra.mxu1 %vm564_vm1, %v514_v40 }
 0x111   :  { %2908 = vmatmul.msk.f32.gmra.mxu2 %vm564_vm1, %v967_v42  ;;  %v62_v42 = vld [vmem:[%s4395_s0 + $0x150] sm:$0xff] }
 0x112   :  { %v359_v43 = vpop.f32.mrf.mxu0 }
 0x113   :  { %v360_v45 = vadd.f32 %v3379_v22, %v359_v43 }
 0x114   :  { %v780_v46 = vpop.f32.mrf.mxu1 }
 0x115   :  { %v515_v47 = vmax.f32 %v360_v45, 0.0  ;;  %v781_v48 = vadd.f32 %v3480_v28, %v780_v46  ;;  %2813 = vmatmul.msk.f32.gmra.mxu0 %vm95_vm0, %v54_v44 }
 0x117   :  { %v968_v49 = vmax.f32 %v781_v48, 0.0  ;;  %2861 = vmatmul.msk.f32.gmra.mxu1 %vm564_vm1, %v515_v47 }
 0x119   :  { %2909 = vmatmul.msk.f32.gmra.mxu2 %vm564_vm1, %v968_v49  ;;  %v63_v49 = vld [vmem:[%s4395_s0 + $0x158] sm:$0xff] }
 0x11a   :  { %v362_v50 = vpop.f32.mrf.mxu0 }
 0x11b   :  { %v363_v52 = vadd.f32 %v3379_v22, %v362_v50 }
 0x11c   :  { %v783_v53 = vpop.f32.mrf.mxu1 }
 0x11d   :  { %v516_v54 = vmax.f32 %v363_v52, 0.0  ;;  %v784_v55 = vadd.f32 %v3480_v28, %v783_v53  ;;  %2814 = vmatmul.msk.f32.gmra.mxu0 %vm95_vm0, %v55_v51 }
 0x11f   :  { %v969_v56 = vmax.f32 %v784_v55, 0.0  ;;  %2862 = vmatmul.msk.f32.gmra.mxu1 %vm564_vm1, %v516_v54 }
 0x121   :  { %2910 = vmatmul.msk.f32.gmra.mxu2 %vm564_vm1, %v969_v56  ;;  %v64_v56 = vld [vmem:[%s4395_s0 + $0x160] sm:$0xff] }
 0x122   :  { %v365_v57 = vpop.f32.mrf.mxu0 }
 0x123   :  { %v366_v59 = vadd.f32 %v3379_v22, %v365_v57 }
 0x124   :  { %v786_v60 = vpop.f32.mrf.mxu1 }
 0x125   :  { %v517_v61 = vmax.f32 %v366_v59, 0.0  ;;  %v787_v62 = vadd.f32 %v3480_v28, %v786_v60  ;;  %2815 = vmatmul.msk.f32.gmra.mxu0 %vm95_vm0, %v56_v58 }
 0x127   :  { %v970_v63 = vmax.f32 %v787_v62, 0.0  ;;  %2863 = vmatmul.msk.f32.gmra.mxu1 %vm564_vm1, %v517_v61  ;;  %v69_v61 = vld [vmem:[%s4395_s0 + $0x188] sm:$0xff] }
 0x128   :  { %2828 = vmatmul.msk.f32.vlgmr.msra.gmra.mxu3 %vm95_vm0, %v69_v61 }
 0x129   :  { %2911 = vmatmul.msk.f32.gmra.mxu2 %vm564_vm1, %v970_v63  ;;  %2977 = vmatpush.msra.mxu3 %v3331_v14  ;;  %v70_v14 = vld [vmem:[%s4395_s0 + $0x190] sm:$0xff] }
 0x12a   :  { %v368_v0 = vpop.f32.mrf.mxu0 }
 0x12b   :  { %v369_v2 = vadd.f32 %v3379_v22, %v368_v0  ;;  %v65_v0 = vld [vmem:[%s4395_s0 + $0x168] sm:$0xff]  ;;  %2978 = vmatpush.msra.mxu3 %v3339_v15 }
 0x12c   :  { %v789_v3 = vpop.f32.mrf.mxu1 }
 0x12d   :  { %v518_v4 = vmax.f32 %v369_v2, 0.0  ;;  %v790_v5 = vadd.f32 %v3480_v28, %v789_v3  ;;  %2816 = vmatmul.msk.f32.gmra.mxu0 %vm95_vm0, %v57_v1  ;;  %2979 = vmatpush.msra.mxu3 %v3349_v17  ;;  %v66_v17 = vld [vmem:[%s4395_s0 + $0x170] sm:$0xff] }
 0x12f   :  { %v971_v6 = vmax.f32 %v790_v5, 0.0  ;;  %2864 = vmatmul.msk.f32.gmra.mxu1 %vm564_vm1, %v518_v4  ;;  %2980 = vmatpush.msra.mxu3 %v3358_v18  ;;  %v71_v18 = vld [vmem:[%s4395_s0 + $0x198] sm:$0xff] }
 0x130   :  { %2829 = vmatmul.msk.f32.gmra.mxu3 %vm95_vm0, %v70_v14 }
 0x131   :  { %2912 = vmatmul.msk.f32.gmra.mxu2 %vm564_vm1, %v971_v6 }
 0x132   :  { %v371_v7 = vpop.f32.mrf.mxu0 }
 0x133   :  { %v372_v9 = vadd.f32 %v3379_v22, %v371_v7 }
 0x134   :  { %v792_v10 = vpop.f32.mrf.mxu1 }
 0x135   :  { %v519_v11 = vmax.f32 %v372_v9, 0.0  ;;  %v793_v12 = vadd.f32 %v3480_v28, %v792_v10  ;;  %2817 = vmatmul.msk.f32.gmra.mxu0 %vm95_vm0, %v58_v8 }
 0x137   :  { %v972_v13 = vmax.f32 %v793_v12, 0.0  ;;  %2865 = vmatmul.msk.f32.gmra.mxu1 %vm564_vm1, %v519_v11  ;;  %v67_v12 = vld [vmem:[%s4395_s0 + $0x178] sm:$0xff] }
 0x138   :  { %2830 = vmatmul.msk.f32.gmra.mxu3 %vm95_vm0, %v71_v18 }
 0x139   :  { %2913 = vmatmul.msk.f32.gmra.mxu2 %vm564_vm1, %v972_v13 }
 0x13a   :  { %v374_v16 = vpop.f32.mrf.mxu0 }
 0x13b   :  { %v375_v20 = vadd.f32 %v3379_v22, %v374_v16 }
 0x13c   :  { %v795_v21 = vpop.f32.mrf.mxu1 }
 0x13d   :  { %v520_v23 = vmax.f32 %v375_v20, 0.0  ;;  %v796_v24 = vadd.f32 %v3480_v28, %v795_v21  ;;  %2818 = vmatmul.msk.f32.gmra.mxu0 %vm95_vm0, %v59_v19 }
 0x13f   :  { %v973_v25 = vmax.f32 %v796_v24, 0.0  ;;  %2866 = vmatmul.msk.f32.gmra.mxu1 %vm564_vm1, %v520_v23  ;;  %v72_v23 = vld [vmem:[%s4395_s0 + $0x1a0] sm:$0xff] }
 0x140   :  { %2831 = vmatmul.msk.f32.gmra.mxu3 %vm95_vm0, %v72_v23 }
 0x141   :  { %2914 = vmatmul.msk.f32.gmra.mxu2 %vm564_vm1, %v973_v25  ;;  %v68_v25 = vld [vmem:[%s4395_s0 + $0x180] sm:$0xff] }
 0x142   :  { %v377_v26 = vpop.f32.mrf.mxu0 }
 0x143   :  { %v378_v29 = vadd.f32 %v3379_v22, %v377_v26 }
 0x144   :  { %v798_v30 = vpop.f32.mrf.mxu1 }
 0x145   :  { %v521_v31 = vmax.f32 %v378_v29, 0.0  ;;  %v799_v32 = vadd.f32 %v3480_v28, %v798_v30  ;;  %2819 = vmatmul.msk.f32.gmra.mxu0 %vm95_vm0, %v60_v27 }
 0x147   :  { %v974_v33 = vmax.f32 %v799_v32, 0.0  ;;  %2867 = vmatmul.msk.f32.gmra.mxu1 %vm564_vm1, %v521_v31  ;;  %v73_v32 = vld [vmem:[%s4395_s0 + $0x1a8] sm:$0xff] }
 0x148   :  { %2832 = vmatmul.msk.f32.gmra.mxu3 %vm95_vm0, %v73_v32 }
 0x149   :  { %2915 = vmatmul.msk.f32.gmra.mxu2 %vm564_vm1, %v974_v33 }
 0x14a   :  { %v380_v34 = vpop.f32.mrf.mxu0 }
 0x14b   :  { %v381_v36 = vadd.f32 %v3379_v22, %v380_v34 }
 0x14c   :  { %v801_v37 = vpop.f32.mrf.mxu1 }
 0x14d   :  { %v522_v38 = vmax.f32 %v381_v36, 0.0  ;;  %v802_v39 = vadd.f32 %v3480_v28, %v801_v37  ;;  %2820 = vmatmul.msk.f32.gmra.mxu0 %vm95_vm0, %v61_v35 }
 0x14f   :  { %v975_v40 = vmax.f32 %v802_v39, 0.0  ;;  %2868 = vmatmul.msk.f32.gmra.mxu1 %vm564_vm1, %v522_v38 }
 0x151   :  { %2916 = vmatmul.msk.f32.gmra.mxu2 %vm564_vm1, %v975_v40 }
 0x152   :  { %v383_v41 = vpop.f32.mrf.mxu0 }
 0x153   :  { %v384_v43 = vadd.f32 %v3379_v22, %v383_v41 }
 0x154   :  { %v804_v44 = vpop.f32.mrf.mxu1 }
 0x155   :  { %v523_v45 = vmax.f32 %v384_v43, 0.0  ;;  %v805_v46 = vadd.f32 %v3480_v28, %v804_v44  ;;  %2821 = vmatmul.msk.f32.gmra.mxu0 %vm95_vm0, %v62_v42  ;;  %v74_v44 = vld [vmem:[%s4395_s0 + $0x1b0] sm:$0xff] }
 0x156   :  { %2833 = vmatmul.msk.f32.gmra.mxu3 %vm95_vm0, %v74_v44 }
 0x157   :  { %v976_v47 = vmax.f32 %v805_v46, 0.0  ;;  %2869 = vmatmul.msk.f32.gmra.mxu1 %vm564_vm1, %v523_v45 }
 0x159   :  { %2917 = vmatmul.msk.f32.gmra.mxu2 %vm564_vm1, %v976_v47 }
 0x15a   :  { %v386_v48 = vpop.f32.mrf.mxu0 }
 0x15b   :  { %v387_v50 = vadd.f32 %v3379_v22, %v386_v48 }
 0x15c   :  { %v807_v51 = vpop.f32.mrf.mxu1 }
 0x15d   :  { %v524_v52 = vmax.f32 %v387_v50, 0.0  ;;  %v808_v53 = vadd.f32 %v3480_v28, %v807_v51  ;;  %2822 = vmatmul.msk.f32.gmra.mxu0 %vm95_vm0, %v63_v49 }
 0x15f   :  { %v977_v54 = vmax.f32 %v808_v53, 0.0  ;;  %2870 = vmatmul.msk.f32.gmra.mxu1 %vm564_vm1, %v524_v52 }
 0x161   :  { %2918 = vmatmul.msk.f32.gmra.mxu2 %vm564_vm1, %v977_v54 }
 0x162   :  { %v389_v55 = vpop.f32.mrf.mxu0 }
 0x163   :  { %v390_v57 = vadd.f32 %v3379_v22, %v389_v55 }
 0x164   :  { %v810_v58 = vpop.f32.mrf.mxu1 }
 0x165   :  { %v525_v59 = vmax.f32 %v390_v57, 0.0  ;;  %v811_v60 = vadd.f32 %v3480_v28, %v810_v58  ;;  %2823 = vmatmul.msk.f32.gmra.mxu0 %vm95_vm0, %v64_v56  ;;  %v75_v56 = vld [vmem:[%s4395_s0 + $0x1b8] sm:$0xff] }
 0x166   :  { %2834 = vmatmul.msk.f32.gmra.mxu3 %vm95_vm0, %v75_v56 }
 0x167   :  { %v978_v62 = vmax.f32 %v811_v60, 0.0  ;;  %2871 = vmatmul.msk.f32.gmra.mxu1 %vm564_vm1, %v525_v59 }
 0x169   :  { %2919 = vmatmul.msk.f32.gmra.mxu2 %vm564_vm1, %v978_v62 }
 0x16a   :  { %v392_v63 = vpop.f32.mrf.mxu0 }
 0x16b   :  { %v393_v1 = vadd.f32 %v3379_v22, %v392_v63 }
 0x16c   :  { %v813_v2 = vpop.f32.mrf.mxu1 }
 0x16d   :  { %v526_v3 = vmax.f32 %v393_v1, 0.0  ;;  %v814_v4 = vadd.f32 %v3480_v28, %v813_v2  ;;  %2824 = vmatmul.msk.f32.gmra.mxu0 %vm95_vm0, %v65_v0 }
 0x16f   :  { %v979_v5 = vmax.f32 %v814_v4, 0.0  ;;  %2872 = vmatmul.msk.f32.gmra.mxu1 %vm564_vm1, %v526_v3 }
 0x171   :  { %2920 = vmatmul.msk.f32.gmra.mxu2 %vm564_vm1, %v979_v5  ;;  %v76_v5 = vld [vmem:[%s4395_s0 + $0x1c0] sm:$0xff] }
 0x172   :  { %v395_v15 = vpop.f32.mrf.mxu0  ;;  %2835 = vmatmul.msk.f32.gmra.mxu3 %vm95_vm0, %v76_v5 }
 0x173   :  { %v396_v6 = vadd.f32 %v3379_v22, %v395_v15 }
 0x174   :  { %v816_v7 = vpop.f32.mrf.mxu1 }
 0x175   :  { %v527_v8 = vmax.f32 %v396_v6, 0.0  ;;  %v817_v9 = vadd.f32 %v3480_v28, %v816_v7  ;;  %2825 = vmatmul.msk.f32.gmra.mxu0 %vm95_vm0, %v66_v17 }
 0x177   :  { %v980_v10 = vmax.f32 %v817_v9, 0.0  ;;  %2873 = vmatmul.msk.f32.gmra.mxu1 %vm564_vm1, %v527_v8 }
 0x179   :  { %2921 = vmatmul.msk.f32.gmra.mxu2 %vm564_vm1, %v980_v10 }
 0x17a   :  { %v398_v11 = vpop.f32.mrf.mxu0 }
 0x17b   :  { %v399_v13 = vadd.f32 %v3379_v22, %v398_v11 }
 0x17c   :  { %v819_v16 = vpop.f32.mrf.mxu1 }
 0x17d   :  { %v528_v19 = vmax.f32 %v399_v13, 0.0  ;;  %v820_v20 = vadd.f32 %v3480_v28, %v819_v16  ;;  %2826 = vmatmul.msk.f32.gmra.mxu0 %vm95_vm0, %v67_v12 }
 0x17f   :  { %v981_v21 = vmax.f32 %v820_v20, 0.0  ;;  %2874 = vmatmul.msk.f32.gmra.mxu1 %vm564_vm1, %v528_v19 }
 0x181   :  { %2922 = vmatmul.msk.f32.gmra.mxu2 %vm564_vm1, %v981_v21 }
 0x182   :  { %v401_v24 = vpop.f32.mrf.mxu0 }
 0x183   :  { %v402_v26 = vadd.f32 %v3379_v22, %v401_v24 }
 0x184   :  { %v822_v27 = vpop.f32.mrf.mxu1 }
 0x185   :  { %v529_v29 = vmax.f32 %v402_v26, 0.0  ;;  %v823_v30 = vadd.f32 %v3480_v28, %v822_v27  ;;  %2827 = vmatmul.msk.f32.gmra.mxu0 %vm95_vm0, %v68_v25  ;;  %v77_v26 = vld [vmem:[%s4395_s0 + $0x1c8] sm:$0xff] }
 0x186   :  { %2836 = vmatmul.msk.f32.gmra.mxu3 %vm95_vm0, %v77_v26 }
 0x187   :  { %v982_v31 = vmax.f32 %v823_v30, 0.0  ;;  %2875 = vmatmul.msk.f32.gmra.mxu1 %vm564_vm1, %v529_v29 }
 0x189   :  { %2923 = vmatmul.msk.f32.gmra.mxu2 %vm564_vm1, %v982_v31 }
 0x18a   :  { %v404_v33 = vpop.f32.mrf.mxu0 }
 0x18b   :  { %v405_v34 = vadd.f32 %v3379_v22, %v404_v33 }
 0x18c   :  { %v825_v35 = vpop.f32.mrf.mxu1  ;;  %v1239_v36 = vpop.f32.mrf.mxu2 }
 0x18d   :  { %v530_v37 = vmax.f32 %v405_v34, 0.0  ;;  %v826_v38 = vadd.f32 %v3480_v28, %v825_v35  ;;  %v1240_v39 = vadd.f32 %v3480_v28, %v1239_v36 }
 0x18f   :  { %v983_v40 = vmax.f32 %v826_v38, 0.0  ;;  %v1431_v41 = vmax.f32 %v1240_v39, -30.0  ;;  %2876 = vmatmul.msk.f32.gmra.mxu1 %vm564_vm1, %v530_v37 }
 0x191   :  { %v1495_v42 = vsub.f32 0.0, %v1431_v41  ;;  %2924 = vmatmul.msk.f32.gmra.mxu2 %vm564_vm1, %v983_v40 }
 0x192   :  { %v407_v43 = vpop.f32.mrf.mxu0 }
 0x193   :  { %v1559_v45 = vmul.f32 1.442695, %v1495_v42  ;;  %v408_v46 = vadd.f32 %v3379_v22, %v407_v43 }
 0x194   :  { %v828_v47 = vpop.f32.mrf.mxu1  ;;  %v1242_v48 = vpop.f32.mrf.mxu2 }
 0x195   :  { %2983 = vpow2.f32 %v1559_v45  ;;  %v531_v49 = vmax.f32 %v408_v46, 0.0  ;;  %v829_v50 = vadd.f32 %v3480_v28, %v828_v47  ;;  %v1243_v51 = vadd.f32 %v3480_v28, %v1242_v48 }
 0x197   :  { %v984_v52 = vmax.f32 %v829_v50, 0.0  ;;  %v1432_v53 = vmax.f32 %v1243_v51, -30.0  ;;  %2877 = vmatmul.msk.f32.gmra.mxu1 %vm564_vm1, %v531_v49  ;;  %v78_v51 = vld [vmem:[%s4395_s0 + $0x1d0] sm:$0xff] }
 0x198   :  { %2837 = vmatmul.msk.f32.gmra.mxu3 %vm95_vm0, %v78_v51 }
 0x199   :  { %v1496_v54 = vsub.f32 0.0, %v1432_v53  ;;  %2925 = vmatmul.msk.f32.gmra.mxu2 %vm564_vm1, %v984_v52 }
 0x19a   :  { %v410_v55 = vpop.f32.mrf.mxu0 }
 0x19b   :  { %v2984_v57 = vpop.eup %2983  ;;  %v1561_v58 = vmul.f32 1.442695, %v1496_v54  ;;  %v411_v59 = vadd.f32 %v3379_v22, %v410_v55 }
 0x19c   :  { %v1687_v60 = vadd.f32 1.0, %v2984_v57  ;;  %v831_v61 = vpop.f32.mrf.mxu1  ;;  %v1245_v62 = vpop.f32.mrf.mxu2 }
 0x19d   :  { %2985 = vpow2.f32 %v1561_v58  ;;  %v532_v63 = vmax.f32 %v411_v59, 0.0  ;;  %v832_v0 = vadd.f32 %v3480_v28, %v831_v61  ;;  %v1246_v1 = vadd.f32 %v3480_v28, %v1245_v62 }
 0x19e   :  { %2987 = vrcp.f32 %v1687_v60  ;;  %v1760_v19 = vand.u32 2147483647, %v1687_v60  ;;  %v1762_v20 = vand.u32 2147483648, %v1687_v60  ;;  %vm1756_vm3 = vweird.f32 %v1687_v60 }
 0x19f   :  { %v985_v2 = vmax.f32 %v832_v0, 0.0  ;;  %v1433_v3 = vmax.f32 %v1246_v1, -30.0  ;;  %2878 = vmatmul.msk.f32.gmra.mxu1 %vm564_vm1, %v532_v63 }
 0x1a0   :  { %v1763_v33 = vor.u32 1.1754944e-38, %v1762_v20  ;;  %vm1761_vm5 = vcmp.eq.f32.partialorder %v1760_v19, 8.507059e+37 }
 0x1a1   :  { %v1497_v4 = vsub.f32 0.0, %v1433_v3  ;;  %2926 = vmatmul.msk.f32.gmra.mxu2 %vm564_vm1, %v985_v2 }
 0x1a2   :  { %v413_v14 = vpop.f32.mrf.mxu0 }
 0x1a3   :  { %v2986_v15 = vpop.eup %2985  ;;  %v1563_v17 = vmul.f32 1.442695, %v1497_v4  ;;  %v414_v6 = vadd.f32 %v3379_v22, %v413_v14 }
 0x1a4   :  { %v2988_v7 = vpop.eup %2987  ;;  %v3670_v8 = vadd.f32 1.0, %v2986_v15  ;;  %v834_v9 = vpop.f32.mrf.mxu1 }
 0x1a5   :  { %v1248_v18 = vpop.f32.mrf.mxu2  ;;  %v1752_v10 = vmul.f32 %v2988_v7, %v1687_v60  ;;  %2989 = vpow2.f32 %v1563_v17  ;;  %v533_v11 = vmax.f32 %v414_v6, 0.0  ;;  %v835_v13 = vadd.f32 %v3480_v28, %v834_v9 }
 0x1a6   :  { %2991 = vrcp.f32 %v3670_v8  ;;  %v1249_v16 = vadd.f32 %v3480_v28, %v1248_v18  ;;  %vm1757_vm2 = vweird.f32 %v2988_v7  ;;  %v1777_v43 = vand.u32 2147483648, %v3670_v8 }
 0x1a7   :  { %v1753_v12 = vsub.f32 1.0, %v1752_v10  ;;  %2879 = vmatmul.msk.f32.gmra.mxu1 %vm564_vm1, %v533_v11  ;;  %v986_v23 = vmax.f32 %v835_v13, 0.0  ;;  %vm1758_vm4 = vmor %vm1756_vm3, %vm1757_vm2  ;;  %v1775_v47 = vand.u32 2147483647, %v3670_v8  ;;  %vm1771_vm7 = vweird.f32 %v3670_v8 }
 0x1a8   :  { %v1434_v24 = vmax.f32 %v1249_v16, -30.0  ;;  %v1778_v55 = vor.u32 1.1754944e-38, %v1777_v43 }
 0x1a9   :  { %v1754_v21 = vmul.f32 %v2988_v7, %v1753_v12  ;;  %2927 = vmatmul.msk.f32.gmra.mxu2 %vm564_vm1, %v986_v23  ;;  %vm1776_vm9 = vcmp.eq.f32.partialorder %v1775_v47, 8.507059e+37 }
 0x1aa   :  { %v416_v25 = vpop.f32.mrf.mxu0  ;;  %v1498_v30 = vsub.f32 0.0, %v1434_v24 }
 0x1ab   :  { %v2990_v27 = vpop.eup %2989  ;;  %v1755_v29 = vadd.f32 %v2988_v7, %v1754_v21  ;;  %v417_v31 = vadd.f32 %v3379_v22, %v416_v25 }
 0x1ac   :  { %v2992_v32 = vpop.eup %2991  ;;  %v3682_v34 = vadd.f32 1.0, %v2990_v27  ;;  %v837_v35 = vpop.f32.mrf.mxu1  ;;  %v1565_v39 = vmul.f32 1.442695, %v1498_v30 }
 0x1ad   :  { %v1251_v36 = vpop.f32.mrf.mxu2  ;;  %v1759_v37 = vsel %vm1758_vm4, %v2988_v7, %v1755_v29  ;;  %v1767_v38 = vmul.f32 %v2992_v32, %v3670_v8  ;;  %v534_v42 = vmax.f32 %v417_v31, 0.0  ;;  %v838_v44 = vadd.f32 %v3480_v28, %v837_v35  ;;  %v79_v8 = vld [vmem:[%s4395_s0 + $0x1d8] sm:$0xff] }
 0x1ae   :  { %v1764_v40 = vsel %vm1761_vm5, %v1763_v33, %v1759_v37  ;;  %2993 = vrcp.f32 %v3682_v34  ;;  %v1252_v45 = vadd.f32 %v3480_v28, %v1251_v36  ;;  %vm1772_vm6 = vweird.f32 %v2992_v32  ;;  %2838 = vmatmul.msk.f32.gmra.mxu3 %vm95_vm0, %v79_v8  ;;  %v80_v36 = vld [vmem:[%s4395_s0 + $0x1e0] sm:$0xff] }
 0x1af   :  { %2711 = vst.msk [vmem:[%s4399_s5] sm:$0xff] %vm564_vm1, %v1764_v40  ;;  %v1768_v41 = vsub.f32 1.0, %v1767_v38  ;;  %2995 = vpow2.f32 %v1565_v39  ;;  %2880 = vmatmul.msk.f32.gmra.mxu1 %vm564_vm1, %v534_v42  ;;  %v987_v48 = vmax.f32 %v838_v44, 0.0  ;;  %vm1773_vm8 = vmor %vm1771_vm7, %vm1772_vm6  ;;  %v1790_v14 = vand.u32 2147483647, %v3682_v34 }
 0x1b0   :  { %v1435_v49 = vmax.f32 %v1252_v45, -30.0  ;;  %v1792_v5 = vand.u32 2147483648, %v3682_v34  ;;  %vm1786_vm11 = vweird.f32 %v3682_v34 }
 0x1b1   :  { %v1769_v46 = vmul.f32 %v2992_v32, %v1768_v41  ;;  %2928 = vmatmul.msk.f32.gmra.mxu2 %vm564_vm1, %v987_v48  ;;  %vm1791_vm13 = vcmp.eq.f32.partialorder %v1790_v14, 8.507059e+37 }
 0x1b2   :  { %v419_v50 = vpop.f32.mrf.mxu0  ;;  %v1499_v56 = vsub.f32 0.0, %v1435_v49  ;;  %v1793_v11 = vor.u32 1.1754944e-38, %v1792_v5 }
 0x1b3   :  { %v1770_v52 = vadd.f32 %v2992_v32, %v1769_v46  ;;  %v420_v53 = vadd.f32 %v3379_v22, %v419_v50 }
 0x1b4   :  { %v2994_v54 = vpop.eup %2993  ;;  %v840_v57 = vpop.f32.mrf.mxu1  ;;  %v1567_v1 = vmul.f32 1.442695, %v1499_v56 }
 0x1b5   :  { %v1254_v58 = vpop.f32.mrf.mxu2  ;;  %v2996_v59 = vpop.eup %2995  ;;  %v1774_v60 = vsel %vm1773_vm8, %v2992_v32, %v1770_v52  ;;  %v1782_v61 = vmul.f32 %v2994_v54, %v3682_v34  ;;  %v535_v62 = vmax.f32 %v420_v53, 0.0  ;;  %v841_v2 = vadd.f32 %v3480_v28, %v840_v57  ;;  %v81_v57 = vld [vmem:[%s4395_s0 + $0x1e8] sm:$0xff] }
 0x1b6   :  { %v1779_v63 = vsel %vm1776_vm9, %v1778_v55, %v1774_v60  ;;  %v3703_v0 = vadd.f32 1.0, %v2996_v59  ;;  %v1255_v4 = vadd.f32 %v3480_v28, %v1254_v58  ;;  %vm1787_vm10 = vweird.f32 %v2994_v54  ;;  %2839 = vmatmul.msk.f32.gmra.mxu3 %vm95_vm0, %v80_v36 }
 0x1b7   :  { %2712 = vst.msk [vmem:[%s4399_s5 + $0x8] sm:$0xff] %vm564_vm1, %v1779_v63  ;;  %v1783_v3 = vsub.f32 1.0, %v1782_v61  ;;  %v988_v17 = vmax.f32 %v841_v2, 0.0  ;;  %2881 = vmatmul.msk.f32.gmra.mxu1 %vm564_vm1, %v535_v62  ;;  %vm1788_vm12 = vmor %vm1786_vm11, %vm1787_vm10 }
 0x1b8   :  { %2997 = vrcp.f32 %v3703_v0  ;;  %v1436_v6 = vmax.f32 %v1255_v4, -30.0  ;;  %v1805_v33 = vand.u32 2147483647, %v3703_v0  ;;  %v1807_v34 = vand.u32 2147483648, %v3703_v0 }
 0x1b9   :  { %v1784_v15 = vmul.f32 %v2994_v54, %v1783_v3  ;;  %2999 = vpow2.f32 %v1567_v1  ;;  %2929 = vmatmul.msk.f32.gmra.mxu2 %vm564_vm1, %v988_v17  ;;  %vm1801_vm15 = vweird.f32 %v3703_v0 }
 0x1ba   :  { %v422_v7 = vpop.f32.mrf.mxu0  ;;  %v1500_v18 = vsub.f32 0.0, %v1436_v6  ;;  %v1808_v47 = vor.u32 1.1754944e-38, %v1807_v34  ;;  %vm1806_vm3 = vcmp.eq.f32.partialorder %v1805_v33, 8.507059e+37 }
 0x1bb   :  { %v1785_v9 = vadd.f32 %v2994_v54, %v1784_v15  ;;  %v423_v10 = vadd.f32 %v3379_v22, %v422_v7 }
 0x1bc   :  { %v843_v12 = vpop.f32.mrf.mxu1  ;;  %v1569_v19 = vmul.f32 1.442695, %v1500_v18 }
 0x1bd   :  { %v1257_v13 = vpop.f32.mrf.mxu2  ;;  %v1789_v16 = vsel %vm1788_vm12, %v2994_v54, %v1785_v9  ;;  %v536_v20 = vmax.f32 %v423_v10, 0.0  ;;  %v844_v21 = vadd.f32 %v3480_v28, %v843_v12 }
 0x1be   :  { %v2998_v23 = vpop.eup %2997  ;;  %v1794_v24 = vsel %vm1791_vm13, %v1793_v11, %v1789_v16  ;;  %v1258_v25 = vadd.f32 %v3480_v28, %v1257_v13  ;;  %3001 = vpow2.f32 %v1569_v19  ;;  %2840 = vmatmul.msk.f32.gmra.mxu3 %vm95_vm0, %v81_v57  ;;  %v82_v19 = vld [vmem:[%s4395_s0 + $0x1f0] sm:$0xff] }
 0x1bf   :  { %v3000_v26 = vpop.eup %2999  ;;  %2713 = vst.msk [vmem:[%s4399_s5 + $0x10] sm:$0xff] %vm564_vm1, %v1794_v24  ;;  %v1797_v27 = vmul.f32 %v2998_v23, %v3703_v0  ;;  %v989_v30 = vmax.f32 %v844_v21, 0.0  ;;  %2882 = vmatmul.msk.f32.gmra.mxu1 %vm564_vm1, %v536_v20  ;;  %vm1802_vm14 = vweird.f32 %v2998_v23 }
 0x1c0   :  { %v3730_v29 = vadd.f32 1.0, %v3000_v26  ;;  %v1437_v31 = vmax.f32 %v1258_v25, -30.0  ;;  %vm1803_vm2 = vmor %vm1801_vm15, %vm1802_vm14 }
 0x1c1   :  { %v1798_v32 = vsub.f32 1.0, %v1797_v27  ;;  %2930 = vmatmul.msk.f32.gmra.mxu2 %vm564_vm1, %v989_v30 }
 0x1c2   :  { %3003 = vrcp.f32 %v3730_v29  ;;  %v425_v35 = vpop.f32.mrf.mxu0  ;;  %v1501_v38 = vsub.f32 0.0, %v1437_v31  ;;  %v1820_v61 = vand.u32 2147483647, %v3730_v29  ;;  %v1822_v62 = vand.u32 2147483648, %v3730_v29 }
 0x1c3   :  { %v1799_v37 = vmul.f32 %v2998_v23, %v1798_v32  ;;  %v426_v39 = vadd.f32 %v3379_v22, %v425_v35  ;;  %vm1816_vm5 = vweird.f32 %v3730_v29 }
 0x1c4   :  { %v846_v40 = vpop.f32.mrf.mxu1  ;;  %v3002_v42 = vpop.eup %3001  ;;  %v1571_v44 = vmul.f32 1.442695, %v1501_v38  ;;  %vm1821_vm7 = vcmp.eq.f32.partialorder %v1820_v61, 8.507059e+37  ;;  %v1823_v7 = vor.u32 1.1754944e-38, %v1822_v62 }
 0x1c5   :  { %v1260_v41 = vpop.f32.mrf.mxu2  ;;  %v1800_v43 = vadd.f32 %v2998_v23, %v1799_v37  ;;  %v537_v45 = vmax.f32 %v426_v39, 0.0  ;;  %v847_v46 = vadd.f32 %v3480_v28, %v846_v40  ;;  %v3744_v48 = vadd.f32 1.0, %v3002_v42 }
 0x1c6   :  { %v1261_v49 = vadd.f32 %v3480_v28, %v1260_v41  ;;  %3005 = vpow2.f32 %v1571_v44  ;;  %2841 = vmatmul.msk.f32.gmra.mxu3 %vm95_vm0, %v82_v19 }
 0x1c7   :  { %v1804_v50 = vsel %vm1803_vm2, %v2998_v23, %v1800_v43  ;;  %3007 = vrcp.f32 %v3744_v48  ;;  %v990_v53 = vmax.f32 %v847_v46, 0.0  ;;  %2883 = vmatmul.msk.f32.gmra.mxu1 %vm564_vm1, %v537_v45  ;;  %v1835_v12 = vand.u32 2147483647, %v3744_v48  ;;  %v3783_v23 = vld [vmem:[%s4396_s2] ss:$0 sm:$0xff]  ;;  %v83_v46 = vld [vmem:[%s4395_s0 + $0x1f8] sm:$0xff] }
 0x1c8   :  { %v3004_v51 = vpop.eup %3003  ;;  %v1809_v52 = vsel %vm1806_vm3, %v1808_v47, %v1804_v50  ;;  %v1438_v55 = vmax.f32 %v1261_v49, -30.0  ;;  %v1837_v13 = vand.u32 2147483648, %v3744_v48  ;;  %vm1831_vm9 = vweird.f32 %v3744_v48 }
 0x1c9   :  { %2714 = vst.msk [vmem:[%s4399_s5 + $0x18] sm:$0xff] %vm564_vm1, %v1809_v52  ;;  %v1812_v54 = vmul.f32 %v3004_v51, %v3730_v29  ;;  %vm1817_vm4 = vweird.f32 %v3004_v51  ;;  %2931 = vmatmul.msk.f32.gmra.mxu2 %vm564_vm1, %v990_v53  ;;  %vm1836_vm11 = vcmp.eq.f32.partialorder %v1835_v12, 8.507059e+37 }
 0x1ca   :  { %v428_v56 = vpop.f32.mrf.mxu0  ;;  %v1502_v59 = vsub.f32 0.0, %v1438_v55  ;;  %vm1818_vm6 = vmor %vm1816_vm5, %vm1817_vm4  ;;  %v1838_v34 = vor.u32 1.1754944e-38, %v1837_v13 }
 0x1cb   :  { %v1813_v58 = vsub.f32 1.0, %v1812_v54  ;;  %v429_v60 = vadd.f32 %v3379_v22, %v428_v56 }
 0x1cc   :  { %v849_v63 = vpop.f32.mrf.mxu1  ;;  %v3006_v1 = vpop.eup %3005  ;;  %v1573_v3 = vmul.f32 1.442695, %v1502_v59 }
 0x1cd   :  { %v1263_v0 = vpop.f32.mrf.mxu2  ;;  %v1814_v2 = vmul.f32 %v3004_v51, %v1813_v58  ;;  %v538_v4 = vmax.f32 %v429_v60, 0.0  ;;  %v850_v14 = vadd.f32 %v3480_v28, %v849_v63  ;;  %v3008_v5 = vpop.eup %3007  ;;  %v3763_v15 = vadd.f32 1.0, %v3006_v1 }
 0x1ce   :  { %v1264_v22 = vadd.f32 %v3480_v28, %v1263_v0  ;;  %v1827_v6 = vmul.f32 %v3008_v5, %v3744_v48  ;;  %3009 = vpow2.f32 %v1573_v3  ;;  %vm1832_vm8 = vweird.f32 %v3008_v5  ;;  %2842 = vmatmul.msk.f32.gmra.mxu3 %vm95_vm0, %v83_v46 }
 0x1cf   :  { %v1815_v17 = vadd.f32 %v3004_v51, %v1814_v2  ;;  %3011 = vrcp.f32 %v3763_v15  ;;  %v991_v18 = vmax.f32 %v850_v14, 0.0  ;;  %2884 = vmatmul.msk.f32.gmra.mxu1 %vm564_vm1, %v538_v4  ;;  %vm1833_vm10 = vmor %vm1831_vm9, %vm1832_vm8  ;;  %v1850_v43 = vand.u32 2147483647, %v3763_v15 }
 0x1d0   :  { %v1828_v9 = vsub.f32 1.0, %v1827_v6  ;;  %v1439_v10 = vmax.f32 %v1264_v22, -30.0  ;;  %v1852_v44 = vand.u32 2147483648, %v3763_v15  ;;  %vm1846_vm13 = vweird.f32 %v3763_v15 }
 0x1d1   :  { %v1819_v8 = vsel %vm1818_vm6, %v3004_v51, %v1815_v17  ;;  %2932 = vmatmul.msk.f32.gmra.mxu2 %vm564_vm1, %v991_v18  ;;  %vm1851_vm0 = vcmp.eq.f32.partialorder %v1850_v43, 8.507059e+37 }
 0x1d2   :  { %v1824_v11 = vsel %vm1821_vm7, %v1823_v7, %v1819_v8  ;;  %v431_v16 = vpop.f32.mrf.mxu0  ;;  %v1829_v20 = vmul.f32 %v3008_v5, %v1828_v9  ;;  %v1503_v21 = vsub.f32 0.0, %v1439_v10  ;;  %v1853_v58 = vor.u32 1.1754944e-38, %v1852_v44 }
 0x1d3   :  { %2715 = vst.msk [vmem:[%s4399_s5 + $0x20] sm:$0xff] %vm564_vm1, %v1824_v11  ;;  %v432_v24 = vadd.f32 %v3783_v23, %v431_v16 }
 0x1d4   :  { %v852_v25 = vpop.f32.mrf.mxu1  ;;  %v3010_v27 = vpop.eup %3009  ;;  %v1830_v29 = vadd.f32 %v3008_v5, %v1829_v20  ;;  %v1575_v30 = vmul.f32 1.442695, %v1503_v21 }
 0x1d5   :  { %v1266_v26 = vpop.f32.mrf.mxu2  ;;  %v539_v31 = vmax.f32 %v432_v24, 0.0  ;;  %v853_v32 = vadd.f32 %v3480_v28, %v852_v25  ;;  %v3012_v33 = vpop.eup %3011  ;;  %v3791_v35 = vadd.f32 1.0, %v3010_v27 }
 0x1d6   :  { %v1267_v36 = vadd.f32 %v3480_v28, %v1266_v26  ;;  %v1834_v37 = vsel %vm1833_vm10, %v3008_v5, %v1830_v29  ;;  %v1842_v38 = vmul.f32 %v3012_v33, %v3763_v15  ;;  %3013 = vpow2.f32 %v1575_v30 }
 0x1d7   :  { %v1839_v39 = vsel %vm1836_vm11, %v1838_v34, %v1834_v37  ;;  %3015 = vrcp.f32 %v3791_v35  ;;  %v992_v41 = vmax.f32 %v853_v32, 0.0  ;;  %2885 = vmatmul.msk.f32.gmra.mxu1 %vm564_vm1, %v539_v31  ;;  %vm1847_vm12 = vweird.f32 %v3012_v33 }
 0x1d8   :  { %2716 = vst.msk [vmem:[%s4399_s5 + $0x28] sm:$0xff] %vm564_vm1, %v1839_v39  ;;  %v1843_v40 = vsub.f32 1.0, %v1842_v38  ;;  %v1440_v42 = vmax.f32 %v1267_v36, -30.0  ;;  %vm1848_vm14 = vmor %vm1846_vm13, %vm1847_vm12  ;;  %v1865_v3 = vand.u32 2147483647, %v3791_v35  ;;  %v1867_v4 = vand.u32 2147483648, %v3791_v35 }
 0x1d9   :  { %2933 = vmatmul.msk.f32.gmra.mxu2 %vm564_vm1, %v992_v41  ;;  %vm1861_vm2 = vweird.f32 %v3791_v35  ;;  %v3845_v39 = vld [vmem:[%s4398_s4] ss:$0 sm:$0xff] }
 0x1da   :  { %v434_v45 = vpop.f32.mrf.mxu0  ;;  %v1844_v47 = vmul.f32 %v3012_v33, %v1843_v40  ;;  %v1504_v48 = vsub.f32 0.0, %v1440_v42  ;;  %v1868_v12 = vor.u32 1.1754944e-38, %v1867_v4  ;;  %vm1866_vm4 = vcmp.eq.f32.partialorder %v1865_v3, 8.507059e+37 }
 0x1db   :  { %v435_v49 = vadd.f32 %v3783_v23, %v434_v45  ;;  %v3851_v45 = vpop.f32.mrf.mxu3 }
 0x1dc   :  { %v855_v50 = vpop.f32.mrf.mxu1  ;;  %v3014_v52 = vpop.eup %3013  ;;  %v1845_v53 = vadd.f32 %v3012_v33, %v1844_v47  ;;  %v1577_v54 = vmul.f32 1.442695, %v1504_v48 }
 0x1dd   :  { %v1269_v51 = vpop.f32.mrf.mxu2  ;;  %v540_v55 = vmax.f32 %v435_v49, 0.0  ;;  %v856_v56 = vadd.f32 %v3480_v28, %v855_v50  ;;  %v3016_v57 = vpop.eup %3015  ;;  %v3811_v59 = vadd.f32 1.0, %v3014_v52 }
 0x1de   :  { %v1270_v60 = vadd.f32 %v3480_v28, %v1269_v51  ;;  %v1849_v61 = vsel %vm1848_vm14, %v3012_v33, %v1845_v53  ;;  %v1857_v62 = vmul.f32 %v3016_v57, %v3791_v35  ;;  %3017 = vpow2.f32 %v1577_v54 }
 0x1df   :  { %v1854_v63 = vsel %vm1851_vm0, %v1853_v58, %v1849_v61  ;;  %3019 = vrcp.f32 %v3811_v59  ;;  %v993_v1 = vmax.f32 %v856_v56, 0.0  ;;  %2886 = vmatmul.msk.f32.gmra.mxu1 %vm564_vm1, %v540_v55  ;;  %vm1862_vm15 = vweird.f32 %v3016_v57 }
 0x1e0   :  { %2717 = vst.msk [vmem:[%s4399_s5 + $0x30] sm:$0xff] %vm564_vm1, %v1854_v63  ;;  %v1858_v0 = vsub.f32 1.0, %v1857_v62  ;;  %v1441_v2 = vmax.f32 %v1270_v60, -30.0  ;;  %vm1863_vm3 = vmor %vm1861_vm2, %vm1862_vm15  ;;  %v1882_v27 = vand.u32 2147483648, %v3811_v59  ;;  %vm1876_vm6 = vweird.f32 %v3811_v59 }
 0x1e1   :  { %2934 = vmatmul.msk.f32.gmra.mxu2 %vm564_vm1, %v993_v1 }
 0x1e2   :  { %v437_v14 = vpop.f32.mrf.mxu0  ;;  %v1859_v5 = vmul.f32 %v3016_v57, %v1858_v0  ;;  %v1505_v15 = vsub.f32 0.0, %v1441_v2  ;;  %v1883_v42 = vor.u32 1.1754944e-38, %v1882_v27 }
 0x1e3   :  { %v438_v22 = vadd.f32 %v3783_v23, %v437_v14  ;;  %v3869_v14 = vpop.f32.mrf.mxu3 }
 0x1e4   :  { %v858_v17 = vpop.f32.mrf.mxu1  ;;  %v3018_v7 = vpop.eup %3017  ;;  %v1860_v8 = vadd.f32 %v3016_v57, %v1859_v5  ;;  %v1579_v9 = vmul.f32 1.442695, %v1505_v15 }
 0x1e5   :  { %v1272_v6 = vpop.f32.mrf.mxu2  ;;  %v541_v18 = vmax.f32 %v438_v22, 0.0  ;;  %v859_v10 = vadd.f32 %v3480_v28, %v858_v17  ;;  %v3020_v11 = vpop.eup %3019  ;;  %v3827_v13 = vadd.f32 1.0, %v3018_v7 }
 0x1e6   :  { %v1273_v16 = vadd.f32 %v3480_v28, %v1272_v6  ;;  %v1864_v19 = vsel %vm1863_vm3, %v3016_v57, %v1860_v8  ;;  %v1872_v20 = vmul.f32 %v3020_v11, %v3811_v59  ;;  %3021 = vpow2.f32 %v1579_v9 }
 0x1e7   :  { %v1869_v21 = vsel %vm1866_vm4, %v1868_v12, %v1864_v19  ;;  %3023 = vrcp.f32 %v3827_v13  ;;  %v994_v25 = vmax.f32 %v859_v10, 0.0  ;;  %2887 = vmatmul.msk.f32.gmra.mxu1 %vm564_vm1, %v541_v18  ;;  %v1880_v28 = vand.u32 2147483647, %v3811_v59 }
 0x1e8   :  { %2718 = vst.msk [vmem:[%s4399_s5 + $0x38] sm:$0xff] %vm564_vm1, %v1869_v21  ;;  %v1873_v24 = vsub.f32 1.0, %v1872_v20  ;;  %v1442_v26 = vmax.f32 %v1273_v16, -30.0  ;;  %vm1877_vm5 = vweird.f32 %v3020_v11  ;;  %v1895_v52 = vand.u32 2147483647, %v3827_v13 }
 0x1e9   :  { %2935 = vmatmul.msk.f32.gmra.mxu2 %vm564_vm1, %v994_v25  ;;  %vm1878_vm7 = vmor %vm1876_vm6, %vm1877_vm5  ;;  %vm1881_vm8 = vcmp.eq.f32.partialorder %v1880_v28, 8.507059e+37  ;;  %v1897_v53 = vand.u32 2147483648, %v3827_v13  ;;  %vm1891_vm10 = vweird.f32 %v3827_v13 }
 0x1ea   :  { %v440_v29 = vpop.f32.mrf.mxu0  ;;  %v1874_v30 = vmul.f32 %v3020_v11, %v1873_v24  ;;  %v1506_v31 = vsub.f32 0.0, %v1442_v26  ;;  %vm1896_vm12 = vcmp.eq.f32.partialorder %v1895_v52, 8.507059e+37 }
 0x1eb   :  { %v441_v32 = vadd.f32 %v3783_v23, %v440_v29  ;;  %v1898_v2 = vor.u32 1.1754944e-38, %v1897_v53 }
 0x1ec   :  { %v861_v33 = vpop.f32.mrf.mxu1  ;;  %v3022_v35 = vpop.eup %3021  ;;  %v1875_v36 = vadd.f32 %v3020_v11, %v1874_v30  ;;  %v1581_v37 = vmul.f32 1.442695, %v1506_v31 }
 0x1ed   :  { %v1275_v34 = vpop.f32.mrf.mxu2  ;;  %v542_v38 = vmax.f32 %v441_v32, 0.0  ;;  %v862_v40 = vadd.f32 %v3845_v39, %v861_v33  ;;  %v3024_v41 = vpop.eup %3023  ;;  %v3848_v43 = vadd.f32 1.0, %v3022_v35 }
 0x1ee   :  { %v1276_v44 = vadd.f32 %v3845_v39, %v1275_v34  ;;  %v1879_v46 = vsel %vm1878_vm7, %v3020_v11, %v1875_v36  ;;  %v1887_v47 = vmul.f32 %v3024_v41, %v3827_v13  ;;  %3025 = vpow2.f32 %v1581_v37  ;;  %v3887_v30 = vpop.f32.mrf.mxu3 }
 0x1ef   :  { %v1884_v48 = vsel %vm1881_vm8, %v1883_v42, %v1879_v46  ;;  %3027 = vrcp.f32 %v3848_v43  ;;  %v995_v50 = vmax.f32 %v862_v40, 0.0  ;;  %2888 = vmatmul.msk.f32.gmra.mxu1 %vm564_vm1, %v542_v38  ;;  %vm1892_vm9 = vweird.f32 %v3024_v41 }
 0x1f0   :  { %2719 = vst.msk [vmem:[%s4399_s5 + $0x40] sm:$0xff] %vm564_vm1, %v1884_v48  ;;  %v1888_v49 = vsub.f32 1.0, %v1887_v47  ;;  %v1443_v51 = vmax.f32 %v1276_v44, -30.0  ;;  %vm1893_vm11 = vmor %vm1891_vm10, %vm1892_vm9  ;;  %v1910_v8 = vand.u32 2147483647, %v3848_v43  ;;  %v1912_v9 = vand.u32 2147483648, %v3848_v43 }
 0x1f1   :  { %2936 = vmatmul.msk.f32.gmra.mxu2 %vm564_vm1, %v995_v50  ;;  %vm1906_vm14 = vweird.f32 %v3848_v43 }
 0x1f2   :  { %v443_v54 = vpop.f32.mrf.mxu0  ;;  %v1889_v55 = vmul.f32 %v3024_v41, %v1888_v49  ;;  %v1507_v56 = vsub.f32 0.0, %v1443_v51  ;;  %v1913_v28 = vor.u32 1.1754944e-38, %v1912_v9  ;;  %vm1911_vm15 = vcmp.eq.f32.partialorder %v1910_v8, 8.507059e+37 }
 0x1f3   :  { %v444_v57 = vadd.f32 %v3783_v23, %v443_v54 }
 0x1f4   :  { %v864_v58 = vpop.f32.mrf.mxu1  ;;  %v3026_v60 = vpop.eup %3025  ;;  %v1890_v61 = vadd.f32 %v3024_v41, %v1889_v55  ;;  %v1583_v62 = vmul.f32 1.442695, %v1507_v56  ;;  %v453_v56 = vadd.f32 %v3783_v23, %v3851_v45 }
 0x1f5   :  { %v1278_v59 = vpop.f32.mrf.mxu2  ;;  %v543_v63 = vmax.f32 %v444_v57, 0.0  ;;  %v865_v0 = vadd.f32 %v3845_v39, %v864_v58  ;;  %v3028_v1 = vpop.eup %3027  ;;  %v3866_v3 = vadd.f32 1.0, %v3026_v60 }
 0x1f6   :  { %v1279_v4 = vadd.f32 %v3845_v39, %v1278_v59  ;;  %v1894_v5 = vsel %vm1893_vm11, %v3024_v41, %v1890_v61  ;;  %v1902_v15 = vmul.f32 %v3028_v1, %v3848_v43  ;;  %3029 = vpow2.f32 %v1583_v62  ;;  %v3907_v57 = vpop.f32.mrf.mxu3 }
 0x1f7   :  { %v1899_v22 = vsel %vm1896_vm12, %v1898_v2, %v1894_v5  ;;  %3031 = vrcp.f32 %v3866_v3  ;;  %v996_v6 = vmax.f32 %v865_v0, 0.0  ;;  %2889 = vmatmul.msk.f32.gmra.mxu1 %vm564_vm1, %v543_v63  ;;  %vm1907_vm13 = vweird.f32 %v3028_v1 }
 0x1f8   :  { %2720 = vst.msk [vmem:[%s4399_s5 + $0x48] sm:$0xff] %vm564_vm1, %v1899_v22  ;;  %v1903_v17 = vsub.f32 1.0, %v1902_v15  ;;  %v1444_v7 = vmax.f32 %v1279_v4, -30.0  ;;  %vm1908_vm0 = vmor %vm1906_vm14, %vm1907_vm13  ;;  %v1925_v37 = vand.u32 2147483647, %v3866_v3  ;;  %v1927_v38 = vand.u32 2147483648, %v3866_v3 }
 0x1f9   :  { %2937 = vmatmul.msk.f32.gmra.mxu2 %vm564_vm1, %v996_v6  ;;  %vm1921_vm3 = vweird.f32 %v3866_v3  ;;  %v546_v0 = vmax.f32 %v453_v56, 0.0 }
 0x1fa   :  { %v446_v18 = vpop.f32.mrf.mxu0  ;;  %v1904_v10 = vmul.f32 %v3028_v1, %v1903_v17  ;;  %v1508_v11 = vsub.f32 0.0, %v1444_v7  ;;  %v1928_v53 = vor.u32 1.1754944e-38, %v1927_v38  ;;  %vm1926_vm5 = vcmp.eq.f32.partialorder %v1925_v37, 8.507059e+37 }
 0x1fb   :  { %v447_v12 = vadd.f32 %v3783_v23, %v446_v18 }
 0x1fc   :  { %v867_v13 = vpop.f32.mrf.mxu1  ;;  %v3030_v19 = vpop.eup %3029  ;;  %v1905_v20 = vadd.f32 %v3028_v1, %v1904_v10  ;;  %v1585_v21 = vmul.f32 1.442695, %v1508_v11  ;;  %v456_v10 = vadd.f32 %v3783_v23, %v3869_v14 }
 0x1fd   :  { %v1281_v16 = vpop.f32.mrf.mxu2  ;;  %v544_v24 = vmax.f32 %v447_v12, 0.0  ;;  %v868_v25 = vadd.f32 %v3845_v39, %v867_v13  ;;  %v3032_v26 = vpop.eup %3031  ;;  %v3884_v27 = vadd.f32 1.0, %v3030_v19 }
 0x1fe   :  { %v1282_v29 = vadd.f32 %v3845_v39, %v1281_v16  ;;  %v1909_v31 = vsel %vm1908_vm0, %v3028_v1, %v1905_v20  ;;  %v1917_v32 = vmul.f32 %v3032_v26, %v3866_v3  ;;  %3033 = vpow2.f32 %v1585_v21  ;;  %v3928_v13 = vpop.f32.mrf.mxu3 }
 0x1ff   :  { %v1914_v33 = vsel %vm1911_vm15, %v1913_v28, %v1909_v31  ;;  %3035 = vrcp.f32 %v3884_v27  ;;  %v997_v35 = vmax.f32 %v868_v25, 0.0  ;;  %2890 = vmatmul.msk.f32.gmra.mxu1 %vm564_vm1, %v544_v24  ;;  %vm1922_vm2 = vweird.f32 %v3032_v26 }
 0x200   :  { %2721 = vst.msk [vmem:[%s4399_s5 + $0x50] sm:$0xff] %vm564_vm1, %v1914_v33  ;;  %v1918_v34 = vsub.f32 1.0, %v1917_v32  ;;  %v1445_v36 = vmax.f32 %v1282_v29, -30.0  ;;  %vm1923_vm4 = vmor %vm1921_vm3, %vm1922_vm2  ;;  %v1942_v63 = vand.u32 2147483648, %v3884_v27  ;;  %v1940_v2 = vand.u32 2147483647, %v3884_v27 }
 0x201   :  { %2938 = vmatmul.msk.f32.gmra.mxu2 %vm564_vm1, %v997_v35  ;;  %vm1936_vm7 = vweird.f32 %v3884_v27  ;;  %v547_v24 = vmax.f32 %v456_v10, 0.0 }
 0x202   :  { %v449_v40 = vpop.f32.mrf.mxu0  ;;  %v1919_v41 = vmul.f32 %v3032_v26, %v1918_v34  ;;  %v1509_v42 = vsub.f32 0.0, %v1445_v36  ;;  %v1943_v9 = vor.u32 1.1754944e-38, %v1942_v63  ;;  %vm1941_vm9 = vcmp.eq.f32.partialorder %v1940_v2, 8.507059e+37 }
 0x203   :  { %v450_v43 = vadd.f32 %v3783_v23, %v449_v40  ;;  %v459_v40 = vadd.f32 %v3783_v23, %v3887_v30  ;;  %v462_v63 = vadd.f32 %v3783_v23, %v3907_v57 }
 0x204   :  { %v870_v44 = vpop.f32.mrf.mxu1  ;;  %v3034_v47 = vpop.eup %3033  ;;  %v1920_v48 = vadd.f32 %v3032_v26, %v1919_v41  ;;  %v1587_v49 = vmul.f32 1.442695, %v1509_v42 }
 0x205   :  { %v1284_v46 = vpop.f32.mrf.mxu2  ;;  %v545_v50 = vmax.f32 %v450_v43, 0.0  ;;  %v871_v51 = vadd.f32 %v3845_v39, %v870_v44  ;;  %v3036_v52 = vpop.eup %3035  ;;  %v3902_v54 = vadd.f32 1.0, %v3034_v47 }
 0x206   :  { %v1285_v55 = vadd.f32 %v3845_v39, %v1284_v46  ;;  %v1924_v58 = vsel %vm1923_vm4, %v3032_v26, %v1920_v48  ;;  %v1932_v59 = vmul.f32 %v3036_v52, %v3884_v27  ;;  %3037 = vpow2.f32 %v1587_v49  ;;  %v3952_v48 = vpop.f32.mrf.mxu3 }
 0x207   :  { %2891 = vmatmul.msk.f32.vlgmr.msrb.gmra.mxu3 %vm564_vm1, %v545_v50  ;;  %v1929_v60 = vsel %vm1926_vm5, %v1928_v53, %v1924_v58  ;;  %3039 = vrcp.f32 %v3902_v54  ;;  %v998_v62 = vmax.f32 %v871_v51, 0.0  ;;  %vm1937_vm6 = vweird.f32 %v3036_v52 }
 0x208   :  { %2722 = vst.msk [vmem:[%s4399_s5 + $0x58] sm:$0xff] %vm564_vm1, %v1929_v60  ;;  %v1933_v61 = vsub.f32 1.0, %v1932_v59  ;;  %v1446_v45 = vmax.f32 %v1285_v55, -30.0  ;;  %vm1938_vm8 = vmor %vm1936_vm7, %vm1937_vm6  ;;  %v1957_v21 = vand.u32 2147483648, %v3902_v54  ;;  %v1955_v26 = vand.u32 2147483647, %v3902_v54 }
 0x209   :  { %2939 = vmatmul.msk.f32.gmra.mxu2 %vm564_vm1, %v998_v62  ;;  %vm1951_vm11 = vweird.f32 %v3902_v54  ;;  %v548_v49 = vmax.f32 %v459_v40, 0.0 }
 0x20a   :  { %v1934_v1 = vmul.f32 %v3036_v52, %v1933_v61  ;;  %v1510_v3 = vsub.f32 0.0, %v1446_v45  ;;  %v1958_v37 = vor.u32 1.1754944e-38, %v1957_v21  ;;  %vm1956_vm13 = vcmp.eq.f32.partialorder %v1955_v26, 8.507059e+37 }
 0x20b   :  { %v465_v21 = vadd.f32 %v3783_v23, %v3928_v13 }
 0x20c   :  { %v873_v4 = vpop.f32.mrf.mxu1  ;;  %v3038_v15 = vpop.eup %3037  ;;  %v1935_v22 = vadd.f32 %v3036_v52, %v1934_v1  ;;  %v1589_v17 = vmul.f32 1.442695, %v1510_v3 }
 0x20d   :  { %v1287_v5 = vpop.f32.mrf.mxu2  ;;  %v874_v6 = vadd.f32 %v3845_v39, %v873_v4  ;;  %v3040_v8 = vpop.eup %3039  ;;  %v3922_v18 = vadd.f32 1.0, %v3038_v15  ;;  %v549_v15 = vmax.f32 %v462_v63, 0.0 }
 0x20e   :  { %v1288_v7 = vadd.f32 %v3845_v39, %v1287_v5  ;;  %v1939_v11 = vsel %vm1938_vm8, %v3036_v52, %v1935_v22  ;;  %v1947_v12 = vmul.f32 %v3040_v8, %v3902_v54  ;;  %3041 = vpow2.f32 %v1589_v17 }
 0x20f   :  { %2892 = vmatmul.msk.f32.gmra.mxu3 %vm564_vm1, %v546_v0  ;;  %v1944_v16 = vsel %vm1941_vm9, %v1943_v9, %v1939_v11  ;;  %3043 = vrcp.f32 %v3922_v18  ;;  %v999_v20 = vmax.f32 %v874_v6, 0.0  ;;  %vm1952_vm10 = vweird.f32 %v3040_v8 }
 0x210   :  { %2723 = vst.msk [vmem:[%s4399_s5 + $0x60] sm:$0xff] %vm564_vm1, %v1944_v16  ;;  %v1948_v19 = vsub.f32 1.0, %v1947_v12  ;;  %v1447_v14 = vmax.f32 %v1288_v7, -30.0  ;;  %vm1953_vm12 = vmor %vm1951_vm11, %vm1952_vm10  ;;  %v1972_v30 = vand.u32 2147483648, %v3922_v18  ;;  %v1970_v51 = vand.u32 2147483647, %v3922_v18  ;;  %v3973_v7 = vpop.f32.mrf.mxu3 }
 0x211   :  { %2940 = vmatmul.msk.f32.gmra.mxu2 %vm564_vm1, %v999_v20  ;;  %vm1966_vm0 = vweird.f32 %v3922_v18 }
 0x212   :  { %v1949_v25 = vmul.f32 %v3040_v8, %v1948_v19  ;;  %v1511_v28 = vsub.f32 0.0, %v1447_v14  ;;  %v1973_v62 = vor.u32 1.1754944e-38, %v1972_v30  ;;  %vm1971_vm2 = vcmp.eq.f32.partialorder %v1970_v51, 8.507059e+37 }
 0x214   :  { %v876_v27 = vpop.f32.mrf.mxu1  ;;  %v3042_v31 = vpop.eup %3041  ;;  %v1950_v32 = vadd.f32 %v3040_v8, %v1949_v25  ;;  %v1591_v33 = vmul.f32 1.442695, %v1511_v28 }
 0x215   :  { %v1290_v29 = vpop.f32.mrf.mxu2  ;;  %v877_v34 = vadd.f32 %v3845_v39, %v876_v27  ;;  %v3044_v36 = vpop.eup %3043  ;;  %v3941_v38 = vadd.f32 1.0, %v3042_v31  ;;  %v550_v31 = vmax.f32 %v465_v21, 0.0 }
 0x216   :  { %v1291_v35 = vadd.f32 %v3845_v39, %v1290_v29  ;;  %v1954_v41 = vsel %vm1953_vm12, %v3040_v8, %v1950_v32  ;;  %v1962_v42 = vmul.f32 %v3044_v36, %v3922_v18  ;;  %3045 = vpow2.f32 %v1591_v33 }
 0x217   :  { %2893 = vmatmul.msk.f32.gmra.mxu3 %vm564_vm1, %v547_v24  ;;  %v1959_v43 = vsel %vm1956_vm13, %v1958_v37, %v1954_v41  ;;  %3047 = vrcp.f32 %v3941_v38  ;;  %v1000_v46 = vmax.f32 %v877_v34, 0.0  ;;  %vm1967_vm14 = vweird.f32 %v3044_v36 }
 0x218   :  { %2724 = vst.msk [vmem:[%s4399_s5 + $0x68] sm:$0xff] %vm564_vm1, %v1959_v43  ;;  %v1963_v44 = vsub.f32 1.0, %v1962_v42  ;;  %v1448_v47 = vmax.f32 %v1291_v35, -30.0  ;;  %vm1968_vm15 = vmor %vm1966_vm0, %vm1967_vm14  ;;  %v1987_v57 = vand.u32 2147483648, %v3941_v38  ;;  %v1985_v17 = vand.u32 2147483647, %v3941_v38 }
 0x219   :  { %2941 = vmatmul.msk.f32.gmra.mxu2 %vm564_vm1, %v1000_v46  ;;  %vm1981_vm4 = vweird.f32 %v3941_v38  ;;  %v468_v46 = vadd.f32 %v3783_v23, %v3952_v48 }
 0x21a   :  { %v1964_v50 = vmul.f32 %v3044_v36, %v1963_v44  ;;  %v1512_v52 = vsub.f32 0.0, %v1448_v47  ;;  %v1988_v20 = vor.u32 1.1754944e-38, %v1987_v57  ;;  %vm1986_vm6 = vcmp.eq.f32.partialorder %v1985_v17, 8.507059e+37 }
 0x21c   :  { %v879_v53 = vpop.f32.mrf.mxu1  ;;  %v3046_v55 = vpop.eup %3045  ;;  %v1965_v56 = vadd.f32 %v3044_v36, %v1964_v50  ;;  %v1593_v58 = vmul.f32 1.442695, %v1512_v52 }
 0x21d   :  { %v1293_v54 = vpop.f32.mrf.mxu2  ;;  %v880_v59 = vadd.f32 %v3845_v39, %v879_v53  ;;  %v3048_v61 = vpop.eup %3047  ;;  %v3960_v45 = vadd.f32 1.0, %v3046_v55 }
 0x21e   :  { %v1294_v60 = vadd.f32 %v3845_v39, %v1293_v54  ;;  %v1969_v0 = vsel %vm1968_vm15, %v3044_v36, %v1965_v56  ;;  %v1977_v1 = vmul.f32 %v3048_v61, %v3941_v38  ;;  %3049 = vpow2.f32 %v1593_v58  ;;  %v3994_v38 = vpop.f32.mrf.mxu3 }
 0x21f   :  { %2894 = vmatmul.msk.f32.gmra.mxu3 %vm564_vm1, %v548_v49  ;;  %v1974_v2 = vsel %vm1971_vm2, %v1973_v62, %v1969_v0  ;;  %3051 = vrcp.f32 %v3960_v45  ;;  %v1001_v4 = vmax.f32 %v880_v59, 0.0  ;;  %vm1982_vm3 = vweird.f32 %v3048_v61 }
 0x220   :  { %2725 = vst.msk [vmem:[%s4399_s5 + $0x70] sm:$0xff] %vm564_vm1, %v1974_v2  ;;  %v1978_v3 = vsub.f32 1.0, %v1977_v1  ;;  %v1449_v5 = vmax.f32 %v1294_v60, -30.0  ;;  %vm1983_vm5 = vmor %vm1981_vm4, %vm1982_vm3  ;;  %v2002_v13 = vand.u32 2147483648, %v3960_v45  ;;  %v2000_v33 = vand.u32 2147483647, %v3960_v45 }
 0x221   :  { %2942 = vmatmul.msk.f32.gmra.mxu2 %vm564_vm1, %v1001_v4  ;;  %vm1996_vm8 = vweird.f32 %v3960_v45  ;;  %v551_v54 = vmax.f32 %v468_v46, 0.0  ;;  %v471_v1 = vadd.f32 %v3783_v23, %v3973_v7  ;;  %v474_v21 = vadd.f32 %v3783_v23, %v3994_v38 }
 0x222   :  { %v1979_v22 = vmul.f32 %v3048_v61, %v1978_v3  ;;  %v1513_v6 = vsub.f32 0.0, %v1449_v5  ;;  %v2003_v41 = vor.u32 1.1754944e-38, %v2002_v13  ;;  %vm2001_vm10 = vcmp.eq.f32.partialorder %v2000_v33, 8.507059e+37 }
 0x223   :  { %v553_v38 = vmax.f32 %v474_v21, 0.0 }
 0x224   :  { %v882_v8 = vpop.f32.mrf.mxu1  ;;  %v3050_v18 = vpop.eup %3049  ;;  %v1980_v10 = vadd.f32 %v3048_v61, %v1979_v22  ;;  %v1595_v11 = vmul.f32 1.442695, %v1513_v6 }
 0x225   :  { %v1296_v9 = vpop.f32.mrf.mxu2  ;;  %v883_v12 = vadd.f32 %v3845_v39, %v882_v8  ;;  %v3052_v19 = vpop.eup %3051  ;;  %v3979_v14 = vadd.f32 1.0, %v3050_v18  ;;  %v552_v8 = vmax.f32 %v471_v1, 0.0 }
 0x226   :  { %v1297_v16 = vadd.f32 %v3845_v39, %v1296_v9  ;;  %v1984_v24 = vsel %vm1983_vm5, %v3048_v61, %v1980_v10  ;;  %v1992_v25 = vmul.f32 %v3052_v19, %v3960_v45  ;;  %3053 = vpow2.f32 %v1595_v11  ;;  %v476_v57 = vpop.f32.mrf.mxu3 }
 0x227   :  { %2895 = vmatmul.msk.f32.gmra.mxu3 %vm564_vm1, %v549_v15  ;;  %v1989_v26 = vsel %vm1986_vm6, %v1988_v20, %v1984_v24  ;;  %3055 = vrcp.f32 %v3979_v14  ;;  %v1002_v27 = vmax.f32 %v883_v12, 0.0  ;;  %vm1997_vm7 = vweird.f32 %v3052_v19 }
 0x228   :  { %2726 = vst.msk [vmem:[%s4399_s5 + $0x78] sm:$0xff] %vm564_vm1, %v1989_v26  ;;  %v1993_v28 = vsub.f32 1.0, %v1992_v25  ;;  %v1450_v29 = vmax.f32 %v1297_v16, -30.0  ;;  %vm1998_vm9 = vmor %vm1996_vm8, %vm1997_vm7  ;;  %v2015_v52 = vand.u32 2147483647, %v3979_v14  ;;  %v2017_v53 = vand.u32 2147483648, %v3979_v14 }
 0x229   :  { %2943 = vmatmul.msk.f32.gmra.mxu2 %vm564_vm1, %v1002_v27  ;;  %vm2011_vm12 = vweird.f32 %v3979_v14 }
 0x22a   :  { %v1994_v32 = vmul.f32 %v3052_v19, %v1993_v28  ;;  %v1514_v34 = vsub.f32 0.0, %v1450_v29  ;;  %v2018_v45 = vor.u32 1.1754944e-38, %v2017_v53  ;;  %vm2016_vm14 = vcmp.eq.f32.partialorder %v2015_v52, 8.507059e+37 }
 0x22c   :  { %v3054_v35 = vpop.eup %3053  ;;  %v1995_v36 = vadd.f32 %v3052_v19, %v1994_v32  ;;  %v1597_v37 = vmul.f32 1.442695, %v1514_v34  ;;  %v885_v43 = vpop.f32.mrf.mxu1 }
 0x22d   :  { %v3056_v40 = vpop.eup %3055  ;;  %v3996_v42 = vadd.f32 1.0, %v3054_v35  ;;  %v1299_v44 = vpop.f32.mrf.mxu2  ;;  %v886_v51 = vadd.f32 %v3845_v39, %v885_v43 }
 0x22e   :  { %v1999_v47 = vsel %vm1998_vm9, %v3052_v19, %v1995_v36  ;;  %v2007_v30 = vmul.f32 %v3056_v40, %v3979_v14  ;;  %3057 = vpow2.f32 %v1597_v37  ;;  %v1300_v48 = vadd.f32 %v3845_v39, %v1299_v44  ;;  %v479_v35 = vpop.f32.mrf.mxu3 }
 0x22f   :  { %2896 = vmatmul.msk.f32.gmra.mxu3 %vm564_vm1, %v550_v31  ;;  %v2004_v49 = vsel %vm2001_vm10, %v2003_v41, %v1999_v47  ;;  %3059 = vrcp.f32 %v3996_v42  ;;  %vm2012_vm11 = vweird.f32 %v3056_v40  ;;  %v1003_v56 = vmax.f32 %v886_v51, 0.0 }
 0x230   :  { %2727 = vst.msk [vmem:[%s4399_s5 + $0x80] sm:$0xff] %vm564_vm1, %v2004_v49  ;;  %v2008_v50 = vsub.f32 1.0, %v2007_v30  ;;  %v1451_v58 = vmax.f32 %v1300_v48, -30.0  ;;  %vm2013_vm13 = vmor %vm2011_vm12, %vm2012_vm11  ;;  %v2032_v6 = vand.u32 2147483648, %v3996_v42  ;;  %v2030_v18 = vand.u32 2147483647, %v3996_v42 }
 0x231   :  { %2944 = vmatmul.msk.f32.gmra.mxu2 %vm564_vm1, %v1003_v56  ;;  %vm2026_vm15 = vweird.f32 %v3996_v42  ;;  %v477_v47 = vadd.f32 %v3783_v23, %v476_v57 }
 0x232   :  { %v2009_v55 = vmul.f32 %v3056_v40, %v2008_v50  ;;  %v1515_v61 = vsub.f32 0.0, %v1451_v58  ;;  %v2033_v19 = vor.u32 1.1754944e-38, %v2032_v6  ;;  %vm2031_vm3 = vcmp.eq.f32.partialorder %v2030_v18, 8.507059e+37 }
 0x234   :  { %v3058_v59 = vpop.eup %3057  ;;  %v2010_v60 = vadd.f32 %v3056_v40, %v2009_v55  ;;  %v888_v0 = vpop.f32.mrf.mxu1  ;;  %v1599_v4 = vmul.f32 1.442695, %v1515_v61  ;;  %v554_v61 = vmax.f32 %v477_v47, 0.0 }
 0x235   :  { %v3060_v62 = vpop.eup %3059  ;;  %v4013_v63 = vadd.f32 1.0, %v3058_v59  ;;  %v1302_v5 = vpop.f32.mrf.mxu2  ;;  %v889_v17 = vadd.f32 %v3845_v39, %v888_v0 }
 0x236   :  { %v2014_v2 = vsel %vm2013_vm13, %v3056_v40, %v2010_v60  ;;  %v2022_v3 = vmul.f32 %v3060_v62, %v3996_v42  ;;  %v1303_v7 = vadd.f32 %v3845_v39, %v1302_v5  ;;  %vm2027_vm0 = vweird.f32 %v3060_v62 }
 0x237   :  { %2897 = vmatmul.msk.f32.gmra.mxu3 %vm564_vm1, %v551_v54  ;;  %v2019_v15 = vsel %vm2016_vm14, %v2018_v45, %v2014_v2  ;;  %3061 = vrcp.f32 %v4013_v63  ;;  %v1004_v10 = vmax.f32 %v889_v17, 0.0  ;;  %vm2028_vm2 = vmor %vm2026_vm15, %vm2027_vm0  ;;  %v2045_v36 = vand.u32 2147483647, %v4013_v63 }
 0x238   :  { %2728 = vst.msk [vmem:[%s4399_s5 + $0x88] sm:$0xff] %vm564_vm1, %v2019_v15  ;;  %v2023_v22 = vsub.f32 1.0, %v2022_v3  ;;  %3063 = vpow2.f32 %v1599_v4  ;;  %v1452_v11 = vmax.f32 %v1303_v7, -30.0  ;;  %v2047_v37 = vand.u32 2147483648, %v4013_v63 }
 0x239   :  { %2945 = vmatmul.msk.f32.gmra.mxu2 %vm564_vm1, %v1004_v10  ;;  %vm2041_vm5 = vweird.f32 %v4013_v63  ;;  %vm2046_vm7 = vcmp.eq.f32.partialorder %v2045_v36, 8.507059e+37  ;;  %v480_v3 = vadd.f32 %v3783_v23, %v479_v35 }
 0x23a   :  { %v2024_v9 = vmul.f32 %v3060_v62, %v2023_v22  ;;  %v1516_v20 = vsub.f32 0.0, %v1452_v11  ;;  %v2048_v44 = vor.u32 1.1754944e-38, %v2047_v37 }
 0x23c   :  { %v2025_v12 = vadd.f32 %v3060_v62, %v2024_v9  ;;  %v891_v14 = vpop.f32.mrf.mxu1  ;;  %v1601_v31 = vmul.f32 1.442695, %v1516_v20 }
 0x23d   :  { %v3062_v16 = vpop.eup %3061  ;;  %v892_v28 = vadd.f32 %v3845_v39, %v891_v14  ;;  %v1305_v27 = vpop.f32.mrf.mxu2 }
 0x23e   :  { %v3064_v24 = vpop.eup %3063  ;;  %v2029_v25 = vsel %vm2028_vm2, %v3060_v62, %v2025_v12  ;;  %v2037_v26 = vmul.f32 %v3062_v16, %v4013_v63  ;;  %v1306_v32 = vadd.f32 %v3845_v39, %v1305_v27  ;;  %vm2042_vm4 = vweird.f32 %v3062_v16  ;;  %v482_v62 = vpop.f32.mrf.mxu3 }
 0x23f   :  { %2898 = vmatmul.msk.f32.gmra.mxu3 %vm564_vm1, %v552_v8  ;;  %v2034_v29 = vsel %vm2031_vm3, %v2033_v19, %v2029_v25  ;;  %v4035_v13 = vadd.f32 1.0, %v3064_v24  ;;  %v1005_v34 = vmax.f32 %v892_v28, 0.0  ;;  %vm2043_vm6 = vmor %vm2041_vm5, %vm2042_vm4  ;;  %v555_v12 = vmax.f32 %v480_v3, 0.0  ;;  %v4075_v25 = vld [vmem:[%s4396_s2] ss:$0 sm:$0xff] }
 0x240   :  { %2729 = vst.msk [vmem:[%s4399_s5 + $0x90] sm:$0xff] %vm564_vm1, %v2034_v29  ;;  %v2038_v33 = vsub.f32 1.0, %v2037_v26  ;;  %v1453_v41 = vmax.f32 %v1306_v32, -30.0  ;;  %v483_v26 = vadd.f32 %v4075_v25, %v482_v62 }
 0x241   :  { %3065 = vrcp.f32 %v4035_v13  ;;  %2946 = vmatmul.msk.f32.gmra.mxu2 %vm564_vm1, %v1005_v34  ;;  %v2062_v45 = vand.u32 2147483648, %v4035_v13  ;;  %v2060_v0 = vand.u32 2147483647, %v4035_v13  ;;  %vm2056_vm9 = vweird.f32 %v4035_v13 }
 0x242   :  { %v2039_v40 = vmul.f32 %v3062_v16, %v2038_v33  ;;  %3067 = vpow2.f32 %v1601_v31  ;;  %v1517_v43 = vsub.f32 0.0, %v1453_v41 }
 0x243   :  { %v2063_v17 = vor.u32 1.1754944e-38, %v2062_v45  ;;  %vm2061_vm11 = vcmp.eq.f32.partialorder %v2060_v0, 8.507059e+37 }
 0x244   :  { %v2040_v42 = vadd.f32 %v3062_v16, %v2039_v40  ;;  %v894_v46 = vpop.f32.mrf.mxu1  ;;  %v1603_v49 = vmul.f32 1.442695, %v1517_v43 }
 0x245   :  { %v895_v50 = vadd.f32 %v3845_v39, %v894_v46  ;;  %v1308_v51 = vpop.f32.mrf.mxu2 }
 0x246   :  { %v2044_v30 = vsel %vm2043_vm6, %v3062_v16, %v2040_v42  ;;  %v1309_v53 = vadd.f32 %v3845_v39, %v1308_v51  ;;  %3069 = vpow2.f32 %v1603_v49  ;;  %v485_v20 = vpop.f32.mrf.mxu3 }
 0x247   :  { %2899 = vmatmul.msk.f32.gmra.mxu3 %vm564_vm1, %v553_v38  ;;  %v3066_v48 = vpop.eup %3065  ;;  %v2049_v52 = vsel %vm2046_vm7, %v2048_v44, %v2044_v30  ;;  %v1006_v56 = vmax.f32 %v895_v50, 0.0  ;;  %v556_v38 = vmax.f32 %v483_v26, 0.0  ;;  %v486_v51 = vadd.f32 %v4075_v25, %v485_v20 }
 0x248   :  { %v3068_v54 = vpop.eup %3067  ;;  %2730 = vst.msk [vmem:[%s4399_s5 + $0x98] sm:$0xff] %vm564_vm1, %v2049_v52  ;;  %v2052_v55 = vmul.f32 %v3066_v48, %v4035_v13  ;;  %v1454_v59 = vmax.f32 %v1309_v53, -30.0  ;;  %vm2057_vm8 = vweird.f32 %v3066_v48 }
 0x249   :  { %v1708_v58 = vadd.f32 1.0, %v3068_v54  ;;  %2947 = vmatmul.msk.f32.gmra.mxu2 %vm564_vm1, %v1006_v56  ;;  %vm2058_vm10 = vmor %vm2056_vm9, %vm2057_vm8  ;;  %v557_v3 = vmax.f32 %v486_v51, 0.0 }
 0x24a   :  { %v2053_v60 = vsub.f32 1.0, %v2052_v55  ;;  %v1518_v1 = vsub.f32 0.0, %v1454_v59 }
 0x24b   :  { %3071 = vrcp.f32 %v1708_v58  ;;  %v2075_v14 = vand.u32 2147483647, %v1708_v58  ;;  %v2077_v21 = vand.u32 2147483648, %v1708_v58  ;;  %vm2071_vm13 = vweird.f32 %v1708_v58 }
 0x24c   :  { %v2054_v63 = vmul.f32 %v3066_v48, %v2053_v60  ;;  %v897_v2 = vpop.f32.mrf.mxu1  ;;  %v3070_v4 = vpop.eup %3069  ;;  %v1605_v57 = vmul.f32 1.442695, %v1518_v1 }
 0x24d   :  { %v898_v15 = vadd.f32 %v3845_v39, %v897_v2  ;;  %v1311_v22 = vpop.f32.mrf.mxu2  ;;  %v4063_v6 = vadd.f32 1.0, %v3070_v4  ;;  %vm2076_vm0 = vcmp.eq.f32.partialorder %v2075_v14, 8.507059e+37  ;;  %v2078_v37 = vor.u32 1.1754944e-38, %v2077_v21 }
 0x24e   :  { %v2055_v5 = vadd.f32 %v3066_v48, %v2054_v63  ;;  %v1312_v7 = vadd.f32 %v3845_v39, %v1311_v22  ;;  %3073 = vpow2.f32 %v1605_v57  ;;  %v488_v56 = vpop.f32.mrf.mxu3 }
 0x24f   :  { %2900 = vmatmul.msk.f32.gmra.mxu3 %vm564_vm1, %v554_v61  ;;  %v1007_v23 = vmax.f32 %v898_v15, 0.0  ;;  %3075 = vrcp.f32 %v4063_v6  ;;  %v2092_v46 = vand.u32 2147483648, %v4063_v6  ;;  %v2090_v30 = vand.u32 2147483647, %v4063_v6 }
 0x250   :  { %v2059_v8 = vsel %vm2058_vm10, %v3066_v48, %v2055_v5  ;;  %v1455_v11 = vmax.f32 %v1312_v7, -30.0  ;;  %vm2086_vm2 = vweird.f32 %v4063_v6 }
 0x251   :  { %v3072_v9 = vpop.eup %3071  ;;  %v2064_v18 = vsel %vm2061_vm11, %v2063_v17, %v2059_v8  ;;  %2948 = vmatmul.msk.f32.gmra.mxu2 %vm564_vm1, %v1007_v23  ;;  %v2093_v59 = vor.u32 1.1754944e-38, %v2092_v46  ;;  %vm2091_vm4 = vcmp.eq.f32.partialorder %v2090_v30, 8.507059e+37  ;;  %v489_v17 = vadd.f32 %v4075_v25, %v488_v56 }
 0x252   :  { %2731 = vst.msk [vmem:[%s4399_s5 + $0xa0] sm:$0xff] %vm564_vm1, %v2064_v18  ;;  %v2067_v10 = vmul.f32 %v3072_v9, %v1708_v58  ;;  %v1519_v19 = vsub.f32 0.0, %v1455_v11  ;;  %vm2072_vm12 = vweird.f32 %v3072_v9 }
 0x253   :  { %vm2073_vm14 = vmor %vm2071_vm13, %vm2072_vm12 }
 0x254   :  { %v2068_v16 = vsub.f32 1.0, %v2067_v10  ;;  %v900_v24 = vpop.f32.mrf.mxu1  ;;  %v3074_v28 = vpop.eup %3073  ;;  %v1607_v29 = vmul.f32 1.442695, %v1519_v19 }
 0x255   :  { %v901_v13 = vadd.f32 %v3845_v39, %v900_v24  ;;  %v1314_v31 = vpop.f32.mrf.mxu2  ;;  %v3076_v32 = vpop.eup %3075  ;;  %v4080_v33 = vadd.f32 1.0, %v3074_v28  ;;  %v558_v28 = vmax.f32 %v489_v17, 0.0 }
 0x256   :  { %v2069_v27 = vmul.f32 %v3072_v9, %v2068_v16  ;;  %v1315_v34 = vadd.f32 %v3845_v39, %v1314_v31  ;;  %v2082_v36 = vmul.f32 %v3076_v32, %v4063_v6  ;;  %3077 = vpow2.f32 %v1607_v29  ;;  %v491_v20 = vpop.f32.mrf.mxu3 }
 0x257   :  { %2901 = vmatmul.msk.f32.gmra.mxu3 %vm564_vm1, %v555_v12  ;;  %3079 = vrcp.f32 %v4080_v33  ;;  %v1008_v42 = vmax.f32 %v901_v13, 0.0  ;;  %vm2087_vm15 = vweird.f32 %v3076_v32  ;;  %v2107_v4 = vand.u32 2147483648, %v4080_v33 }
 0x258   :  { %v2070_v35 = vadd.f32 %v3072_v9, %v2069_v27  ;;  %v2083_v41 = vsub.f32 1.0, %v2082_v36  ;;  %v1456_v43 = vmax.f32 %v1315_v34, -30.0  ;;  %vm2088_vm3 = vmor %vm2086_vm2, %vm2087_vm15  ;;  %v2105_v57 = vand.u32 2147483647, %v4080_v33  ;;  %v4130_v36 = vld [vmem:[%s4398_s4] ss:$0 sm:$0xff] }
 0x259   :  { %2949 = vmatmul.msk.f32.gmra.mxu2 %vm564_vm1, %v1008_v42  ;;  %vm2101_vm6 = vweird.f32 %v4080_v33  ;;  %v2108_v10 = vor.u32 1.1754944e-38, %v2107_v4 }
 0x25a   :  { %v2074_v40 = vsel %vm2073_vm14, %v3072_v9, %v2070_v35  ;;  %v2084_v47 = vmul.f32 %v3076_v32, %v2083_v41  ;;  %v1520_v49 = vsub.f32 0.0, %v1456_v43  ;;  %vm2106_vm8 = vcmp.eq.f32.partialorder %v2105_v57, 8.507059e+37 }
 0x25b   :  { %v2079_v44 = vsel %vm2076_vm0, %v2078_v37, %v2074_v40 }
 0x25c   :  { %2732 = vst.msk [vmem:[%s4399_s5 + $0xa8] sm:$0xff] %vm564_vm1, %v2079_v44  ;;  %v903_v50 = vpop.f32.mrf.mxu1  ;;  %v3078_v48 = vpop.eup %3077  ;;  %v2085_v52 = vadd.f32 %v3076_v32, %v2084_v47  ;;  %v1609_v53 = vmul.f32 1.442695, %v1520_v49 }
 0x25d   :  { %v904_v54 = vadd.f32 %v3845_v39, %v903_v50  ;;  %v1317_v55 = vpop.f32.mrf.mxu2  ;;  %v3080_v58 = vpop.eup %3079  ;;  %v4097_v60 = vadd.f32 1.0, %v3078_v48 }
 0x25e   :  { %v1318_v61 = vadd.f32 %v3845_v39, %v1317_v55  ;;  %v2089_v62 = vsel %vm2088_vm3, %v3076_v32, %v2085_v52  ;;  %v2097_v45 = vmul.f32 %v3080_v58, %v4080_v33  ;;  %3081 = vpow2.f32 %v1609_v53  ;;  %v494_v48 = vpop.f32.mrf.mxu3 }
 0x25f   :  { %2902 = vmatmul.msk.f32.gmra.mxu3 %vm564_vm1, %v556_v38  ;;  %v2094_v63 = vsel %vm2091_vm4, %v2093_v59, %v2089_v62  ;;  %3083 = vrcp.f32 %v4097_v60  ;;  %v1009_v1 = vmax.f32 %v904_v54, 0.0  ;;  %vm2102_vm5 = vweird.f32 %v3080_v58 }
 0x260   :  { %2733 = vst.msk [vmem:[%s4399_s5 + $0xb0] sm:$0xff] %vm564_vm1, %v2094_v63  ;;  %v2098_v0 = vsub.f32 1.0, %v2097_v45  ;;  %v1457_v2 = vmax.f32 %v1318_v61, -30.0  ;;  %vm2103_vm7 = vmor %vm2101_vm6, %vm2102_vm5  ;;  %v2120_v29 = vand.u32 2147483647, %v4097_v60  ;;  %v492_v32 = vadd.f32 %v4075_v25, %v491_v20 }
 0x261   :  { %2950 = vmatmul.msk.f32.gmra.mxu2 %vm564_vm1, %v1009_v1  ;;  %vm2116_vm10 = vweird.f32 %v4097_v60 }
 0x262   :  { %v2099_v5 = vmul.f32 %v3080_v58, %v2098_v0  ;;  %v1521_v15 = vsub.f32 0.0, %v1457_v2  ;;  %vm2121_vm12 = vcmp.eq.f32.partialorder %v2120_v29, 8.507059e+37  ;;  %v559_v51 = vmax.f32 %v492_v32, 0.0 }
 0x264   :  { %v906_v22 = vpop.f32.mrf.mxu1  ;;  %v3082_v6 = vpop.eup %3081  ;;  %v2100_v7 = vadd.f32 %v3080_v58, %v2099_v5  ;;  %v1611_v8 = vmul.f32 1.442695, %v1521_v15 }
 0x265   :  { %v907_v23 = vadd.f32 %v3845_v39, %v906_v22  ;;  %v1320_v9 = vpop.f32.mrf.mxu2  ;;  %v3084_v18 = vpop.eup %3083  ;;  %v4113_v11 = vadd.f32 1.0, %v3082_v6 }
 0x266   :  { %v1321_v12 = vadd.f32 %v3845_v39, %v1320_v9  ;;  %v2104_v16 = vsel %vm2103_vm7, %v3080_v58, %v2100_v7  ;;  %v2112_v19 = vmul.f32 %v3084_v18, %v4097_v60  ;;  %3085 = vpow2.f32 %v1611_v8 }
 0x267   :  { %2903 = vmatmul.msk.f32.gmra.mxu3 %vm564_vm1, %v557_v3  ;;  %v2109_v14 = vsel %vm2106_vm8, %v2108_v10, %v2104_v16  ;;  %3087 = vrcp.f32 %v4113_v11  ;;  %v1010_v24 = vmax.f32 %v907_v23, 0.0  ;;  %v2122_v39 = vand.u32 2147483648, %v4097_v60 }
 0x268   :  { %2734 = vst.msk [vmem:[%s4399_s5 + $0xb8] sm:$0xff] %vm564_vm1, %v2109_v14  ;;  %v2113_v21 = vsub.f32 1.0, %v2112_v19  ;;  %v1458_v26 = vmax.f32 %v1321_v12, -30.0  ;;  %vm2117_vm9 = vweird.f32 %v3084_v18  ;;  %v2137_v52 = vand.u32 2147483648, %v4113_v11 }
 0x269   :  { %2951 = vmatmul.msk.f32.gmra.mxu2 %vm564_vm1, %v1010_v24  ;;  %vm2118_vm11 = vmor %vm2116_vm10, %vm2117_vm9  ;;  %v2123_v41 = vor.u32 1.1754944e-38, %v2122_v39  ;;  %v2135_v54 = vand.u32 2147483647, %v4113_v11  ;;  %v495_v58 = vadd.f32 %v4075_v25, %v494_v48  ;;  %vm2131_vm14 = vweird.f32 %v4113_v11 }
 0x26a   :  { %v2114_v27 = vmul.f32 %v3084_v18, %v2113_v21  ;;  %v1522_v13 = vsub.f32 0.0, %v1458_v26  ;;  %v2138_v0 = vor.u32 1.1754944e-38, %v2137_v52 }
 0x26b   :  { %vm2136_vm15 = vcmp.eq.f32.partialorder %v2135_v54, 8.507059e+37  ;;  %v560_v22 = vmax.f32 %v495_v58, 0.0 }
 0x26c   :  { %v909_v31 = vpop.f32.mrf.mxu1  ;;  %v3086_v33 = vpop.eup %3085  ;;  %v2115_v34 = vadd.f32 %v3084_v18, %v2114_v27  ;;  %v1613_v35 = vmul.f32 1.442695, %v1522_v13 }
 0x26d   :  { %v910_v37 = vadd.f32 %v4130_v36, %v909_v31  ;;  %v1323_v38 = vpop.f32.mrf.mxu2  ;;  %v3088_v40 = vpop.eup %3087  ;;  %v4135_v42 = vadd.f32 1.0, %v3086_v33 }
 0x26e   :  { %v1324_v43 = vadd.f32 %v4130_v36, %v1323_v38  ;;  %v2119_v44 = vsel %vm2118_vm11, %v3084_v18, %v2115_v34  ;;  %v2127_v46 = vmul.f32 %v3088_v40, %v4113_v11  ;;  %3089 = vpow2.f32 %v1613_v35 }
 0x26f   :  { %2904 = vmatmul.msk.f32.gmra.mxu3 %vm564_vm1, %v558_v28  ;;  %v2124_v47 = vsel %vm2121_vm12, %v2123_v41, %v2119_v44  ;;  %3091 = vrcp.f32 %v4135_v42  ;;  %v1011_v49 = vmax.f32 %v910_v37, 0.0  ;;  %vm2132_vm13 = vweird.f32 %v3088_v40 }
 0x270   :  { %2735 = vst.msk [vmem:[%s4399_s5 + $0xc0] sm:$0xff] %vm564_vm1, %v2124_v47  ;;  %v2128_v30 = vsub.f32 1.0, %v2127_v46  ;;  %v1459_v50 = vmax.f32 %v1324_v43, -30.0  ;;  %vm2133_vm0 = vmor %vm2131_vm14, %vm2132_vm13  ;;  %v2152_v17 = vand.u32 2147483648, %v4135_v42  ;;  %v2150_v7 = vand.u32 2147483647, %v4135_v42 }
 0x271   :  { %2952 = vmatmul.msk.f32.gmra.mxu2 %vm564_vm1, %v1011_v49  ;;  %vm2146_vm3 = vweird.f32 %v4135_v42 }
 0x272   :  { %v2129_v53 = vmul.f32 %v3088_v40, %v2128_v30  ;;  %v1523_v55 = vsub.f32 0.0, %v1459_v50  ;;  %v2153_v19 = vor.u32 1.1754944e-38, %v2152_v17  ;;  %vm2151_vm5 = vcmp.eq.f32.partialorder %v2150_v7, 8.507059e+37 }
 0x274   :  { %v912_v56 = vpop.f32.mrf.mxu1  ;;  %v3090_v59 = vpop.eup %3089  ;;  %v2130_v60 = vadd.f32 %v3088_v40, %v2129_v53  ;;  %v1615_v61 = vmul.f32 1.442695, %v1523_v55 }
 0x275   :  { %v913_v62 = vadd.f32 %v4130_v36, %v912_v56  ;;  %v1326_v45 = vpop.f32.mrf.mxu2  ;;  %v3092_v63 = vpop.eup %3091  ;;  %v1714_v1 = vadd.f32 1.0, %v3090_v59 }
 0x276   :  { %v1327_v2 = vadd.f32 %v4130_v36, %v1326_v45  ;;  %v2134_v3 = vsel %vm2133_vm0, %v3088_v40, %v2130_v60  ;;  %v2142_v25 = vmul.f32 %v3092_v63, %v4135_v42  ;;  %3093 = vpow2.f32 %v1615_v61 }
 0x277   :  { %2905 = vmatmul.msk.f32.gmra.mxu3 %vm564_vm1, %v559_v51  ;;  %v2139_v4 = vsel %vm2136_vm15, %v2138_v0, %v2134_v3  ;;  %3095 = vrcp.f32 %v1714_v1  ;;  %v1012_v57 = vmax.f32 %v913_v62, 0.0  ;;  %vm2147_vm2 = vweird.f32 %v3092_v63 }
 0x278   :  { %2736 = vst.msk [vmem:[%s4399_s5 + $0xc8] sm:$0xff] %vm564_vm1, %v2139_v4  ;;  %v2143_v5 = vsub.f32 1.0, %v2142_v25  ;;  %v1460_v15 = vmax.f32 %v1327_v2, -30.0  ;;  %vm2148_vm4 = vmor %vm2146_vm3, %vm2147_vm2  ;;  %v2167_v29 = vand.u32 2147483648, %v1714_v1  ;;  %v2165_v31 = vand.u32 2147483647, %v1714_v1 }
 0x279   :  { %2953 = vmatmul.msk.f32.gmra.mxu2 %vm564_vm1, %v1012_v57  ;;  %vm2161_vm7 = vweird.f32 %v1714_v1 }
 0x27a   :  { %v2144_v6 = vmul.f32 %v3092_v63, %v2143_v5  ;;  %v1524_v8 = vsub.f32 0.0, %v1460_v15  ;;  %v2168_v40 = vor.u32 1.1754944e-38, %v2167_v29  ;;  %vm2166_vm9 = vcmp.eq.f32.partialorder %v2165_v31, 8.507059e+37 }
 0x27c   :  { %v915_v23 = vpop.f32.mrf.mxu1  ;;  %v3094_v9 = vpop.eup %3093  ;;  %v2145_v18 = vadd.f32 %v3092_v63, %v2144_v6  ;;  %v1617_v10 = vmul.f32 1.442695, %v1524_v8 }
 0x27d   :  { %v916_v11 = vadd.f32 %v4130_v36, %v915_v23  ;;  %v1329_v12 = vpop.f32.mrf.mxu2  ;;  %v3096_v16 = vpop.eup %3095  ;;  %v1715_v20 = vadd.f32 1.0, %v3094_v9 }
 0x27e   :  { %v1330_v14 = vadd.f32 %v4130_v36, %v1329_v12  ;;  %v2149_v21 = vsel %vm2148_vm4, %v3092_v63, %v2145_v18  ;;  %v2157_v24 = vmul.f32 %v3096_v16, %v1714_v1  ;;  %3097 = vpow2.f32 %v1617_v10 }
 0x27f   :  { %2906 = vmatmul.msk.f32.gmra.mxu3 %vm564_vm1, %v560_v22  ;;  %v2154_v26 = vsel %vm2151_vm5, %v2153_v19, %v2149_v21  ;;  %3099 = vrcp.f32 %v1715_v20  ;;  %v1013_v39 = vmax.f32 %v916_v11, 0.0  ;;  %vm2162_vm6 = vweird.f32 %v3096_v16 }
 0x280   :  { %2737 = vst.msk [vmem:[%s4399_s5 + $0xd0] sm:$0xff] %vm564_vm1, %v2154_v26  ;;  %v2158_v28 = vsub.f32 1.0, %v2157_v24  ;;  %v1461_v27 = vmax.f32 %v1330_v14, -30.0  ;;  %vm2163_vm8 = vmor %vm2161_vm7, %vm2162_vm6  ;;  %v2180_v51 = vand.u32 2147483647, %v1715_v20  ;;  %v2182_v48 = vand.u32 2147483648, %v1715_v20 }
 0x281   :  { %2954 = vmatmul.msk.f32.gmra.mxu2 %vm564_vm1, %v1013_v39  ;;  %vm2176_vm11 = vweird.f32 %v1715_v20 }
 0x282   :  { %v2159_v13 = vmul.f32 %v3096_v16, %v2158_v28  ;;  %v1525_v32 = vsub.f32 0.0, %v1461_v27  ;;  %v2183_v61 = vor.u32 1.1754944e-38, %v2182_v48  ;;  %vm2181_vm13 = vcmp.eq.f32.partialorder %v2180_v51, 8.507059e+37 }
 0x284   :  { %v3098_v33 = vpop.eup %3097  ;;  %v2160_v34 = vadd.f32 %v3096_v16, %v2159_v13  ;;  %v1619_v35 = vmul.f32 1.442695, %v1525_v32 }
 0x285   :  { %v1332_v37 = vpop.f32.mrf.mxu2  ;;  %v3100_v38 = vpop.eup %3099  ;;  %v1716_v41 = vadd.f32 1.0, %v3098_v33 }
 0x286   :  { %v1333_v42 = vadd.f32 %v4130_v36, %v1332_v37  ;;  %v2164_v43 = vsel %vm2163_vm8, %v3096_v16, %v2160_v34  ;;  %v2172_v44 = vmul.f32 %v3100_v38, %v1715_v20  ;;  %3101 = vpow2.f32 %v1619_v35 }
 0x287   :  { %v2169_v46 = vsel %vm2166_vm9, %v2168_v40, %v2164_v43  ;;  %3103 = vrcp.f32 %v1716_v41  ;;  %vm2177_vm10 = vweird.f32 %v3100_v38  ;;  %v2195_v5 = vand.u32 2147483647, %v1716_v41 }
 0x288   :  { %2738 = vst.msk [vmem:[%s4399_s5 + $0xd8] sm:$0xff] %vm564_vm1, %v2169_v46  ;;  %v2173_v30 = vsub.f32 1.0, %v2172_v44  ;;  %v1462_v49 = vmax.f32 %v1333_v42, -30.0  ;;  %vm2178_vm12 = vmor %vm2176_vm11, %vm2177_vm10  ;;  %v2197_v57 = vand.u32 2147483648, %v1716_v41  ;;  %vm2191_vm0 = vweird.f32 %v1716_v41 }
 0x289   :  { %vm2196_vm2 = vcmp.eq.f32.partialorder %v2195_v5, 8.507059e+37 }
 0x28a   :  { %v918_v47 = vpop.f32.mrf.mxu3  ;;  %v2174_v52 = vmul.f32 %v3100_v38, %v2173_v30  ;;  %v1526_v53 = vsub.f32 0.0, %v1462_v49  ;;  %v2198_v18 = vor.u32 1.1754944e-38, %v2197_v57 }
 0x28b   :  { %v919_v50 = vadd.f32 %v4130_v36, %v918_v47 }
 0x28c   :  { %v3102_v55 = vpop.eup %3101  ;;  %v2175_v56 = vadd.f32 %v3100_v38, %v2174_v52  ;;  %v1621_v58 = vmul.f32 1.442695, %v1526_v53 }
 0x28d   :  { %v1014_v54 = vmax.f32 %v919_v50, 0.0  ;;  %v1335_v59 = vpop.f32.mrf.mxu2  ;;  %v3104_v60 = vpop.eup %3103  ;;  %v1717_v62 = vadd.f32 1.0, %v3102_v55 }
 0x28e   :  { %v1336_v45 = vadd.f32 %v4130_v36, %v1335_v59  ;;  %v2179_v63 = vsel %vm2178_vm12, %v3100_v38, %v2175_v56  ;;  %v2187_v0 = vmul.f32 %v3104_v60, %v1716_v41  ;;  %3105 = vpow2.f32 %v1621_v58 }
 0x28f   :  { %2955 = vmatmul.msk.f32.vlgmr.msra.gmra.mxu3 %vm564_vm1, %v1014_v54  ;;  %v2184_v1 = vsel %vm2181_vm13, %v2183_v61, %v2179_v63  ;;  %3107 = vrcp.f32 %v1717_v62  ;;  %vm2192_vm14 = vweird.f32 %v3104_v60  ;;  %v2210_v26 = vand.u32 2147483647, %v1717_v62 }
 0x290   :  { %2739 = vst.msk [vmem:[%s4399_s5 + $0xe0] sm:$0xff] %vm564_vm1, %v2184_v1  ;;  %v2188_v3 = vsub.f32 1.0, %v2187_v0  ;;  %v1463_v25 = vmax.f32 %v1336_v45, -30.0  ;;  %vm2193_vm15 = vmor %vm2191_vm0, %vm2192_vm14  ;;  %v2212_v28 = vand.u32 2147483648, %v1717_v62  ;;  %vm2206_vm4 = vweird.f32 %v1717_v62 }
 0x291   :  { %vm2211_vm6 = vcmp.eq.f32.partialorder %v2210_v26, 8.507059e+37 }
 0x292   :  { %v921_v2 = vpop.f32.mrf.mxu3  ;;  %v2189_v15 = vmul.f32 %v3104_v60, %v2188_v3  ;;  %v1527_v22 = vsub.f32 0.0, %v1463_v25  ;;  %v2213_v35 = vor.u32 1.1754944e-38, %v2212_v28 }
 0x293   :  { %v922_v4 = vadd.f32 %v4130_v36, %v921_v2 }
 0x294   :  { %v3106_v6 = vpop.eup %3105  ;;  %v2190_v7 = vadd.f32 %v3104_v60, %v2189_v15  ;;  %v1623_v8 = vmul.f32 1.442695, %v1527_v22 }
 0x295   :  { %v1015_v17 = vmax.f32 %v922_v4, 0.0  ;;  %v1338_v23 = vpop.f32.mrf.mxu2  ;;  %v3108_v9 = vpop.eup %3107  ;;  %v1718_v10 = vadd.f32 1.0, %v3106_v6 }
 0x296   :  { %v1339_v11 = vadd.f32 %v4130_v36, %v1338_v23  ;;  %v2194_v12 = vsel %vm2193_vm15, %v3104_v60, %v2190_v7  ;;  %v2202_v16 = vmul.f32 %v3108_v9, %v1717_v62  ;;  %3109 = vpow2.f32 %v1623_v8 }
 0x297   :  { %2956 = vmatmul.msk.f32.gmra.mxu3 %vm564_vm1, %v1015_v17  ;;  %v2199_v19 = vsel %vm2196_vm2, %v2198_v18, %v2194_v12  ;;  %3111 = vrcp.f32 %v1718_v10  ;;  %vm2207_vm3 = vweird.f32 %v3108_v9  ;;  %v2225_v30 = vand.u32 2147483647, %v1718_v10 }
 0x298   :  { %2740 = vst.msk [vmem:[%s4399_s5 + $0xe8] sm:$0xff] %vm564_vm1, %v2199_v19  ;;  %v2203_v14 = vsub.f32 1.0, %v2202_v16  ;;  %v1464_v21 = vmax.f32 %v1339_v11, -30.0  ;;  %vm2208_vm5 = vmor %vm2206_vm4, %vm2207_vm3  ;;  %v2227_v49 = vand.u32 2147483648, %v1718_v10  ;;  %vm2221_vm8 = vweird.f32 %v1718_v10 }
 0x299   :  { %vm2226_vm10 = vcmp.eq.f32.partialorder %v2225_v30, 8.507059e+37 }
 0x29a   :  { %v924_v20 = vpop.f32.mrf.mxu3  ;;  %v2204_v39 = vmul.f32 %v3108_v9, %v2203_v14  ;;  %v1528_v27 = vsub.f32 0.0, %v1464_v21  ;;  %v2228_v58 = vor.u32 1.1754944e-38, %v2227_v49 }
 0x29b   :  { %v925_v24 = vadd.f32 %v4130_v36, %v924_v20 }
 0x29c   :  { %v3110_v13 = vpop.eup %3109  ;;  %v2205_v31 = vadd.f32 %v3108_v9, %v2204_v39  ;;  %v1625_v32 = vmul.f32 1.442695, %v1528_v27 }
 0x29d   :  { %v1016_v29 = vmax.f32 %v925_v24, 0.0  ;;  %v1341_v33 = vpop.f32.mrf.mxu2  ;;  %v3112_v34 = vpop.eup %3111  ;;  %v1719_v37 = vadd.f32 1.0, %v3110_v13 }
 0x29e   :  { %v1342_v38 = vadd.f32 %v4130_v36, %v1341_v33  ;;  %v2209_v40 = vsel %vm2208_vm5, %v3108_v9, %v2205_v31  ;;  %v2217_v41 = vmul.f32 %v3112_v34, %v1718_v10  ;;  %3113 = vpow2.f32 %v1625_v32 }
 0x29f   :  { %2957 = vmatmul.msk.f32.gmra.mxu3 %vm564_vm1, %v1016_v29  ;;  %v2214_v42 = vsel %vm2211_vm6, %v2213_v35, %v2209_v40  ;;  %3115 = vrcp.f32 %v1719_v37  ;;  %vm2222_vm7 = vweird.f32 %v3112_v34  ;;  %v2240_v3 = vand.u32 2147483647, %v1719_v37 }
 0x2a0   :  { %2741 = vst.msk [vmem:[%s4399_s5 + $0xf0] sm:$0xff] %vm564_vm1, %v2214_v42  ;;  %v2218_v44 = vsub.f32 1.0, %v2217_v41  ;;  %v1465_v46 = vmax.f32 %v1342_v38, -30.0  ;;  %vm2223_vm9 = vmor %vm2221_vm8, %vm2222_vm7  ;;  %v2242_v25 = vand.u32 2147483648, %v1719_v37  ;;  %vm2236_vm12 = vweird.f32 %v1719_v37 }
 0x2a1   :  { %vm2241_vm14 = vcmp.eq.f32.partialorder %v2240_v3, 8.507059e+37 }
 0x2a2   :  { %v927_v43 = vpop.f32.mrf.mxu3  ;;  %v2219_v50 = vmul.f32 %v3112_v34, %v2218_v44  ;;  %v1529_v51 = vsub.f32 0.0, %v1465_v46  ;;  %v2243_v8 = vor.u32 1.1754944e-38, %v2242_v25 }
 0x2a3   :  { %v928_v47 = vadd.f32 %v4130_v36, %v927_v43 }
 0x2a4   :  { %v3114_v52 = vpop.eup %3113  ;;  %v2220_v53 = vadd.f32 %v3112_v34, %v2219_v50  ;;  %v1627_v54 = vmul.f32 1.442695, %v1529_v51 }
 0x2a5   :  { %v1017_v48 = vmax.f32 %v928_v47, 0.0  ;;  %v1344_v55 = vpop.f32.mrf.mxu2  ;;  %v3116_v56 = vpop.eup %3115  ;;  %v1720_v59 = vadd.f32 1.0, %v3114_v52 }
 0x2a6   :  { %v1345_v60 = vadd.f32 %v4130_v36, %v1344_v55  ;;  %v2224_v61 = vsel %vm2223_vm9, %v3112_v34, %v2220_v53  ;;  %v2232_v62 = vmul.f32 %v3116_v56, %v1719_v37  ;;  %3117 = vpow2.f32 %v1627_v54 }
 0x2a7   :  { %2958 = vmatmul.msk.f32.gmra.mxu3 %vm564_vm1, %v1017_v48  ;;  %v2229_v45 = vsel %vm2226_vm10, %v2228_v58, %v2224_v61  ;;  %3119 = vrcp.f32 %v1720_v59  ;;  %vm2237_vm11 = vweird.f32 %v3116_v56  ;;  %v2255_v14 = vand.u32 2147483647, %v1720_v59 }
 0x2a8   :  { %2742 = vst.msk [vmem:[%s4399_s5 + $0xf8] sm:$0xff] %vm564_vm1, %v2229_v45  ;;  %v2233_v0 = vsub.f32 1.0, %v2232_v62  ;;  %v1466_v1 = vmax.f32 %v1345_v60, -30.0  ;;  %vm2238_vm13 = vmor %vm2236_vm12, %vm2237_vm11  ;;  %v2257_v21 = vand.u32 2147483648, %v1720_v59  ;;  %vm2251_vm15 = vweird.f32 %v1720_v59 }
 0x2a9   :  { %vm2256_vm3 = vcmp.eq.f32.partialorder %v2255_v14, 8.507059e+37 }
 0x2aa   :  { %v930_v63 = vpop.f32.mrf.mxu3  ;;  %v2234_v4 = vmul.f32 %v3116_v56, %v2233_v0  ;;  %v1530_v5 = vsub.f32 0.0, %v1466_v1  ;;  %v2258_v31 = vor.u32 1.1754944e-38, %v2257_v21 }
 0x2ab   :  { %v931_v2 = vadd.f32 %v4130_v36, %v930_v63 }
 0x2ac   :  { %v3118_v15 = vpop.eup %3117  ;;  %v2235_v22 = vadd.f32 %v3116_v56, %v2234_v4  ;;  %v1629_v17 = vmul.f32 1.442695, %v1530_v5 }
 0x2ad   :  { %v1018_v57 = vmax.f32 %v931_v2, 0.0  ;;  %v1347_v6 = vpop.f32.mrf.mxu2  ;;  %v3120_v7 = vpop.eup %3119  ;;  %v1721_v23 = vadd.f32 1.0, %v3118_v15 }
 0x2ae   :  { %v1348_v9 = vadd.f32 %v4130_v36, %v1347_v6  ;;  %v2239_v18 = vsel %vm2238_vm13, %v3116_v56, %v2235_v22  ;;  %v2247_v10 = vmul.f32 %v3120_v7, %v1720_v59  ;;  %3121 = vpow2.f32 %v1629_v17 }
 0x2af   :  { %2959 = vmatmul.msk.f32.gmra.mxu3 %vm564_vm1, %v1018_v57  ;;  %v2244_v11 = vsel %vm2241_vm14, %v2243_v8, %v2239_v18  ;;  %3123 = vrcp.f32 %v1721_v23  ;;  %vm2252_vm0 = vweird.f32 %v3120_v7  ;;  %v2270_v43 = vand.u32 2147483647, %v1721_v23 }
 0x2b0   :  { %2743 = vst.msk [vmem:[%s4399_s5 + $0x100] sm:$0xff] %vm564_vm1, %v2244_v11  ;;  %v2248_v16 = vsub.f32 1.0, %v2247_v10  ;;  %v1467_v19 = vmax.f32 %v1348_v9, -30.0  ;;  %vm2253_vm2 = vmor %vm2251_vm15, %vm2252_vm0  ;;  %v2272_v44 = vand.u32 2147483648, %v1721_v23  ;;  %vm2266_vm5 = vweird.f32 %v1721_v23 }
 0x2b1   :  { %vm2271_vm7 = vcmp.eq.f32.partialorder %v2270_v43, 8.507059e+37 }
 0x2b2   :  { %v933_v12 = vpop.f32.mrf.mxu3  ;;  %v2249_v24 = vmul.f32 %v3120_v7, %v2248_v16  ;;  %v1531_v26 = vsub.f32 0.0, %v1467_v19  ;;  %v2273_v52 = vor.u32 1.1754944e-38, %v2272_v44 }
 0x2b3   :  { %v934_v20 = vadd.f32 %v4130_v36, %v933_v12 }
 0x2b4   :  { %v3122_v39 = vpop.eup %3121  ;;  %v2250_v27 = vadd.f32 %v3120_v7, %v2249_v24  ;;  %v1631_v29 = vmul.f32 1.442695, %v1531_v26 }
 0x2b5   :  { %v1019_v28 = vmax.f32 %v934_v20, 0.0  ;;  %v3124_v13 = vpop.eup %3123  ;;  %v1722_v32 = vadd.f32 1.0, %v3122_v39  ;;  %v1350_v33 = vpop.f32.mrf.mxu2 }
 0x2b6   :  { %v2254_v34 = vsel %vm2253_vm2, %v3120_v7, %v2250_v27  ;;  %v2262_v35 = vmul.f32 %v3124_v13, %v1721_v23  ;;  %3125 = vpow2.f32 %v1631_v29  ;;  %v1351_v41 = vadd.f32 %v4130_v36, %v1350_v33 }
 0x2b7   :  { %2960 = vmatmul.msk.f32.gmra.mxu3 %vm564_vm1, %v1019_v28  ;;  %v2259_v37 = vsel %vm2256_vm3, %v2258_v31, %v2254_v34  ;;  %3127 = vrcp.f32 %v1722_v32  ;;  %vm2267_vm4 = vweird.f32 %v3124_v13  ;;  %v2287_v45 = vand.u32 2147483648, %v1722_v32 }
 0x2b8   :  { %2744 = vst.msk [vmem:[%s4399_s5 + $0x108] sm:$0xff] %vm564_vm1, %v2259_v37  ;;  %v2263_v40 = vsub.f32 1.0, %v2262_v35  ;;  %v1468_v47 = vmax.f32 %v1351_v41, -30.0  ;;  %vm2268_vm6 = vmor %vm2266_vm5, %vm2267_vm4  ;;  %v2285_v1 = vand.u32 2147483647, %v1722_v32  ;;  %vm2281_vm9 = vweird.f32 %v1722_v32 }
 0x2b9   :  { %v2288_v57 = vor.u32 1.1754944e-38, %v2287_v45 }
 0x2ba   :  { %v936_v38 = vpop.f32.mrf.mxu3  ;;  %v2264_v46 = vmul.f32 %v3124_v13, %v2263_v40  ;;  %v1532_v51 = vsub.f32 0.0, %v1468_v47  ;;  %vm2286_vm11 = vcmp.eq.f32.partialorder %v2285_v1, 8.507059e+37 }
 0x2bb   :  { %v937_v42 = vadd.f32 %v4130_v36, %v936_v38 }
 0x2bc   :  { %v3126_v49 = vpop.eup %3125  ;;  %v2265_v50 = vadd.f32 %v3124_v13, %v2264_v46  ;;  %v1633_v58 = vmul.f32 1.442695, %v1532_v51 }
 0x2bd   :  { %v1020_v30 = vmax.f32 %v937_v42, 0.0  ;;  %v3128_v48 = vpop.eup %3127  ;;  %v1723_v53 = vadd.f32 1.0, %v3126_v49  ;;  %v1353_v54 = vpop.f32.mrf.mxu2 }
 0x2be   :  { %v2269_v55 = vsel %vm2268_vm6, %v3124_v13, %v2265_v50  ;;  %v2277_v56 = vmul.f32 %v3128_v48, %v1722_v32  ;;  %v1354_v62 = vadd.f32 %v4130_v36, %v1353_v54  ;;  %vm2282_vm8 = vweird.f32 %v3128_v48 }
 0x2bf   :  { %2961 = vmatmul.msk.f32.gmra.mxu3 %vm564_vm1, %v1020_v30  ;;  %v2274_v59 = vsel %vm2271_vm7, %v2273_v52, %v2269_v55  ;;  %3129 = vrcp.f32 %v1723_v53  ;;  %vm2283_vm10 = vmor %vm2281_vm9, %vm2282_vm8  ;;  %v2300_v12 = vand.u32 2147483647, %v1723_v53  ;;  %v2302_v16 = vand.u32 2147483648, %v1723_v53 }
 0x2c0   :  { %2745 = vst.msk [vmem:[%s4399_s5 + $0x110] sm:$0xff] %vm564_vm1, %v2274_v59  ;;  %v2278_v61 = vsub.f32 1.0, %v2277_v56  ;;  %3131 = vpow2.f32 %v1633_v58  ;;  %v1469_v2 = vmax.f32 %v1354_v62, -30.0  ;;  %vm2296_vm13 = vweird.f32 %v1723_v53 }
 0x2c1   :  { %v2303_v26 = vor.u32 1.1754944e-38, %v2302_v16  ;;  %vm2301_vm0 = vcmp.eq.f32.partialorder %v2300_v12, 8.507059e+37 }
 0x2c2   :  { %v939_v60 = vpop.f32.mrf.mxu3  ;;  %v2279_v0 = vmul.f32 %v3128_v48, %v2278_v61  ;;  %v1533_v4 = vsub.f32 0.0, %v1469_v2 }
 0x2c3   :  { %v940_v63 = vadd.f32 %v4130_v36, %v939_v60 }
 0x2c4   :  { %v2280_v25 = vadd.f32 %v3128_v48, %v2279_v0  ;;  %v1635_v7 = vmul.f32 1.442695, %v1533_v4 }
 0x2c5   :  { %v1021_v3 = vmax.f32 %v940_v63, 0.0  ;;  %v3130_v5 = vpop.eup %3129  ;;  %v1356_v15 = vpop.f32.mrf.mxu2 }
 0x2c6   :  { %v3132_v22 = vpop.eup %3131  ;;  %v2284_v17 = vsel %vm2283_vm10, %v3128_v48, %v2280_v25  ;;  %v2292_v6 = vmul.f32 %v3130_v5, %v1723_v53  ;;  %v1357_v9 = vadd.f32 %v4130_v36, %v1356_v15  ;;  %3133 = vpow2.f32 %v1635_v7 }
 0x2c7   :  { %2962 = vmatmul.msk.f32.gmra.mxu3 %vm564_vm1, %v1021_v3  ;;  %v2289_v8 = vsel %vm2286_vm11, %v2288_v57, %v2284_v17  ;;  %v1724_v23 = vadd.f32 1.0, %v3132_v22  ;;  %vm2297_vm12 = vweird.f32 %v3130_v5 }
 0x2c8   :  { %2746 = vst.msk [vmem:[%s4399_s5 + $0x118] sm:$0xff] %vm564_vm1, %v2289_v8  ;;  %v2293_v10 = vsub.f32 1.0, %v2292_v6  ;;  %v1470_v20 = vmax.f32 %v1357_v9, -30.0  ;;  %vm2298_vm14 = vmor %vm2296_vm13, %vm2297_vm12 }
 0x2c9   :  { %3135 = vrcp.f32 %v1724_v23  ;;  %v2315_v42 = vand.u32 2147483647, %v1724_v23  ;;  %v2317_v43 = vand.u32 2147483648, %v1724_v23  ;;  %vm2311_vm2 = vweird.f32 %v1724_v23 }
 0x2ca   :  { %v942_v18 = vpop.f32.mrf.mxu3  ;;  %v2294_v19 = vmul.f32 %v3130_v5, %v2293_v10  ;;  %v1534_v24 = vsub.f32 0.0, %v1470_v20 }
 0x2cb   :  { %v943_v11 = vadd.f32 %v4130_v36, %v942_v18  ;;  %v2318_v52 = vor.u32 1.1754944e-38, %v2317_v43  ;;  %vm2316_vm4 = vcmp.eq.f32.partialorder %v2315_v42, 8.507059e+37 }
 0x2cc   :  { %v2295_v21 = vadd.f32 %v3130_v5, %v2294_v19  ;;  %v3134_v39 = vpop.eup %3133  ;;  %v1637_v29 = vmul.f32 1.442695, %v1534_v24 }
 0x2cd   :  { %v1022_v14 = vmax.f32 %v943_v11, 0.0  ;;  %v1359_v28 = vpop.f32.mrf.mxu2  ;;  %v1725_v33 = vadd.f32 1.0, %v3134_v39 }
 0x2ce   :  { %v2299_v27 = vsel %vm2298_vm14, %v3130_v5, %v2295_v21  ;;  %v1360_v13 = vadd.f32 %v4130_v36, %v1359_v28  ;;  %3137 = vpow2.f32 %v1637_v29 }
 0x2cf   :  { %2963 = vmatmul.msk.f32.gmra.mxu3 %vm564_vm1, %v1022_v14  ;;  %v3136_v31 = vpop.eup %3135  ;;  %v2304_v32 = vsel %vm2301_vm0, %v2303_v26, %v2299_v27  ;;  %3139 = vrcp.f32 %v1725_v33  ;;  %v2330_v45 = vand.u32 2147483647, %v1725_v33  ;;  %v2332_v63 = vand.u32 2147483648, %v1725_v33 }
 0x2d0   :  { %2747 = vst.msk [vmem:[%s4399_s5 + $0x120] sm:$0xff] %vm564_vm1, %v2304_v32  ;;  %v2307_v35 = vmul.f32 %v3136_v31, %v1724_v23  ;;  %v1471_v37 = vmax.f32 %v1360_v13, -30.0  ;;  %vm2312_vm15 = vweird.f32 %v3136_v31  ;;  %vm2326_vm6 = vweird.f32 %v1725_v33 }
 0x2d1   :  { %vm2313_vm3 = vmor %vm2311_vm2, %vm2312_vm15  ;;  %v2333_v22 = vor.u32 1.1754944e-38, %v2332_v63  ;;  %vm2331_vm8 = vcmp.eq.f32.partialorder %v2330_v45, 8.507059e+37 }
 0x2d2   :  { %v945_v34 = vpop.f32.mrf.mxu3  ;;  %v2308_v38 = vsub.f32 1.0, %v2307_v35  ;;  %v1535_v40 = vsub.f32 0.0, %v1471_v37 }
 0x2d3   :  { %v946_v41 = vadd.f32 %v4130_v36, %v945_v34 }
 0x2d4   :  { %v2309_v44 = vmul.f32 %v3136_v31, %v2308_v38  ;;  %v1639_v46 = vmul.f32 1.442695, %v1535_v40  ;;  %v3138_v49 = vpop.eup %3137 }
 0x2d5   :  { %v1023_v47 = vmax.f32 %v946_v41, 0.0  ;;  %v1362_v30 = vpop.f32.mrf.mxu2  ;;  %v3140_v48 = vpop.eup %3139  ;;  %v1726_v53 = vadd.f32 1.0, %v3138_v49 }
 0x2d6   :  { %v2310_v50 = vadd.f32 %v3136_v31, %v2309_v44  ;;  %3141 = vpow2.f32 %v1639_v46  ;;  %v1363_v51 = vadd.f32 %v4130_v36, %v1362_v30  ;;  %v2322_v56 = vmul.f32 %v3140_v48, %v1725_v33 }
 0x2d7   :  { %2964 = vmatmul.msk.f32.gmra.mxu3 %vm564_vm1, %v1023_v47  ;;  %3143 = vrcp.f32 %v1726_v53  ;;  %vm2327_vm5 = vweird.f32 %v3140_v48  ;;  %v2345_v11 = vand.u32 2147483647, %v1726_v53  ;;  %v2347_v12 = vand.u32 2147483648, %v1726_v53 }
 0x2d8   :  { %v2314_v55 = vsel %vm2313_vm3, %v3136_v31, %v2310_v50  ;;  %v1472_v58 = vmax.f32 %v1363_v51, -30.0  ;;  %v2323_v60 = vsub.f32 1.0, %v2322_v56  ;;  %vm2328_vm7 = vmor %vm2326_vm6, %vm2327_vm5  ;;  %vm2341_vm10 = vweird.f32 %v1726_v53 }
 0x2d9   :  { %v2319_v59 = vsel %vm2316_vm4, %v2318_v52, %v2314_v55  ;;  %vm2346_vm12 = vcmp.eq.f32.partialorder %v2345_v11, 8.507059e+37  ;;  %v2348_v27 = vor.u32 1.1754944e-38, %v2347_v12 }
 0x2da   :  { %v948_v54 = vpop.f32.mrf.mxu3  ;;  %2748 = vst.msk [vmem:[%s4399_s5 + $0x128] sm:$0xff] %vm564_vm1, %v2319_v59  ;;  %v1536_v61 = vsub.f32 0.0, %v1472_v58  ;;  %v2324_v1 = vmul.f32 %v3140_v48, %v2323_v60 }
 0x2db   :  { %v949_v62 = vadd.f32 %v4130_v36, %v948_v54 }
 0x2dc   :  { %v3142_v0 = vpop.eup %3141  ;;  %v1641_v2 = vmul.f32 1.442695, %v1536_v61  ;;  %v2325_v5 = vadd.f32 %v3140_v48, %v2324_v1 }
 0x2dd   :  { %v1024_v3 = vmax.f32 %v949_v62, 0.0  ;;  %v4245_v25 = vadd.f32 1.0, %v3142_v0  ;;  %v1365_v4 = vpop.f32.mrf.mxu2  ;;  %v3144_v15 = vpop.eup %3143 }
 0x2de   :  { %3145 = vpow2.f32 %v1641_v2  ;;  %v1366_v57 = vadd.f32 %v4130_v36, %v1365_v4  ;;  %v2329_v6 = vsel %vm2328_vm7, %v3140_v48, %v2325_v5  ;;  %v2337_v7 = vmul.f32 %v3144_v15, %v1726_v53 }
 0x2df   :  { %2965 = vmatmul.msk.f32.gmra.mxu3 %vm564_vm1, %v1024_v3  ;;  %3147 = vrcp.f32 %v4245_v25  ;;  %v2334_v23 = vsel %vm2331_vm8, %v2333_v22, %v2329_v6  ;;  %vm2342_vm9 = vweird.f32 %v3144_v15  ;;  %v2360_v35 = vand.u32 2147483647, %v4245_v25 }
 0x2e0   :  { %v1473_v8 = vmax.f32 %v1366_v57, -30.0  ;;  %2749 = vst.msk [vmem:[%s4399_s5 + $0x130] sm:$0xff] %vm564_vm1, %v2334_v23  ;;  %v2338_v18 = vsub.f32 1.0, %v2337_v7  ;;  %vm2343_vm11 = vmor %vm2341_vm10, %vm2342_vm9  ;;  %v2362_v37 = vand.u32 2147483648, %v4245_v25  ;;  %vm2356_vm14 = vweird.f32 %v4245_v25 }
 0x2e1   :  { %vm2361_vm15 = vcmp.eq.f32.partialorder %v2360_v35, 8.507059e+37 }
 0x2e2   :  { %v951_v17 = vpop.f32.mrf.mxu3  ;;  %v1537_v10 = vsub.f32 0.0, %v1473_v8  ;;  %v2339_v20 = vmul.f32 %v3144_v15, %v2338_v18  ;;  %v2363_v47 = vor.u32 1.1754944e-38, %v2362_v37 }
 0x2e3   :  { %v952_v9 = vadd.f32 %v4130_v36, %v951_v17 }
 0x2e4   :  { %v3146_v19 = vpop.eup %3145  ;;  %v1643_v14 = vmul.f32 1.442695, %v1537_v10  ;;  %v2340_v28 = vadd.f32 %v3144_v15, %v2339_v20 }
 0x2e5   :  { %v1025_v16 = vmax.f32 %v952_v9, 0.0  ;;  %v3148_v21 = vpop.eup %3147  ;;  %v1728_v24 = vadd.f32 1.0, %v3146_v19  ;;  %v1368_v26 = vpop.f32.mrf.mxu2 }
 0x2e6   :  { %v2352_v39 = vmul.f32 %v3148_v21, %v4245_v25  ;;  %3149 = vpow2.f32 %v1643_v14  ;;  %v2344_v13 = vsel %vm2343_vm11, %v3144_v15, %v2340_v28  ;;  %v1369_v32 = vadd.f32 %v4130_v36, %v1368_v26 }
 0x2e7   :  { %2966 = vmatmul.msk.f32.gmra.mxu3 %vm564_vm1, %v1025_v16  ;;  %3151 = vrcp.f32 %v1728_v24  ;;  %v2349_v34 = vsel %vm2346_vm12, %v2348_v27, %v2344_v13  ;;  %vm2357_vm13 = vweird.f32 %v3148_v21  ;;  %v2377_v56 = vand.u32 2147483648, %v1728_v24 }
 0x2e8   :  { %v2353_v31 = vsub.f32 1.0, %v2352_v39  ;;  %2750 = vst.msk [vmem:[%s4399_s5 + $0x138] sm:$0xff] %vm564_vm1, %v2349_v34  ;;  %v1474_v40 = vmax.f32 %v1369_v32, -30.0  ;;  %vm2358_vm0 = vmor %vm2356_vm14, %vm2357_vm13  ;;  %v2375_v60 = vand.u32 2147483647, %v1728_v24  ;;  %vm2371_vm3 = vweird.f32 %v1728_v24 }
 0x2e9   :  { %v2378_v1 = vor.u32 1.1754944e-38, %v2377_v56 }
 0x2ea   :  { %v954_v29 = vpop.f32.mrf.mxu3  ;;  %v2354_v38 = vmul.f32 %v3148_v21, %v2353_v31  ;;  %v1538_v44 = vsub.f32 0.0, %v1474_v40  ;;  %vm2376_vm5 = vcmp.eq.f32.partialorder %v2375_v60, 8.507059e+37 }
 0x2eb   :  { %v955_v33 = vadd.f32 %v4130_v36, %v954_v29 }
 0x2ec   :  { %v3150_v42 = vpop.eup %3149  ;;  %v2355_v43 = vadd.f32 %v3148_v21, %v2354_v38  ;;  %v1645_v48 = vmul.f32 1.442695, %v1538_v44 }
 0x2ed   :  { %v1026_v41 = vmax.f32 %v955_v33, 0.0  ;;  %v3152_v46 = vpop.eup %3151  ;;  %v1729_v30 = vadd.f32 1.0, %v3150_v42  ;;  %v1371_v49 = vpop.f32.mrf.mxu2 }
 0x2ee   :  { %v2359_v50 = vsel %vm2358_vm0, %v3148_v21, %v2355_v43  ;;  %v2367_v51 = vmul.f32 %v3152_v46, %v1728_v24  ;;  %v1372_v55 = vadd.f32 %v4130_v36, %v1371_v49  ;;  %vm2372_vm2 = vweird.f32 %v3152_v46 }
 0x2ef   :  { %2967 = vmatmul.msk.f32.gmra.mxu3 %vm564_vm1, %v1026_v41  ;;  %v2364_v52 = vsel %vm2361_vm15, %v2363_v47, %v2359_v50  ;;  %3153 = vrcp.f32 %v1729_v30  ;;  %vm2373_vm4 = vmor %vm2371_vm3, %vm2372_vm2  ;;  %v2390_v8 = vand.u32 2147483647, %v1729_v30  ;;  %v2392_v23 = vand.u32 2147483648, %v1729_v30 }
 0x2f0   :  { %2751 = vst.msk [vmem:[%s4399_s5 + $0x140] sm:$0xff] %vm564_vm1, %v2364_v52  ;;  %v2368_v54 = vsub.f32 1.0, %v2367_v51  ;;  %3155 = vpow2.f32 %v1645_v48  ;;  %v1475_v61 = vmax.f32 %v1372_v55, -30.0  ;;  %vm2386_vm7 = vweird.f32 %v1729_v30 }
 0x2f1   :  { %v2393_v16 = vor.u32 1.1754944e-38, %v2392_v23  ;;  %vm2391_vm9 = vcmp.eq.f32.partialorder %v2390_v8, 8.507059e+37 }
 0x2f2   :  { %v957_v53 = vpop.f32.mrf.mxu3  ;;  %v2369_v59 = vmul.f32 %v3152_v46, %v2368_v54  ;;  %v1539_v63 = vsub.f32 0.0, %v1475_v61 }
 0x2f3   :  { %v958_v58 = vadd.f32 %v4130_v36, %v957_v53 }
 0x2f4   :  { %v2370_v45 = vadd.f32 %v3152_v46, %v2369_v59  ;;  %v1647_v5 = vmul.f32 1.442695, %v1539_v63 }
 0x2f5   :  { %v1027_v62 = vmax.f32 %v958_v58, 0.0  ;;  %v3154_v0 = vpop.eup %3153  ;;  %v1374_v2 = vpop.f32.mrf.mxu2 }
 0x2f6   :  { %v3156_v3 = vpop.eup %3155  ;;  %v2374_v25 = vsel %vm2373_vm4, %v3152_v46, %v2370_v45  ;;  %v2382_v4 = vmul.f32 %v3154_v0, %v1729_v30  ;;  %v1375_v22 = vadd.f32 %v4130_v36, %v1374_v2  ;;  %3157 = vpow2.f32 %v1647_v5 }
 0x2f7   :  { %2968 = vmatmul.msk.f32.gmra.mxu3 %vm564_vm1, %v1027_v62  ;;  %v2379_v57 = vsel %vm2376_vm5, %v2378_v1, %v2374_v25  ;;  %v1730_v15 = vadd.f32 1.0, %v3156_v3  ;;  %vm2387_vm6 = vweird.f32 %v3154_v0 }
 0x2f8   :  { %2752 = vst.msk [vmem:[%s4399_s5 + $0x148] sm:$0xff] %vm564_vm1, %v2379_v57  ;;  %v2383_v6 = vsub.f32 1.0, %v2382_v4  ;;  %v1476_v18 = vmax.f32 %v1375_v22, -30.0  ;;  %vm2388_vm8 = vmor %vm2386_vm7, %vm2387_vm6 }
 0x2f9   :  { %3159 = vrcp.f32 %v1730_v15  ;;  %v2405_v34 = vand.u32 2147483647, %v1730_v15  ;;  %v2407_v35 = vand.u32 2147483648, %v1730_v15  ;;  %vm2401_vm11 = vweird.f32 %v1730_v15 }
 0x2fa   :  { %v960_v17 = vpop.f32.mrf.mxu3  ;;  %v2384_v9 = vmul.f32 %v3154_v0, %v2383_v6  ;;  %v1540_v12 = vsub.f32 0.0, %v1476_v18 }
 0x2fb   :  { %v961_v7 = vadd.f32 %v4130_v36, %v960_v17  ;;  %v4283_v36 = vld [vmem:[%s4398_s4] ss:$0 sm:$0xff]  ;;  %v2408_v47 = vor.u32 1.1754944e-38, %v2407_v35  ;;  %vm2406_vm13 = vcmp.eq.f32.partialorder %v2405_v34, 8.507059e+37 }
 0x2fc   :  { %v2385_v11 = vadd.f32 %v3154_v0, %v2384_v9  ;;  %v3158_v20 = vpop.eup %3157  ;;  %v1649_v21 = vmul.f32 1.442695, %v1540_v12 }
 0x2fd   :  { %v1028_v10 = vmax.f32 %v961_v7, 0.0  ;;  %v1377_v19 = vpop.f32.mrf.mxu2  ;;  %v1731_v39 = vadd.f32 1.0, %v3158_v20 }
 0x2fe   :  { %v2389_v14 = vsel %vm2388_vm8, %v3154_v0, %v2385_v11  ;;  %v1378_v24 = vadd.f32 %v4283_v36, %v1377_v19  ;;  %3161 = vpow2.f32 %v1649_v21 }
 0x2ff   :  { %2969 = vmatmul.msk.f32.gmra.mxu3 %vm564_vm1, %v1028_v10  ;;  %v3160_v26 = vpop.eup %3159  ;;  %v2394_v28 = vsel %vm2391_vm9, %v2393_v16, %v2389_v14  ;;  %3163 = vrcp.f32 %v1731_v39  ;;  %v2422_v54 = vand.u32 2147483648, %v1731_v39  ;;  %v2420_v58 = vand.u32 2147483647, %v1731_v39 }
 0x300   :  { %2753 = vst.msk [vmem:[%s4399_s5 + $0x150] sm:$0xff] %vm564_vm1, %v2394_v28  ;;  %v2397_v29 = vmul.f32 %v3160_v26, %v1730_v15  ;;  %v1477_v13 = vmax.f32 %v1378_v24, -30.0  ;;  %vm2402_vm10 = vweird.f32 %v3160_v26  ;;  %vm2416_vm0 = vweird.f32 %v1731_v39 }
 0x301   :  { %vm2403_vm12 = vmor %vm2401_vm11, %vm2402_vm10  ;;  %v2423_v45 = vor.u32 1.1754944e-38, %v2422_v54  ;;  %vm2421_vm2 = vcmp.eq.f32.partialorder %v2420_v58, 8.507059e+37 }
 0x302   :  { %v963_v27 = vpop.f32.mrf.mxu3  ;;  %v2398_v31 = vsub.f32 1.0, %v2397_v29  ;;  %v1541_v32 = vsub.f32 0.0, %v1477_v13 }
 0x303   :  { %v964_v33 = vadd.f32 %v4283_v36, %v963_v27 }
 0x304   :  { %v2399_v37 = vmul.f32 %v3160_v26, %v2398_v31  ;;  %v1651_v38 = vmul.f32 1.442695, %v1541_v32  ;;  %v3162_v42 = vpop.eup %3161 }
 0x305   :  { %v1029_v40 = vmax.f32 %v964_v33, 0.0  ;;  %v1380_v41 = vpop.f32.mrf.mxu2  ;;  %v3164_v46 = vpop.eup %3163  ;;  %v1732_v30 = vadd.f32 1.0, %v3162_v42 }
 0x306   :  { %v2400_v43 = vadd.f32 %v3160_v26, %v2399_v37  ;;  %3165 = vpow2.f32 %v1651_v38  ;;  %v1381_v44 = vadd.f32 %v4283_v36, %v1380_v41  ;;  %v2412_v50 = vmul.f32 %v3164_v46, %v1731_v39 }
 0x307   :  { %2970 = vmatmul.msk.f32.gmra.mxu3 %vm564_vm1, %v1029_v40  ;;  %3167 = vrcp.f32 %v1732_v30  ;;  %vm2417_vm14 = vweird.f32 %v3164_v46  ;;  %v2435_v5 = vand.u32 2147483647, %v1732_v30  ;;  %v2437_v57 = vand.u32 2147483648, %v1732_v30 }
 0x308   :  { %v2404_v49 = vsel %vm2403_vm12, %v3160_v26, %v2400_v43  ;;  %v1478_v51 = vmax.f32 %v1381_v44, -30.0  ;;  %v2413_v52 = vsub.f32 1.0, %v2412_v50  ;;  %vm2418_vm15 = vmor %vm2416_vm0, %vm2417_vm14  ;;  %vm2431_vm4 = vweird.f32 %v1732_v30 }
 0x309   :  { %v2409_v48 = vsel %vm2406_vm13, %v2408_v47, %v2404_v49  ;;  %vm2436_vm6 = vcmp.eq.f32.partialorder %v2435_v5, 8.507059e+37  ;;  %v2438_v18 = vor.u32 1.1754944e-38, %v2437_v57 }
 0x30a   :  { %2754 = vst.msk [vmem:[%s4399_s5 + $0x158] sm:$0xff] %vm564_vm1, %v2409_v48  ;;  %v1542_v53 = vsub.f32 0.0, %v1478_v51  ;;  %v2414_v56 = vmul.f32 %v3164_v46, %v2413_v52 }
 0x30c   :  { %v3166_v55 = vpop.eup %3165  ;;  %v1653_v59 = vmul.f32 1.442695, %v1542_v53  ;;  %v2415_v61 = vadd.f32 %v3164_v46, %v2414_v56 }
 0x30d   :  { %v1733_v60 = vadd.f32 1.0, %v3166_v55  ;;  %v3168_v62 = vpop.eup %3167 }
 0x30e   :  { %3169 = vpow2.f32 %v1653_v59  ;;  %v2419_v0 = vsel %vm2418_vm15, %v3164_v46, %v2415_v61  ;;  %v2427_v1 = vmul.f32 %v3168_v62, %v1732_v30  ;;  %vm2432_vm3 = vweird.f32 %v3168_v62 }
 0x30f   :  { %3171 = vrcp.f32 %v1733_v60  ;;  %v2424_v3 = vsel %vm2421_vm2, %v2423_v45, %v2419_v0  ;;  %vm2433_vm5 = vmor %vm2431_vm4, %vm2432_vm3  ;;  %v2452_v20 = vand.u32 2147483648, %v1733_v60  ;;  %v2450_v21 = vand.u32 2147483647, %v1733_v60 }
 0x310   :  { %2755 = vst.msk [vmem:[%s4399_s5 + $0x160] sm:$0xff] %vm564_vm1, %v2424_v3  ;;  %v2428_v25 = vsub.f32 1.0, %v2427_v1  ;;  %vm2446_vm8 = vweird.f32 %v1733_v60 }
 0x311   :  { %v2453_v27 = vor.u32 1.1754944e-38, %v2452_v20  ;;  %vm2451_vm10 = vcmp.eq.f32.partialorder %v2450_v21, 8.507059e+37 }
 0x312   :  { %v1383_v63 = vpop.f32.mrf.mxu3  ;;  %v2429_v22 = vmul.f32 %v3168_v62, %v2428_v25 }
 0x313   :  { %v1384_v2 = vadd.f32 %v4283_v36, %v1383_v63 }
 0x314   :  { %v3170_v15 = vpop.eup %3169  ;;  %v2430_v8 = vadd.f32 %v3168_v62, %v2429_v22 }
 0x315   :  { %v1479_v4 = vmax.f32 %v1384_v2, -30.0  ;;  %v3172_v6 = vpop.eup %3171  ;;  %v1734_v7 = vadd.f32 1.0, %v3170_v15 }
 0x316   :  { %v2442_v23 = vmul.f32 %v3172_v6, %v1733_v60  ;;  %v2434_v11 = vsel %vm2433_vm5, %v3168_v62, %v2430_v8  ;;  %vm2447_vm7 = vweird.f32 %v3172_v6 }
 0x317   :  { %v1543_v17 = vsub.f32 0.0, %v1479_v4  ;;  %3173 = vrcp.f32 %v1734_v7  ;;  %v2439_v19 = vsel %vm2436_vm6, %v2438_v18, %v2434_v11  ;;  %vm2448_vm9 = vmor %vm2446_vm8, %vm2447_vm7  ;;  %v2467_v40 = vand.u32 2147483648, %v1734_v7 }
 0x318   :  { %v2443_v12 = vsub.f32 1.0, %v2442_v23  ;;  %2756 = vst.msk [vmem:[%s4399_s5 + $0x168] sm:$0xff] %vm564_vm1, %v2439_v19  ;;  %v2465_v42 = vand.u32 2147483647, %v1734_v7  ;;  %vm2461_vm12 = vweird.f32 %v1734_v7 }
 0x319   :  { %v1655_v9 = vmul.f32 1.442695, %v1543_v17  ;;  %v2468_v47 = vor.u32 1.1754944e-38, %v2467_v40 }
 0x31a   :  { %v1386_v10 = vpop.f32.mrf.mxu3  ;;  %v2444_v14 = vmul.f32 %v3172_v6, %v2443_v12  ;;  %vm2466_vm14 = vcmp.eq.f32.partialorder %v2465_v42, 8.507059e+37 }
 0x31b   :  { %3175 = vpow2.f32 %v1655_v9  ;;  %v1387_v16 = vadd.f32 %v4283_v36, %v1386_v10 }
 0x31c   :  { %v2445_v26 = vadd.f32 %v3172_v6, %v2444_v14 }
 0x31d   :  { %v1480_v24 = vmax.f32 %v1387_v16, -30.0  ;;  %v3174_v39 = vpop.eup %3173 }
 0x31e   :  { %v2449_v13 = vsel %vm2448_vm9, %v3172_v6, %v2445_v26  ;;  %v2457_v31 = vmul.f32 %v3174_v39, %v1734_v7  ;;  %vm2462_vm11 = vweird.f32 %v3174_v39 }
 0x31f   :  { %v1544_v28 = vsub.f32 0.0, %v1480_v24  ;;  %v2454_v33 = vsel %vm2451_vm10, %v2453_v27, %v2449_v13  ;;  %vm2463_vm13 = vmor %vm2461_vm12, %vm2462_vm11 }
 0x320   :  { %2757 = vst.msk [vmem:[%s4399_s5 + $0x170] sm:$0xff] %vm564_vm1, %v2454_v33  ;;  %v2458_v37 = vsub.f32 1.0, %v2457_v31 }
 0x321   :  { %v3176_v29 = vpop.eup %3175  ;;  %v1657_v32 = vmul.f32 1.442695, %v1544_v28 }
 0x322   :  { %v1735_v34 = vadd.f32 1.0, %v3176_v29  ;;  %v1389_v35 = vpop.f32.mrf.mxu3  ;;  %v2459_v41 = vmul.f32 %v3174_v39, %v2458_v37 }
 0x323   :  { %3177 = vpow2.f32 %v1657_v32  ;;  %v1390_v38 = vadd.f32 %v4283_v36, %v1389_v35 }
 0x324   :  { %3179 = vrcp.f32 %v1735_v34  ;;  %v2460_v44 = vadd.f32 %v3174_v39, %v2459_v41  ;;  %v2482_v59 = vand.u32 2147483648, %v1735_v34  ;;  %v2480_v61 = vand.u32 2147483647, %v1735_v34 }
 0x325   :  { %v1481_v43 = vmax.f32 %v1390_v38, -30.0  ;;  %vm2476_vm15 = vweird.f32 %v1735_v34 }
 0x326   :  { %v2464_v49 = vsel %vm2463_vm13, %v3174_v39, %v2460_v44  ;;  %v2483_v2 = vor.u32 1.1754944e-38, %v2482_v59  ;;  %vm2481_vm3 = vcmp.eq.f32.partialorder %v2480_v61, 8.507059e+37 }
 0x327   :  { %v1545_v46 = vsub.f32 0.0, %v1481_v43  ;;  %v2469_v48 = vsel %vm2466_vm14, %v2468_v47, %v2464_v49 }
 0x328   :  { %2758 = vst.msk [vmem:[%s4399_s5 + $0x178] sm:$0xff] %vm564_vm1, %v2469_v48 }
 0x329   :  { %v3178_v30 = vpop.eup %3177  ;;  %v1659_v50 = vmul.f32 1.442695, %v1545_v46 }
 0x32a   :  { %v3180_v51 = vpop.eup %3179  ;;  %v1736_v52 = vadd.f32 1.0, %v3178_v30  ;;  %v1392_v53 = vpop.f32.mrf.mxu3 }
 0x32b   :  { %v2472_v54 = vmul.f32 %v3180_v51, %v1735_v34  ;;  %3181 = vpow2.f32 %v1659_v50  ;;  %v1393_v55 = vadd.f32 %v4283_v36, %v1392_v53  ;;  %vm2477_vm0 = vweird.f32 %v3180_v51 }
 0x32c   :  { %3183 = vrcp.f32 %v1736_v52  ;;  %vm2478_vm2 = vmor %vm2476_vm15, %vm2477_vm0  ;;  %v2497_v17 = vand.u32 2147483648, %v1736_v52  ;;  %v2495_v7 = vand.u32 2147483647, %v1736_v52  ;;  %vm2491_vm5 = vweird.f32 %v1736_v52 }
 0x32d   :  { %v2473_v56 = vsub.f32 1.0, %v2472_v54  ;;  %v1482_v58 = vmax.f32 %v1393_v55, -30.0 }
 0x32e   :  { %v2498_v11 = vor.u32 1.1754944e-38, %v2497_v17  ;;  %vm2496_vm7 = vcmp.eq.f32.partialorder %v2495_v7, 8.507059e+37 }
 0x32f   :  { %v2474_v60 = vmul.f32 %v3180_v51, %v2473_v56  ;;  %v1546_v62 = vsub.f32 0.0, %v1482_v58 }
 0x331   :  { %v3182_v45 = vpop.eup %3181  ;;  %v2475_v63 = vadd.f32 %v3180_v51, %v2474_v60  ;;  %v1661_v0 = vmul.f32 1.442695, %v1546_v62 }
 0x332   :  { %v3184_v1 = vpop.eup %3183  ;;  %v1737_v3 = vadd.f32 1.0, %v3182_v45  ;;  %v1395_v25 = vpop.f32.mrf.mxu3 }
 0x333   :  { %v2479_v4 = vsel %vm2478_vm2, %v3180_v51, %v2475_v63  ;;  %v2487_v5 = vmul.f32 %v3184_v1, %v1736_v52  ;;  %3185 = vpow2.f32 %v1661_v0  ;;  %v1396_v22 = vadd.f32 %v4283_v36, %v1395_v25 }
 0x334   :  { %v2484_v57 = vsel %vm2481_vm3, %v2483_v2, %v2479_v4  ;;  %3187 = vrcp.f32 %v1737_v3  ;;  %vm2492_vm4 = vweird.f32 %v3184_v1  ;;  %v2512_v28 = vand.u32 2147483648, %v1737_v3 }
 0x335   :  { %2759 = vst.msk [vmem:[%s4399_s5 + $0x180] sm:$0xff] %vm564_vm1, %v2484_v57  ;;  %v2488_v15 = vsub.f32 1.0, %v2487_v5  ;;  %v1483_v8 = vmax.f32 %v1396_v22, -30.0  ;;  %vm2493_vm6 = vmor %vm2491_vm5, %vm2492_vm4  ;;  %v2510_v27 = vand.u32 2147483647, %v1737_v3  ;;  %vm2506_vm9 = vweird.f32 %v1737_v3 }
 0x336   :  { %v2513_v33 = vor.u32 1.1754944e-38, %v2512_v28 }
 0x337   :  { %v2489_v6 = vmul.f32 %v3184_v1, %v2488_v15  ;;  %v1547_v18 = vsub.f32 0.0, %v1483_v8  ;;  %vm2511_vm11 = vcmp.eq.f32.partialorder %v2510_v27, 8.507059e+37 }
 0x339   :  { %v3186_v23 = vpop.eup %3185  ;;  %v2490_v9 = vadd.f32 %v3184_v1, %v2489_v6  ;;  %v1663_v14 = vmul.f32 1.442695, %v1547_v18 }
 0x33a   :  { %v3188_v10 = vpop.eup %3187  ;;  %v1738_v12 = vadd.f32 1.0, %v3186_v23  ;;  %v1398_v16 = vpop.f32.mrf.mxu3 }
 0x33b   :  { %v2494_v19 = vsel %vm2493_vm6, %v3184_v1, %v2490_v9  ;;  %v2502_v20 = vmul.f32 %v3188_v10, %v1737_v3  ;;  %v1399_v26 = vadd.f32 %v4283_v36, %v1398_v16  ;;  %vm2507_vm8 = vweird.f32 %v3188_v10 }
 0x33c   :  { %v2499_v21 = vsel %vm2496_vm7, %v2498_v11, %v2494_v19  ;;  %3189 = vrcp.f32 %v1738_v12  ;;  %vm2508_vm10 = vmor %vm2506_vm9, %vm2507_vm8  ;;  %v2527_v46 = vand.u32 2147483648, %v1738_v12  ;;  %v2525_v30 = vand.u32 2147483647, %v1738_v12 }
 0x33d   :  { %2760 = vst.msk [vmem:[%s4399_s5 + $0x188] sm:$0xff] %vm564_vm1, %v2499_v21  ;;  %v2503_v24 = vsub.f32 1.0, %v2502_v20  ;;  %3191 = vpow2.f32 %v1663_v14  ;;  %v1484_v29 = vmax.f32 %v1399_v26, -30.0  ;;  %vm2521_vm13 = vweird.f32 %v1738_v12 }
 0x33e   :  { %v2528_v48 = vor.u32 1.1754944e-38, %v2527_v46  ;;  %vm2526_vm0 = vcmp.eq.f32.partialorder %v2525_v30, 8.507059e+37 }
 0x33f   :  { %v2504_v39 = vmul.f32 %v3188_v10, %v2503_v24  ;;  %v1548_v31 = vsub.f32 0.0, %v1484_v29 }
 0x341   :  { %v2505_v13 = vadd.f32 %v3188_v10, %v2504_v39  ;;  %v1665_v40 = vmul.f32 1.442695, %v1548_v31 }
 0x342   :  { %v3190_v32 = vpop.eup %3189  ;;  %v1401_v34 = vpop.f32.mrf.mxu3 }
 0x343   :  { %v3192_v35 = vpop.eup %3191  ;;  %v2509_v37 = vsel %vm2508_vm10, %v3188_v10, %v2505_v13  ;;  %v2517_v38 = vmul.f32 %v3190_v32, %v1738_v12  ;;  %v1402_v43 = vadd.f32 %v4283_v36, %v1401_v34  ;;  %3193 = vpow2.f32 %v1665_v40 }
 0x344   :  { %v2514_v41 = vsel %vm2511_vm11, %v2513_v33, %v2509_v37  ;;  %v1739_v42 = vadd.f32 1.0, %v3192_v35  ;;  %vm2522_vm12 = vweird.f32 %v3190_v32 }
 0x345   :  { %2761 = vst.msk [vmem:[%s4399_s5 + $0x190] sm:$0xff] %vm564_vm1, %v2514_v41  ;;  %v2518_v44 = vsub.f32 1.0, %v2517_v38  ;;  %v1485_v49 = vmax.f32 %v1402_v43, -30.0  ;;  %vm2523_vm14 = vmor %vm2521_vm13, %vm2522_vm12 }
 0x346   :  { %3195 = vrcp.f32 %v1739_v42  ;;  %v2542_v63 = vand.u32 2147483648, %v1739_v42  ;;  %v2540_v1 = vand.u32 2147483647, %v1739_v42  ;;  %vm2536_vm2 = vweird.f32 %v1739_v42 }
 0x347   :  { %v2519_v47 = vmul.f32 %v3190_v32, %v2518_v44  ;;  %v1549_v51 = vsub.f32 0.0, %v1485_v49 }
 0x348   :  { %v2543_v15 = vor.u32 1.1754944e-38, %v2542_v63  ;;  %vm2541_vm4 = vcmp.eq.f32.partialorder %v2540_v1, 8.507059e+37 }
 0x349   :  { %v2520_v50 = vadd.f32 %v3190_v32, %v2519_v47  ;;  %v3194_v52 = vpop.eup %3193  ;;  %v1667_v54 = vmul.f32 1.442695, %v1549_v51 }
 0x34a   :  { %v1404_v55 = vpop.f32.mrf.mxu3  ;;  %v1740_v59 = vadd.f32 1.0, %v3194_v52 }
 0x34b   :  { %v2524_v53 = vsel %vm2523_vm14, %v3190_v32, %v2520_v50  ;;  %v1405_v60 = vadd.f32 %v4283_v36, %v1404_v55  ;;  %3197 = vpow2.f32 %v1667_v54 }
 0x34c   :  { %v3196_v56 = vpop.eup %3195  ;;  %v2529_v58 = vsel %vm2526_vm0, %v2528_v48, %v2524_v53  ;;  %3199 = vrcp.f32 %v1740_v59  ;;  %v2557_v18 = vand.u32 2147483648, %v1740_v59  ;;  %v2555_v11 = vand.u32 2147483647, %v1740_v59 }
 0x34d   :  { %2762 = vst.msk [vmem:[%s4399_s5 + $0x198] sm:$0xff] %vm564_vm1, %v2529_v58  ;;  %v2532_v61 = vmul.f32 %v3196_v56, %v1739_v42  ;;  %v1486_v45 = vmax.f32 %v1405_v60, -30.0  ;;  %vm2537_vm15 = vweird.f32 %v3196_v56  ;;  %vm2551_vm6 = vweird.f32 %v1740_v59 }
 0x34e   :  { %vm2538_vm3 = vmor %vm2536_vm2, %vm2537_vm15  ;;  %v2558_v21 = vor.u32 1.1754944e-38, %v2557_v18  ;;  %vm2556_vm8 = vcmp.eq.f32.partialorder %v2555_v11, 8.507059e+37 }
 0x34f   :  { %v2533_v62 = vsub.f32 1.0, %v2532_v61  ;;  %v1550_v2 = vsub.f32 0.0, %v1486_v45 }
 0x351   :  { %v2534_v0 = vmul.f32 %v3196_v56, %v2533_v62  ;;  %v3198_v3 = vpop.eup %3197  ;;  %v1669_v4 = vmul.f32 1.442695, %v1550_v2 }
 0x352   :  { %v1407_v5 = vpop.f32.mrf.mxu3  ;;  %v3200_v57 = vpop.eup %3199  ;;  %v1741_v22 = vadd.f32 1.0, %v3198_v3 }
 0x353   :  { %v2535_v25 = vadd.f32 %v3196_v56, %v2534_v0  ;;  %v1408_v17 = vadd.f32 %v4283_v36, %v1407_v5  ;;  %v2547_v7 = vmul.f32 %v3200_v57, %v1740_v59  ;;  %3201 = vpow2.f32 %v1669_v4 }
 0x354   :  { %3203 = vrcp.f32 %v1741_v22  ;;  %vm2552_vm5 = vweird.f32 %v3200_v57  ;;  %v2572_v31 = vand.u32 2147483648, %v1741_v22  ;;  %v2570_v33 = vand.u32 2147483647, %v1741_v22 }
 0x355   :  { %v2539_v6 = vsel %vm2538_vm3, %v3196_v56, %v2535_v25  ;;  %v2548_v23 = vsub.f32 1.0, %v2547_v7  ;;  %v1487_v9 = vmax.f32 %v1408_v17, -30.0  ;;  %vm2553_vm7 = vmor %vm2551_vm6, %vm2552_vm5  ;;  %vm2566_vm10 = vweird.f32 %v1741_v22 }
 0x356   :  { %v2544_v8 = vsel %vm2541_vm4, %v2543_v15, %v2539_v6  ;;  %v2573_v41 = vor.u32 1.1754944e-38, %v2572_v31  ;;  %vm2571_vm12 = vcmp.eq.f32.partialorder %v2570_v33, 8.507059e+37 }
 0x357   :  { %2763 = vst.msk [vmem:[%s4399_s5 + $0x1a0] sm:$0xff] %vm564_vm1, %v2544_v8  ;;  %v2549_v10 = vmul.f32 %v3200_v57, %v2548_v23  ;;  %v1551_v12 = vsub.f32 0.0, %v1487_v9 }
 0x359   :  { %v3202_v16 = vpop.eup %3201  ;;  %v2550_v19 = vadd.f32 %v3200_v57, %v2549_v10  ;;  %v1671_v20 = vmul.f32 1.442695, %v1551_v12 }
 0x35a   :  { %v3204_v14 = vpop.eup %3203  ;;  %v1742_v24 = vadd.f32 1.0, %v3202_v16  ;;  %v1410_v26 = vpop.f32.mrf.mxu3 }
 0x35b   :  { %v2554_v28 = vsel %vm2553_vm7, %v3200_v57, %v2550_v19  ;;  %v2562_v39 = vmul.f32 %v3204_v14, %v1741_v22  ;;  %3205 = vpow2.f32 %v1671_v20  ;;  %v1411_v13 = vadd.f32 %v4283_v36, %v1410_v26 }
 0x35c   :  { %v2559_v27 = vsel %vm2556_vm8, %v2558_v21, %v2554_v28  ;;  %3207 = vrcp.f32 %v1742_v24  ;;  %vm2567_vm9 = vweird.f32 %v3204_v14  ;;  %v2587_v51 = vand.u32 2147483648, %v1742_v24 }
 0x35d   :  { %2764 = vst.msk [vmem:[%s4399_s5 + $0x1a8] sm:$0xff] %vm564_vm1, %v2559_v27  ;;  %v2563_v29 = vsub.f32 1.0, %v2562_v39  ;;  %v1488_v34 = vmax.f32 %v1411_v13, -30.0  ;;  %vm2568_vm11 = vmor %vm2566_vm10, %vm2567_vm9  ;;  %v2585_v52 = vand.u32 2147483647, %v1742_v24  ;;  %vm2581_vm14 = vweird.f32 %v1742_v24 }
 0x35e   :  { %v2588_v58 = vor.u32 1.1754944e-38, %v2587_v51 }
 0x35f   :  { %v2564_v32 = vmul.f32 %v3204_v14, %v2563_v29  ;;  %v1552_v38 = vsub.f32 0.0, %v1488_v34  ;;  %vm2586_vm15 = vcmp.eq.f32.partialorder %v2585_v52, 8.507059e+37 }
 0x361   :  { %v3206_v35 = vpop.eup %3205  ;;  %v2565_v37 = vadd.f32 %v3204_v14, %v2564_v32  ;;  %v1673_v47 = vmul.f32 1.442695, %v1552_v38 }
 0x362   :  { %v3208_v40 = vpop.eup %3207  ;;  %v1743_v42 = vadd.f32 1.0, %v3206_v35  ;;  %v1413_v43 = vpop.f32.mrf.mxu3 }
 0x363   :  { %v2569_v44 = vsel %vm2568_vm11, %v3204_v14, %v2565_v37  ;;  %v2577_v46 = vmul.f32 %v3208_v40, %v1742_v24  ;;  %v1414_v50 = vadd.f32 %v4283_v36, %v1413_v43  ;;  %vm2582_vm13 = vweird.f32 %v3208_v40 }
 0x364   :  { %v2574_v30 = vsel %vm2571_vm12, %v2573_v41, %v2569_v44  ;;  %3209 = vrcp.f32 %v1743_v42  ;;  %vm2583_vm0 = vmor %vm2581_vm14, %vm2582_vm13  ;;  %v2602_v3 = vand.u32 2147483648, %v1743_v42  ;;  %v2600_v4 = vand.u32 2147483647, %v1743_v42 }
 0x365   :  { %2765 = vst.msk [vmem:[%s4399_s5 + $0x1b0] sm:$0xff] %vm564_vm1, %v2574_v30  ;;  %v2578_v49 = vsub.f32 1.0, %v2577_v46  ;;  %3211 = vpow2.f32 %v1673_v47  ;;  %v1489_v53 = vmax.f32 %v1414_v50, -30.0  ;;  %vm2596_vm3 = vweird.f32 %v1743_v42 }
 0x366   :  { %v2603_v22 = vor.u32 1.1754944e-38, %v2602_v3  ;;  %vm2601_vm5 = vcmp.eq.f32.partialorder %v2600_v4, 8.507059e+37 }
 0x367   :  { %v2579_v48 = vmul.f32 %v3208_v40, %v2578_v49  ;;  %v1553_v55 = vsub.f32 0.0, %v1489_v53 }
 0x369   :  { %v2580_v54 = vadd.f32 %v3208_v40, %v2579_v48  ;;  %v1675_v45 = vmul.f32 1.442695, %v1553_v55 }
 0x36a   :  { %v3210_v56 = vpop.eup %3209  ;;  %v1416_v59 = vpop.f32.mrf.mxu3 }
 0x36b   :  { %v3212_v60 = vpop.eup %3211  ;;  %v2584_v61 = vsel %vm2583_vm0, %v3208_v40, %v2580_v54  ;;  %v2592_v62 = vmul.f32 %v3210_v56, %v1743_v42  ;;  %v1417_v1 = vadd.f32 %v4283_v36, %v1416_v59  ;;  %3213 = vpow2.f32 %v1675_v45 }
 0x36c   :  { %v2589_v63 = vsel %vm2586_vm15, %v2588_v58, %v2584_v61  ;;  %v1744_v0 = vadd.f32 1.0, %v3212_v60  ;;  %vm2597_vm2 = vweird.f32 %v3210_v56 }
 0x36d   :  { %2766 = vst.msk [vmem:[%s4399_s5 + $0x1b8] sm:$0xff] %vm564_vm1, %v2589_v63  ;;  %v2593_v2 = vsub.f32 1.0, %v2592_v62  ;;  %v1490_v5 = vmax.f32 %v1417_v1, -30.0  ;;  %vm2598_vm4 = vmor %vm2596_vm3, %vm2597_vm2 }
 0x36e   :  { %3215 = vrcp.f32 %v1744_v0  ;;  %v2617_v20 = vand.u32 2147483648, %v1744_v0  ;;  %v2615_v21 = vand.u32 2147483647, %v1744_v0  ;;  %vm2611_vm7 = vweird.f32 %v1744_v0 }
 0x36f   :  { %v2594_v25 = vmul.f32 %v3210_v56, %v2593_v2  ;;  %v1554_v15 = vsub.f32 0.0, %v1490_v5 }
 0x370   :  { %v2618_v13 = vor.u32 1.1754944e-38, %v2617_v20  ;;  %vm2616_vm9 = vcmp.eq.f32.partialorder %v2615_v21, 8.507059e+37 }
 0x371   :  { %v2595_v57 = vadd.f32 %v3210_v56, %v2594_v25  ;;  %v3214_v6 = vpop.eup %3213  ;;  %v1677_v8 = vmul.f32 1.442695, %v1554_v15 }
 0x372   :  { %v1419_v17 = vpop.f32.mrf.mxu3  ;;  %v1745_v10 = vadd.f32 1.0, %v3214_v6 }
 0x373   :  { %v2599_v7 = vsel %vm2598_vm4, %v3210_v56, %v2595_v57  ;;  %v1420_v23 = vadd.f32 %v4283_v36, %v1419_v17  ;;  %3217 = vpow2.f32 %v1677_v8 }
 0x374   :  { %v3216_v9 = vpop.eup %3215  ;;  %v2604_v18 = vsel %vm2601_vm5, %v2603_v22, %v2599_v7  ;;  %3219 = vrcp.f32 %v1745_v10  ;;  %v2632_v40 = vand.u32 2147483648, %v1745_v10  ;;  %v2630_v43 = vand.u32 2147483647, %v1745_v10 }
 0x375   :  { %2767 = vst.msk [vmem:[%s4399_s5 + $0x1c0] sm:$0xff] %vm564_vm1, %v2604_v18  ;;  %v2607_v11 = vmul.f32 %v3216_v9, %v1744_v0  ;;  %v1491_v12 = vmax.f32 %v1420_v23, -30.0  ;;  %vm2612_vm6 = vweird.f32 %v3216_v9  ;;  %vm2626_vm11 = vweird.f32 %v1745_v10 }
 0x376   :  { %vm2613_vm8 = vmor %vm2611_vm7, %vm2612_vm6  ;;  %v2633_v51 = vor.u32 1.1754944e-38, %v2632_v40  ;;  %vm2631_vm13 = vcmp.eq.f32.partialorder %v2630_v43, 8.507059e+37 }
 0x377   :  { %v2608_v16 = vsub.f32 1.0, %v2607_v11  ;;  %v1555_v19 = vsub.f32 0.0, %v1491_v12 }
 0x379   :  { %v2609_v14 = vmul.f32 %v3216_v9, %v2608_v16  ;;  %v1679_v24 = vmul.f32 1.442695, %v1555_v19  ;;  %v3218_v28 = vpop.eup %3217 }
 0x37a   :  { %v1422_v26 = vpop.f32.mrf.mxu3  ;;  %v3220_v29 = vpop.eup %3219  ;;  %v1746_v31 = vadd.f32 1.0, %v3218_v28 }
 0x37b   :  { %v2610_v39 = vadd.f32 %v3216_v9, %v2609_v14  ;;  %3221 = vpow2.f32 %v1679_v24  ;;  %v1423_v27 = vadd.f32 %v4283_v36, %v1422_v26  ;;  %v2622_v33 = vmul.f32 %v3220_v29, %v1745_v10 }
 0x37c   :  { %3223 = vrcp.f32 %v1746_v31  ;;  %vm2627_vm10 = vweird.f32 %v3220_v29  ;;  %v2647_v58 = vand.u32 2147483648, %v1746_v31  ;;  %v2645_v61 = vand.u32 2147483647, %v1746_v31 }
 0x37d   :  { %v2614_v32 = vsel %vm2613_vm8, %v3216_v9, %v2610_v39  ;;  %v1492_v34 = vmax.f32 %v1423_v27, -30.0  ;;  %v2623_v37 = vsub.f32 1.0, %v2622_v33  ;;  %vm2628_vm12 = vmor %vm2626_vm11, %vm2627_vm10  ;;  %vm2641_vm0 = vweird.f32 %v1746_v31 }
 0x37e   :  { %v2619_v35 = vsel %vm2616_vm9, %v2618_v13, %v2614_v32  ;;  %v2648_v3 = vor.u32 1.1754944e-38, %v2647_v58  ;;  %vm2646_vm2 = vcmp.eq.f32.partialorder %v2645_v61, 8.507059e+37 }
 0x37f   :  { %2768 = vst.msk [vmem:[%s4399_s5 + $0x1c8] sm:$0xff] %vm564_vm1, %v2619_v35  ;;  %v1556_v38 = vsub.f32 0.0, %v1492_v34  ;;  %v2624_v42 = vmul.f32 %v3220_v29, %v2623_v37 }
 0x381   :  { %v3222_v41 = vpop.eup %3221  ;;  %v1681_v44 = vmul.f32 1.442695, %v1556_v38  ;;  %v2625_v30 = vadd.f32 %v3220_v29, %v2624_v42 }
 0x382   :  { %v1747_v46 = vadd.f32 1.0, %v3222_v41  ;;  %v1425_v47 = vpop.f32.mrf.mxu3  ;;  %v3224_v50 = vpop.eup %3223 }
 0x383   :  { %3225 = vpow2.f32 %v1681_v44  ;;  %v1426_v49 = vadd.f32 %v4283_v36, %v1425_v47  ;;  %v2629_v48 = vsel %vm2628_vm12, %v3220_v29, %v2625_v30  ;;  %v2637_v52 = vmul.f32 %v3224_v50, %v1746_v31 }
 0x384   :  { %3227 = vrcp.f32 %v1747_v46  ;;  %v2634_v54 = vsel %vm2631_vm13, %v2633_v51, %v2629_v48  ;;  %vm2642_vm14 = vweird.f32 %v3224_v50  ;;  %v2662_v15 = vand.u32 2147483648, %v1747_v46 }
 0x385   :  { %v1493_v53 = vmax.f32 %v1426_v49, -30.0  ;;  %2769 = vst.msk [vmem:[%s4399_s5 + $0x1d0] sm:$0xff] %vm564_vm1, %v2634_v54  ;;  %v2638_v55 = vsub.f32 1.0, %v2637_v52  ;;  %vm2643_vm15 = vmor %vm2641_vm0, %vm2642_vm14  ;;  %v2660_v17 = vand.u32 2147483647, %v1747_v46  ;;  %vm2656_vm4 = vweird.f32 %v1747_v46 }
 0x386   :  { %v2663_v18 = vor.u32 1.1754944e-38, %v2662_v15 }
 0x387   :  { %v1557_v56 = vsub.f32 0.0, %v1493_v53  ;;  %v2639_v60 = vmul.f32 %v3224_v50, %v2638_v55  ;;  %vm2661_vm6 = vcmp.eq.f32.partialorder %v2660_v17, 8.507059e+37 }
 0x389   :  { %v3226_v59 = vpop.eup %3225  ;;  %v1683_v62 = vmul.f32 1.442695, %v1557_v56  ;;  %v2640_v1 = vadd.f32 %v3224_v50, %v2639_v60 }
 0x38a   :  { %v3228_v45 = vpop.eup %3227  ;;  %v1748_v63 = vadd.f32 1.0, %v3226_v59  ;;  %v1428_v0 = vpop.f32.mrf.mxu3 }
 0x38b   :  { %v2652_v2 = vmul.f32 %v3228_v45, %v1747_v46  ;;  %3229 = vpow2.f32 %v1683_v62  ;;  %v2644_v25 = vsel %vm2643_vm15, %v3224_v50, %v2640_v1  ;;  %v1429_v5 = vadd.f32 %v4283_v36, %v1428_v0 }
 0x38c   :  { %3231 = vrcp.f32 %v1748_v63  ;;  %v2649_v57 = vsel %vm2646_vm2, %v2648_v3, %v2644_v25  ;;  %vm2657_vm3 = vweird.f32 %v3228_v45  ;;  %v2677_v20 = vand.u32 2147483648, %v1748_v63 }
 0x38d   :  { %v2653_v4 = vsub.f32 1.0, %v2652_v2  ;;  %2770 = vst.msk [vmem:[%s4399_s5 + $0x1d8] sm:$0xff] %vm564_vm1, %v2649_v57  ;;  %v1494_v6 = vmax.f32 %v1429_v5, -30.0  ;;  %vm2658_vm5 = vmor %vm2656_vm4, %vm2657_vm3  ;;  %v2675_v21 = vand.u32 2147483647, %v1748_v63  ;;  %vm2671_vm8 = vweird.f32 %v1748_v63 }
 0x38e   :  { %v2678_v28 = vor.u32 1.1754944e-38, %v2677_v20 }
 0x38f   :  { %v2654_v22 = vmul.f32 %v3228_v45, %v2653_v4  ;;  %v1558_v23 = vsub.f32 0.0, %v1494_v6  ;;  %vm2676_vm10 = vcmp.eq.f32.partialorder %v2675_v21, 8.507059e+37 }
 0x391   :  { %v3230_v7 = vpop.eup %3229  ;;  %v2655_v8 = vadd.f32 %v3228_v45, %v2654_v22  ;;  %v1685_v12 = vmul.f32 1.442695, %v1558_v23 }
 0x392   :  { %v3232_v9 = vpop.eup %3231  ;;  %v1749_v10 = vadd.f32 1.0, %v3230_v7 }
 0x393   :  { %v2659_v36 = vsel %vm2658_vm5, %v3228_v45, %v2655_v8  ;;  %v2667_v11 = vmul.f32 %v3232_v9, %v1748_v63  ;;  %vm2672_vm7 = vweird.f32 %v3232_v9 }
 0x394   :  { %v2664_v16 = vsel %vm2661_vm6, %v2663_v18, %v2659_v36  ;;  %3233 = vrcp.f32 %v1749_v10  ;;  %vm2673_vm9 = vmor %vm2671_vm8, %vm2672_vm7  ;;  %v2692_v33 = vand.u32 2147483648, %v1749_v10  ;;  %v2690_v35 = vand.u32 2147483647, %v1749_v10 }
 0x395   :  { %2771 = vst.msk [vmem:[%s4399_s5 + $0x1e0] sm:$0xff] %vm564_vm1, %v2664_v16  ;;  %v2668_v19 = vsub.f32 1.0, %v2667_v11  ;;  %3235 = vpow2.f32 %v1685_v12  ;;  %vm2686_vm12 = vweird.f32 %v1749_v10 }
 0x396   :  { %v2693_v38 = vor.u32 1.1754944e-38, %v2692_v33  ;;  %vm2691_vm14 = vcmp.eq.f32.partialorder %v2690_v35, 8.507059e+37 }
 0x397   :  { %v2669_v14 = vmul.f32 %v3232_v9, %v2668_v19 }
 0x399   :  { %v2670_v24 = vadd.f32 %v3232_v9, %v2669_v14 }
 0x39a   :  { %v3234_v26 = vpop.eup %3233 }
 0x39b   :  { %v3236_v39 = vpop.eup %3235  ;;  %v2674_v27 = vsel %vm2673_vm9, %v3232_v9, %v2670_v24  ;;  %v2682_v29 = vmul.f32 %v3234_v26, %v1749_v10  ;;  %vm2687_vm11 = vweird.f32 %v3234_v26 }
 0x39c   :  { %v2679_v13 = vsel %vm2676_vm10, %v2678_v28, %v2674_v27  ;;  %v1750_v31 = vadd.f32 1.0, %v3236_v39  ;;  %vm2688_vm13 = vmor %vm2686_vm12, %vm2687_vm11 }
 0x39d   :  { %2772 = vst.msk [vmem:[%s4399_s5 + $0x1e8] sm:$0xff] %vm564_vm1, %v2679_v13  ;;  %v2683_v32 = vsub.f32 1.0, %v2682_v29 }
 0x39e   :  { %3237 = vrcp.f32 %v1750_v31  ;;  %v2707_v46 = vand.u32 2147483648, %v1750_v31  ;;  %v2705_v30 = vand.u32 2147483647, %v1750_v31  ;;  %vm2701_vm15 = vweird.f32 %v1750_v31 }
 0x39f   :  { %v2684_v34 = vmul.f32 %v3234_v26, %v2683_v32 }
 0x3a0   :  { %v2708_v50 = vor.u32 1.1754944e-38, %v2707_v46  ;;  %vm2706_vm3 = vcmp.eq.f32.partialorder %v2705_v30, 8.507059e+37 }
 0x3a1   :  { %v2685_v37 = vadd.f32 %v3234_v26, %v2684_v34 }
 0x3a3   :  { %v2689_v40 = vsel %vm2688_vm13, %v3234_v26, %v2685_v37 }
 0x3a4   :  { %v3238_v41 = vpop.eup %3237  ;;  %v2694_v42 = vsel %vm2691_vm14, %v2693_v38, %v2689_v40 }
 0x3a5   :  { %2773 = vst.msk [vmem:[%s4399_s5 + $0x1f0] sm:$0xff] %vm564_vm1, %v2694_v42  ;;  %v2697_v43 = vmul.f32 %v3238_v41, %v1750_v31  ;;  %vm2702_vm0 = vweird.f32 %v3238_v41 }
 0x3a6   :  { %vm2703_vm2 = vmor %vm2701_vm15, %vm2702_vm0 }
 0x3a7   :  { %v2698_v44 = vsub.f32 1.0, %v2697_v43 }
 0x3a9   :  { %v2699_v47 = vmul.f32 %v3238_v41, %v2698_v44 }
 0x3ab   :  { %v2700_v49 = vadd.f32 %v3238_v41, %v2699_v47 }
 0x3ad   :  { %v2704_v51 = vsel %vm2703_vm2, %v3238_v41, %v2700_v49 }
 0x3ae   :  { %v2709_v48 = vsel %vm2706_vm3, %v2708_v50, %v2704_v51 }
 0x3af   :  { %2774 = vst.msk [vmem:[%s4399_s5 + $0x1f8] sm:$0xff] %vm564_vm1, %v2709_v48 }

</bundles_post_ra>
